<compile_context>
chip_gen: v7x
topology: tpu7x:2x2x1
jax: 0.10.0
libtpu: 0.0.40
codegen_flags: <defaults>
</compile_context>

<pallas_src>
import functools

import jax
import jax.numpy as jnp
from jax import lax
from jax.experimental import pallas as pl
from jax.experimental.pallas import tpu as pltpu


# ---------------------------------------------------------------- utilities
def _round_up(x, m):
    return (x + m - 1) // m * m


def _tile_dim(dim, target, multiple):
    """Pick a tile size (multiple of `multiple`, <= target) and padded extent."""
    padded = _round_up(dim, multiple)
    if padded <= target:
        return padded, padded
    return target, _round_up(dim, target)


# ------------------------------------------------------------ Pallas kernels
def _matmul_kernel(a_ref, b_ref, bias_ref, *rest, act, with_stats):
    """Tiled matmul: acc += A_tile @ B_tile; epilogue fuses bias/act/stats."""
    if with_stats:
        o_ref, stats_ref, acc_ref = rest
    else:
        o_ref, acc_ref = rest
        stats_ref = None

    k = pl.program_id(2)

    @pl.when(k == 0)
    def _init():
        acc_ref[...] = jnp.zeros_like(acc_ref)

    acc_ref[...] += jnp.dot(a_ref[...], b_ref[...],
                            preferred_element_type=jnp.float32)

    @pl.when(k == pl.num_programs(2) - 1)
    def _finalize():
        y = acc_ref[...] + bias_ref[...]
        if act == "leaky":
            y = jnp.where(y > 0, y, 0.2 * y)
        elif act == "sigmoid":
            # exp + approx reciprocal both run on the EUP slot.
            y = pl.reciprocal(1.0 + jnp.exp(-y), approx=True)
        o_ref[...] = y
        if with_stats:
            s1 = jnp.sum(y, axis=0, keepdims=True)           # per-channel sum
            s2 = jnp.sum(y * y, axis=0, keepdims=True)        # per-channel sumsq
            pad = jnp.zeros((6, y.shape[1]), jnp.float32)
            stats_ref[...] = jnp.concatenate([s1, s2, pad], axis=0)


def _scale_shift_lrelu_kernel(x_ref, s_ref, t_ref, o_ref):
    """out = LeakyReLU_{0.2}(x * scale + shift)   (BatchNorm apply)."""
    y = x_ref[...] * s_ref[...] + t_ref[...]
    o_ref[...] = jnp.where(y > 0, y, 0.2 * y)


# ------------------------------------------------------------ Pallas wrappers
def pallas_matmul(a, b, bias, act="none", with_stats=False,
                  tm_target=256, tn_target=256, tk_target=512):
    """a:(M,K), b:(K,N), bias:(N,).  Returns padded (Mp,Np) f32 output
    (+ per-channel sum/sumsq if with_stats) and tiling metadata."""
    M, K = a.shape
    Kb, N = b.shape
    assert K == Kb

    tm, Mp = _tile_dim(M, tm_target, 8)
    tk, Kp = _tile_dim(K, tk_target, 128)
    tn, Np = _tile_dim(N, tn_target, 128)
    gm, gn, gk = Mp // tm, Np // tn, Kp // tk

    # bf16 operands (MXU native), f32 accumulate / epilogue.
    a_p = jnp.zeros((Mp, Kp), jnp.bfloat16).at[:M, :K].set(a.astype(jnp.bfloat16))
    b_p = jnp.zeros((Kp, Np), jnp.bfloat16).at[:K, :N].set(b.astype(jnp.bfloat16))
    bias_p = jnp.zeros((1, Np), jnp.float32).at[:, :N].set(
        bias.astype(jnp.float32).reshape(1, N))

    if with_stats:
        out_shape = (jax.ShapeDtypeStruct((Mp, Np), jnp.float32),
                     jax.ShapeDtypeStruct((gm * 8, Np), jnp.float32))
        out_specs = (pl.BlockSpec((tm, tn), lambda i, j, k: (i, j)),
                     pl.BlockSpec((8, tn), lambda i, j, k: (i, j)))
    else:
        out_shape = jax.ShapeDtypeStruct((Mp, Np), jnp.float32)
        out_specs = pl.BlockSpec((tm, tn), lambda i, j, k: (i, j))

    res = pl.pallas_call(
        functools.partial(_matmul_kernel, act=act, with_stats=with_stats),
        out_shape=out_shape,
        grid=(gm, gn, gk),
        in_specs=[
            pl.BlockSpec((tm, tk), lambda i, j, k: (i, k)),
            pl.BlockSpec((tk, tn), lambda i, j, k: (k, j)),
            pl.BlockSpec((1, tn), lambda i, j, k: (0, j)),
        ],
        out_specs=out_specs,
        scratch_shapes=[pltpu.VMEM((tm, tn), jnp.float32)],
        compiler_params=pltpu.CompilerParams(
            dimension_semantics=("parallel", "parallel", "arbitrary")),
    )(a_p, b_p, bias_p)

    meta = dict(M=M, N=N, Mp=Mp, Np=Np, tm=tm, tn=tn)
    if with_stats:
        out_p, stats_p = res
        st = stats_p.reshape(gm, 8, Np)
        col_sum = jnp.sum(st[:, 0, :N], axis=0)
        col_sq = jnp.sum(st[:, 1, :N], axis=0)
        return out_p, col_sum, col_sq, meta
    return res, meta


def bn_leaky_apply(x_p, scale, shift, meta):
    """Tiled scale/shift + LeakyReLU on the (padded) matmul output."""
    Mp, Np = x_p.shape
    N, tm = meta["N"], meta["tm"]
    s_p = jnp.zeros((1, Np), jnp.float32).at[:, :N].set(
        scale.astype(jnp.float32).reshape(1, N))
    t_p = jnp.zeros((1, Np), jnp.float32).at[:, :N].set(
        shift.astype(jnp.float32).reshape(1, N))
    return pl.pallas_call(
        _scale_shift_lrelu_kernel,
        out_shape=jax.ShapeDtypeStruct((Mp, Np), jnp.float32),
        grid=(Mp // tm,),
        in_specs=[
            pl.BlockSpec((tm, Np), lambda i: (i, 0)),
            pl.BlockSpec((1, Np), lambda i: (0, 0)),
            pl.BlockSpec((1, Np), lambda i: (0, 0)),
        ],
        out_specs=pl.BlockSpec((tm, Np), lambda i: (i, 0)),
        compiler_params=pltpu.CompilerParams(dimension_semantics=("parallel",)),
    )(x_p, s_p, t_p)


# ---------------------------------------------------------------- conv glue
def _im2col(x_nhwc, kh, kw, stride, pad):
    """im2col with (kh, kw, c) ordering; emits bf16 patches (M, kh*kw*C)."""
    x = x_nhwc.astype(jnp.bfloat16)
    N, H, W, C = x.shape
    xp = jnp.pad(x, ((0, 0), (pad, pad), (pad, pad), (0, 0)))
    OH = (H + 2 * pad - kh) // stride + 1
    OW = (W + 2 * pad - kw) // stride + 1
    cols = []
    for i in range(kh):
        for j in range(kw):
            p = lax.slice(
                xp,
                (0, i, j, 0),
                (N, i + (OH - 1) * stride + 1, j + (OW - 1) * stride + 1, C),
                (1, stride, stride, 1),
            )
            cols.append(p)  # (N, OH, OW, C)
    patches = jnp.concatenate(cols, axis=-1)  # (N, OH, OW, kh*kw*C)
    return patches.reshape(N * OH * OW, kh * kw * C), OH, OW


def _weight_matrix(w_oikk):
    OC, IC, KH, KW = w_oikk.shape
    # (OC, IC, KH, KW) -> (KH, KW, IC, OC) -> (KH*KW*IC, OC) to match im2col order.
    return jnp.transpose(w_oikk, (2, 3, 1, 0)).reshape(KH * KW * IC, OC)


def conv2d_lrelu(x_nhwc, w, bias, stride, pad, act):
    """Conv2d(+bias) with fused activation."""
    OC, _, KH, KW = w.shape
    a, OH, OW = _im2col(x_nhwc, KH, KW, stride, pad)
    out_p, meta = pallas_matmul(a, _weight_matrix(w), bias, act=act)
    Nb = x_nhwc.shape[0]
    return out_p[:meta["M"], :OC].reshape(Nb, OH, OW, OC)


def conv2d_bn_lrelu(x_nhwc, w, gamma, beta, stride, pad, eps=1e-5):
    """Conv2d(no bias) + BatchNorm(train batch stats) + LeakyReLU(0.2)."""
    OC, _, KH, KW = w.shape
    a, OH, OW = _im2col(x_nhwc, KH, KW, stride, pad)
    zero_bias = jnp.zeros((OC,), jnp.float32)
    out_p, col_sum, col_sq, meta = pallas_matmul(
        a, _weight_matrix(w), zero_bias, act="none", with_stats=True)
    cnt = float(meta["M"])                      # true (unpadded) row count
    mean = col_sum / cnt
    var = col_sq / cnt - mean * mean            # biased variance (PyTorch BN train)
    scale = gamma / jnp.sqrt(var + eps)
    shift = beta - mean * scale
    y_p = bn_leaky_apply(out_p, scale, shift, meta)
    Nb = x_nhwc.shape[0]
    return y_p[:meta["M"], :OC].reshape(Nb, OH, OW, OC)


# ------------------------------------------------------ parameter init (det.)
def init_params(key):
    ks = jax.random.split(key, 16)
    p = {}
    p["w1"] = 0.02 * jax.random.normal(ks[0], (64, 6, 4, 4), jnp.float32)
    p["b1"] = 0.01 * jax.random.normal(ks[1], (64,), jnp.float32)
    p["w2"] = 0.02 * jax.random.normal(ks[2], (128, 64, 4, 4), jnp.float32)
    p["g2"] = 1.0 + 0.02 * jax.random.normal(ks[3], (128,), jnp.float32)
    p["beta2"] = jnp.zeros((128,), jnp.float32)
    p["w3"] = 0.02 * jax.random.normal(ks[4], (256, 128, 4, 4), jnp.float32)
    p["g3"] = 1.0 + 0.02 * jax.random.normal(ks[5], (256,), jnp.float32)
    p["beta3"] = jnp.zeros((256,), jnp.float32)
    p["w4"] = 0.02 * jax.random.normal(ks[6], (512, 256, 4, 4), jnp.float32)
    p["g4"] = 1.0 + 0.02 * jax.random.normal(ks[7], (512,), jnp.float32)
    p["beta4"] = jnp.zeros((512,), jnp.float32)
    p["w5"] = 0.02 * jax.random.normal(ks[8], (1, 512, 4, 4), jnp.float32)
    p["b5"] = 0.01 * jax.random.normal(ks[9], (1,), jnp.float32)
    return p


# ---------------------------------------------------------------- forward
@jax.jit
def patch_discriminator_forward(params, x_nchw, y_nchw):
    """Matches PatchDiscriminator.forward(x, y); BN uses batch stats (train)."""
    z = jnp.concatenate([x_nchw, y_nchw], axis=1)            # (N, 6, H, W)
    h = jnp.transpose(z, (0, 2, 3, 1)).astype(jnp.float32)   # NHWC

    # Layer 1: Conv(6->64, k4 s2 p1, bias) + LeakyReLU(0.2)
    h = conv2d_lrelu(h, params["w1"], params["b1"], 2, 1, "leaky")
    # Layers 2-4: Conv (no bias) + BatchNorm(batch stats) + LeakyReLU(0.2)
    h = conv2d_bn_lrelu(h, params["w2"], params["g2"], params["beta2"], 2, 1)
    h = conv2d_bn_lrelu(h, params["w3"], params["g3"], params["beta3"], 2, 1)
    h = conv2d_bn_lrelu(h, params["w4"], params["g4"], params["beta4"], 1, 1)
    # Layer 5: Conv(512->1, k4 s1 p1, bias) + Sigmoid
    h = conv2d_lrelu(h, params["w5"], params["b5"], 1, 1, "sigmoid")
    return jnp.transpose(h, (0, 3, 1, 2))                    # back to NCHW


# --------------------------------------------------------- pure-JAX reference
def _reference_forward(params, x_nchw, y_nchw):
    def conv(x_nhwc, w, b, stride):
        rhs = jnp.transpose(w, (2, 3, 1, 0))  # HWIO
        o = lax.conv_general_dilated(
            x_nhwc, rhs, (stride, stride), ((1, 1), (1, 1)),
            dimension_numbers=("NHWC", "HWIO", "NHWC"),
            precision=lax.Precision.HIGHEST)
        return o + b.reshape(1, 1, 1, -1)

    z = jnp.concatenate([x_nchw, y_nchw], axis=1)
    h = jnp.transpose(z, (0, 2, 3, 1)).astype(jnp.float32)
    h = conv(h, params["w1"], params["b1"], 2)
    h = jnp.where(h > 0, h, 0.2 * h)
    for idx, stride in ((2, 2), (3, 2), (4, 1)):
        h = conv(h, params[f"w{idx}"], jnp.zeros((params[f"w{idx}"].shape[0],)), stride)
        mean = jnp.mean(h, axis=(0, 1, 2))
        var = jnp.mean((h - mean) ** 2, axis=(0, 1, 2))
        h = (h - mean) / jnp.sqrt(var + 1e-5) * params[f"g{idx}"] + params[f"beta{idx}"]
        h = jnp.where(h > 0, h, 0.2 * h)
    h = conv(h, params["w5"], params["b5"], 1)
    h = 1.0 / (1.0 + jnp.exp(-h))
    return jnp.transpose(h, (0, 3, 1, 2))


# -------------------------------------------------------------------- main
if __name__ == "__main__":
    key = jax.random.PRNGKey(0)
    kp, kx, ky = jax.random.split(key, 3)
    params = init_params(kp)

    # small shapes: batch=2, 3+3 channels, spatial=32 (32->16->8->4->3->2)
    x = jax.random.normal(kx, (2, 3, 32, 32), jnp.float32)
    y = jax.random.normal(ky, (2, 3, 32, 32), jnp.float32)

    out = patch_discriminator_forward(params, x, y)
    out = jax.block_until_ready(out)

    assert out.shape == (2, 1, 2, 2), out.shape
    assert bool(jnp.all(jnp.isfinite(out)))

    ref = jax.block_until_ready(_reference_forward(params, x, y))
    # bf16 matmul operands (f32 accumulate) vs f32 HIGHEST reference.
    assert bool(jnp.allclose(out, ref, rtol=2e-2, atol=2e-2)), "mismatch vs reference"

    print("KERNEL_OK")
</pallas_src>

<mosaic_0001>
module attributes {stable_mosaic.version = 11 : i64} {
  func.func @_matmul_kernel(%arg0: i32, %arg1: i32, %arg2: i32, %arg3: memref<256x128xbf16, #tpu.memory_space<vmem>>, %arg4: memref<128x128xbf16, #tpu.memory_space<vmem>>, %arg5: memref<1x128xf32, #tpu.memory_space<vmem>>, %arg6: memref<256x128xf32, #tpu.memory_space<vmem>>, %arg7: memref<256x128xf32, #tpu.memory_space<vmem>>) attributes {dimension_semantics = [#tpu.dimension_semantics<parallel>, #tpu.dimension_semantics<parallel>, #tpu.dimension_semantics<arbitrary>], iteration_bounds = array<i64: 2, 1, 1>, scalar_prefetch = 0 : i64, scratch_operands = 1 : i64, tpu.core_type = #tpu.core_type<tc>, window_params = [{transform_indices = @transform_0, window_bounds = array<i64: 256, 128>}, {transform_indices = @transform_1, window_bounds = array<i64: 128, 128>}, {transform_indices = @transform_2, window_bounds = array<i64: 1, 128>}, {transform_indices = @transform_3, window_bounds = array<i64: 256, 128>}]} {
    %c0_i32 = arith.constant 0 : i32
    %0 = arith.cmpi eq, %arg2, %c0_i32 : i32
    %1 = arith.extui %0 : i1 to i32
    %c0_i32_0 = arith.constant 0 : i32
    %2 = arith.cmpi ne, %1, %c0_i32_0 : i32
    scf.if %2 {
      %cst_10 = arith.constant 0.000000e+00 : f32
      %12 = vector.broadcast %cst_10 : f32 to vector<256x128xf32>
      %c0_11 = arith.constant 0 : index
      %c0_12 = arith.constant 0 : index
      %13 = vector.load %arg7[%c0_11, %c0_12] : memref<256x128xf32, #tpu.memory_space<vmem>>, vector<256x128xf32>
      tpu.vector_store %arg7[%c0_11, %c0_12], %12 {strides = array<i32>} : memref<256x128xf32, #tpu.memory_space<vmem>>, vector<256x128xf32>,
    } else {
    }
    %c0 = arith.constant 0 : index
    %c0_1 = arith.constant 0 : index
    %3 = vector.load %arg7[%c0, %c0_1] : memref<256x128xf32, #tpu.memory_space<vmem>>, vector<256x128xf32>
    %c0_2 = arith.constant 0 : index
    %c0_3 = arith.constant 0 : index
    %4 = vector.load %arg3[%c0_2, %c0_3] : memref<256x128xbf16, #tpu.memory_space<vmem>>, vector<256x128xbf16>
    %c0_4 = arith.constant 0 : index
    %c0_5 = arith.constant 0 : index
    %5 = vector.load %arg4[%c0_4, %c0_5] : memref<128x128xbf16, #tpu.memory_space<vmem>>, vector<128x128xbf16>
    %cst = arith.constant dense<0.000000e+00> : vector<256x128xf32>
    %6 = tpu.matmul %4, %5, %cst {dimension_numbers = #tpu.dot_dimension_numbers<[1], [0], [0], [1], [0, 0, 1, 1], [], []>} : vector<256x128xbf16>, vector<128x128xbf16>, vector<256x128xf32> -> vector<256x128xf32>
    %7 = arith.addf %3, %6 : vector<256x128xf32>
    %c0_6 = arith.constant 0 : index
    %c0_7 = arith.constant 0 : index
    %8 = vector.load %arg7[%c0_6, %c0_7] : memref<256x128xf32, #tpu.memory_space<vmem>>, vector<256x128xf32>
    tpu.vector_store %arg7[%c0_6, %c0_7], %7 {strides = array<i32>} : memref<256x128xf32, #tpu.memory_space<vmem>>, vector<256x128xf32>,
    %c0_i32_8 = arith.constant 0 : i32
    %9 = arith.cmpi eq, %arg2, %c0_i32_8 : i32
    %10 = arith.extui %9 : i1 to i32
    %c0_i32_9 = arith.constant 0 : i32
    %11 = arith.cmpi ne, %10, %c0_i32_9 : i32
    scf.if %11 {
      %c0_10 = arith.constant 0 : index
      %c0_11 = arith.constant 0 : index
      %12 = vector.load %arg7[%c0_10, %c0_11] : memref<256x128xf32, #tpu.memory_space<vmem>>, vector<256x128xf32>
      %c0_12 = arith.constant 0 : index
      %c0_13 = arith.constant 0 : index
      %13 = vector.load %arg5[%c0_12, %c0_13] : memref<1x128xf32, #tpu.memory_space<vmem>>, vector<1x128xf32>
      %14 = vector.broadcast %13 : vector<1x128xf32> to vector<256x128xf32>
      %15 = arith.addf %12, %14 : vector<256x128xf32>
      %cst_14 = arith.constant 0.000000e+00 : f32
      %16 = vector.broadcast %cst_14 : f32 to vector<256x128xf32>
      %17 = arith.cmpf ogt, %15, %16 : vector<256x128xf32>
      %cst_15 = arith.constant 2.000000e-01 : f32
      %18 = vector.broadcast %cst_15 : f32 to vector<256x128xf32>
      %19 = arith.mulf %18, %15 : vector<256x128xf32>
      %20 = arith.select %17, %15, %19 : vector<256x128xi1>, vector<256x128xf32>
      %c0_16 = arith.constant 0 : index
      %c0_17 = arith.constant 0 : index
      %21 = vector.load %arg6[%c0_16, %c0_17] : memref<256x128xf32, #tpu.memory_space<vmem>>, vector<256x128xf32>
      tpu.vector_store %arg6[%c0_16, %c0_17], %20 {strides = array<i32>} : memref<256x128xf32, #tpu.memory_space<vmem>>, vector<256x128xf32>,
    } else {
    }
    return
  }
  func.func @transform_0(%arg0: i32, %arg1: i32, %arg2: i32) -> (i32, i32) {
    %c0_i32 = arith.constant 0 : i32
    return %arg0, %arg2 : i32, i32
  }
  func.func @transform_1(%arg0: i32, %arg1: i32, %arg2: i32) -> (i32, i32) {
    %c0_i32 = arith.constant 0 : i32
    return %arg2, %arg1 : i32, i32
  }
  func.func @transform_2(%arg0: i32, %arg1: i32, %arg2: i32) -> (i32, i32) {
    %c0_i32 = arith.constant 0 : i32
    %c0_i32_0 = arith.constant 0 : i32
    return %c0_i32, %arg1 : i32, i32
  }
  func.func @transform_3(%arg0: i32, %arg1: i32, %arg2: i32) -> (i32, i32) {
    %c0_i32 = arith.constant 0 : i32
    return %arg0, %arg1 : i32, i32
  }
}

module attributes {stable_mosaic.version = 11 : i64} {
  func.func @_matmul_kernel(%arg0: i32, %arg1: i32, %arg2: i32, %arg3: memref<128x512xbf16, #tpu.memory_space<vmem>>, %arg4: memref<512x128xbf16, #tpu.memory_space<vmem>>, %arg5: memref<1x128xf32, #tpu.memory_space<vmem>>, %arg6: memref<128x128xf32, #tpu.memory_space<vmem>>, %arg7: memref<8x128xf32, #tpu.memory_space<vmem>>, %arg8: memref<128x128xf32, #tpu.memory_space<vmem>>) attributes {dimension_semantics = [#tpu.dimension_semantics<parallel>, #tpu.dimension_semantics<parallel>, #tpu.dimension_semantics<arbitrary>], iteration_bounds = array<i64: 1, 1, 2>, scalar_prefetch = 0 : i64, scratch_operands = 1 : i64, tpu.core_type = #tpu.core_type<tc>, window_params = [{transform_indices = @transform_0, window_bounds = array<i64: 128, 512>}, {transform_indices = @transform_1, window_bounds = array<i64: 512, 128>}, {transform_indices = @transform_2, window_bounds = array<i64: 1, 128>}, {transform_indices = @transform_3, window_bounds = array<i64: 128, 128>}, {transform_indices = @transform_4, window_bounds = array<i64: 8, 128>}]} {
    %c0_i32 = arith.constant 0 : i32
    %0 = arith.cmpi eq, %arg2, %c0_i32 : i32
    %1 = arith.extui %0 : i1 to i32
    %c0_i32_0 = arith.constant 0 : i32
    %2 = arith.cmpi ne, %1, %c0_i32_0 : i32
    scf.if %2 {
      %cst_9 = arith.constant 0.000000e+00 : f32
      %12 = vector.broadcast %cst_9 : f32 to vector<128x128xf32>
      %c0_10 = arith.constant 0 : index
      %c0_11 = arith.constant 0 : index
      %13 = vector.load %arg8[%c0_10, %c0_11] : memref<128x128xf32, #tpu.memory_space<vmem>>, vector<128x128xf32>
      tpu.vector_store %arg8[%c0_10, %c0_11], %12 {strides = array<i32>} : memref<128x128xf32, #tpu.memory_space<vmem>>, vector<128x128xf32>,
    } else {
    }
    %c0 = arith.constant 0 : index
    %c0_1 = arith.constant 0 : index
    %3 = vector.load %arg8[%c0, %c0_1] : memref<128x128xf32, #tpu.memory_space<vmem>>, vector<128x128xf32>
    %c0_2 = arith.constant 0 : index
    %c0_3 = arith.constant 0 : index
    %4 = vector.load %arg3[%c0_2, %c0_3] : memref<128x512xbf16, #tpu.memory_space<vmem>>, vector<128x512xbf16>
    %c0_4 = arith.constant 0 : index
    %c0_5 = arith.constant 0 : index
    %5 = vector.load %arg4[%c0_4, %c0_5] : memref<512x128xbf16, #tpu.memory_space<vmem>>, vector<512x128xbf16>
    %cst = arith.constant dense<0.000000e+00> : vector<128x128xf32>
    %6 = tpu.matmul %4, %5, %cst {dimension_numbers = #tpu.dot_dimension_numbers<[1], [0], [0], [1], [0, 0, 1, 1], [], []>} : vector<128x512xbf16>, vector<512x128xbf16>, vector<128x128xf32> -> vector<128x128xf32>
    %7 = arith.addf %3, %6 : vector<128x128xf32>
    %c0_6 = arith.constant 0 : index
    %c0_7 = arith.constant 0 : index
    %8 = vector.load %arg8[%c0_6, %c0_7] : memref<128x128xf32, #tpu.memory_space<vmem>>, vector<128x128xf32>
    tpu.vector_store %arg8[%c0_6, %c0_7], %7 {strides = array<i32>} : memref<128x128xf32, #tpu.memory_space<vmem>>, vector<128x128xf32>,
    %c1_i32 = arith.constant 1 : i32
    %9 = arith.cmpi eq, %arg2, %c1_i32 : i32
    %10 = arith.extui %9 : i1 to i32
    %c0_i32_8 = arith.constant 0 : i32
    %11 = arith.cmpi ne, %10, %c0_i32_8 : i32
    scf.if %11 {
      %c0_9 = arith.constant 0 : index
      %c0_10 = arith.constant 0 : index
      %12 = vector.load %arg8[%c0_9, %c0_10] : memref<128x128xf32, #tpu.memory_space<vmem>>, vector<128x128xf32>
      %c0_11 = arith.constant 0 : index
      %c0_12 = arith.constant 0 : index
      %13 = vector.load %arg5[%c0_11, %c0_12] : memref<1x128xf32, #tpu.memory_space<vmem>>, vector<1x128xf32>
      %14 = vector.broadcast %13 : vector<1x128xf32> to vector<128x128xf32>
      %15 = arith.addf %12, %14 : vector<128x128xf32>
      %c0_13 = arith.constant 0 : index
      %c0_14 = arith.constant 0 : index
      %16 = vector.load %arg6[%c0_13, %c0_14] : memref<128x128xf32, #tpu.memory_space<vmem>>, vector<128x128xf32>
      tpu.vector_store %arg6[%c0_13, %c0_14], %15 {strides = array<i32>} : memref<128x128xf32, #tpu.memory_space<vmem>>, vector<128x128xf32>,
      %cst_15 = arith.constant dense<0.000000e+00> : vector<128xf32>
      %17 = vector.multi_reduction <add>, %15, %cst_15 [0] : vector<128x128xf32> to vector<128xf32>
      %18 = vector.shape_cast %17 : vector<128xf32> to vector<1x128xf32>
      %19 = arith.mulf %15, %15 : vector<128x128xf32>
      %cst_16 = arith.constant dense<0.000000e+00> : vector<128xf32>
      %20 = vector.multi_reduction <add>, %19, %cst_16 [0] : vector<128x128xf32> to vector<128xf32>
      %21 = vector.shape_cast %20 : vector<128xf32> to vector<1x128xf32>
      %cst_17 = arith.constant 0.000000e+00 : f32
      %22 = vector.broadcast %cst_17 : f32 to vector<6x128xf32>
      %23 = tpu.concatenate %18, %21, %22 in 0 : vector<1x128xf32>, vector<1x128xf32>, vector<6x128xf32> -> vector<8x128xf32>
      %c0_18 = arith.constant 0 : index
      %c0_19 = arith.constant 0 : index
      %24 = vector.load %arg7[%c0_18, %c0_19] : memref<8x128xf32, #tpu.memory_space<vmem>>, vector<8x128xf32>
      tpu.vector_store %arg7[%c0_18, %c0_19], %23 {strides = array<i32>} : memref<8x128xf32, #tpu.memory_space<vmem>>, vector<8x128xf32>,
    } else {
    }
    return
  }
  func.func @transform_0(%arg0: i32, %arg1: i32, %arg2: i32) -> (i32, i32) {
    %c0_i32 = arith.constant 0 : i32
    return %arg0, %arg2 : i32, i32
  }
  func.func @transform_1(%arg0: i32, %arg1: i32, %arg2: i32) -> (i32, i32) {
    %c0_i32 = arith.constant 0 : i32
    return %arg2, %arg1 : i32, i32
  }
  func.func @transform_2(%arg0: i32, %arg1: i32, %arg2: i32) -> (i32, i32) {
    %c0_i32 = arith.constant 0 : i32
    %c0_i32_0 = arith.constant 0 : i32
    return %c0_i32, %arg1 : i32, i32
  }
  func.func @transform_3(%arg0: i32, %arg1: i32, %arg2: i32) -> (i32, i32) {
    %c0_i32 = arith.constant 0 : i32
    return %arg0, %arg1 : i32, i32
  }
  func.func @transform_4(%arg0: i32, %arg1: i32, %arg2: i32) -> (i32, i32) {
    %c0_i32 = arith.constant 0 : i32
    return %arg0, %arg1 : i32, i32
  }
}

module attributes {stable_mosaic.version = 11 : i64} {
  func.func @_scale_shift_lrelu_kernel(%arg0: i32, %arg1: memref<128x128xf32, #tpu.memory_space<vmem>>, %arg2: memref<1x128xf32, #tpu.memory_space<vmem>>, %arg3: memref<1x128xf32, #tpu.memory_space<vmem>>, %arg4: memref<128x128xf32, #tpu.memory_space<vmem>>) attributes {dimension_semantics = [#tpu.dimension_semantics<parallel>], iteration_bounds = array<i64: 1>, scalar_prefetch = 0 : i64, scratch_operands = 0 : i64, tpu.core_type = #tpu.core_type<tc>, window_params = [{transform_indices = @transform_0, window_bounds = array<i64: 128, 128>}, {pipeline_mode = #tpu.pipeline_mode<synchronous>, transform_indices = @transform_1, window_bounds = array<i64: 1, 128>}, {pipeline_mode = #tpu.pipeline_mode<synchronous>, transform_indices = @transform_2, window_bounds = array<i64: 1, 128>}, {transform_indices = @transform_3, window_bounds = array<i64: 128, 128>}]} {
    %c0 = arith.constant 0 : index
    %c0_0 = arith.constant 0 : index
    %0 = vector.load %arg1[%c0, %c0_0] : memref<128x128xf32, #tpu.memory_space<vmem>>, vector<128x128xf32>
    %c0_1 = arith.constant 0 : index
    %c0_2 = arith.constant 0 : index
    %1 = vector.load %arg2[%c0_1, %c0_2] : memref<1x128xf32, #tpu.memory_space<vmem>>, vector<1x128xf32>
    %2 = vector.broadcast %1 : vector<1x128xf32> to vector<128x128xf32>
    %3 = arith.mulf %0, %2 : vector<128x128xf32>
    %c0_3 = arith.constant 0 : index
    %c0_4 = arith.constant 0 : index
    %4 = vector.load %arg3[%c0_3, %c0_4] : memref<1x128xf32, #tpu.memory_space<vmem>>, vector<1x128xf32>
    %5 = vector.broadcast %4 : vector<1x128xf32> to vector<128x128xf32>
    %6 = arith.addf %3, %5 : vector<128x128xf32>
    %cst = arith.constant 0.000000e+00 : f32
    %7 = vector.broadcast %cst : f32 to vector<128x128xf32>
    %8 = arith.cmpf ogt, %6, %7 : vector<128x128xf32>
    %cst_5 = arith.constant 2.000000e-01 : f32
    %9 = vector.broadcast %cst_5 : f32 to vector<128x128xf32>
    %10 = arith.mulf %9, %6 : vector<128x128xf32>
    %11 = arith.select %8, %6, %10 : vector<128x128xi1>, vector<128x128xf32>
    %c0_6 = arith.constant 0 : index
    %c0_7 = arith.constant 0 : index
    %12 = vector.load %arg4[%c0_6, %c0_7] : memref<128x128xf32, #tpu.memory_space<vmem>>, vector<128x128xf32>
    tpu.vector_store %arg4[%c0_6, %c0_7], %11 {strides = array<i32>} : memref<128x128xf32, #tpu.memory_space<vmem>>, vector<128x128xf32>,
    return
  }
  func.func @transform_0(%arg0: i32) -> (i32, i32) {
    %c0_i32 = arith.constant 0 : i32
    %c0_i32_0 = arith.constant 0 : i32
    return %arg0, %c0_i32 : i32, i32
  }
  func.func @transform_1(%arg0: i32) -> (i32, i32) {
    %c0_i32 = arith.constant 0 : i32
    %c0_i32_0 = arith.constant 0 : i32
    %c0_i32_1 = arith.constant 0 : i32
    return %c0_i32, %c0_i32_0 : i32, i32
  }
  func.func @transform_2(%arg0: i32) -> (i32, i32) {
    %c0_i32 = arith.constant 0 : i32
    %c0_i32_0 = arith.constant 0 : i32
    %c0_i32_1 = arith.constant 0 : i32
    return %c0_i32, %c0_i32_0 : i32, i32
  }
  func.func @transform_3(%arg0: i32) -> (i32, i32) {
    %c0_i32 = arith.constant 0 : i32
    %c0_i32_0 = arith.constant 0 : i32
    return %arg0, %c0_i32 : i32, i32
  }
}

module attributes {stable_mosaic.version = 11 : i64} {
  func.func @_matmul_kernel(%arg0: i32, %arg1: i32, %arg2: i32, %arg3: memref<32x512xbf16, #tpu.memory_space<vmem>>, %arg4: memref<512x256xbf16, #tpu.memory_space<vmem>>, %arg5: memref<1x256xf32, #tpu.memory_space<vmem>>, %arg6: memref<32x256xf32, #tpu.memory_space<vmem>>, %arg7: memref<8x256xf32, #tpu.memory_space<vmem>>, %arg8: memref<32x256xf32, #tpu.memory_space<vmem>>) attributes {dimension_semantics = [#tpu.dimension_semantics<parallel>, #tpu.dimension_semantics<parallel>, #tpu.dimension_semantics<arbitrary>], iteration_bounds = array<i64: 1, 1, 4>, scalar_prefetch = 0 : i64, scratch_operands = 1 : i64, tpu.core_type = #tpu.core_type<tc>, window_params = [{transform_indices = @transform_0, window_bounds = array<i64: 32, 512>}, {transform_indices = @transform_1, window_bounds = array<i64: 512, 256>}, {transform_indices = @transform_2, window_bounds = array<i64: 1, 256>}, {transform_indices = @transform_3, window_bounds = array<i64: 32, 256>}, {transform_indices = @transform_4, window_bounds = array<i64: 8, 256>}]} {
    %c0_i32 = arith.constant 0 : i32
    %0 = arith.cmpi eq, %arg2, %c0_i32 : i32
    %1 = arith.extui %0 : i1 to i32
    %c0_i32_0 = arith.constant 0 : i32
    %2 = arith.cmpi ne, %1, %c0_i32_0 : i32
    scf.if %2 {
      %cst_9 = arith.constant 0.000000e+00 : f32
      %12 = vector.broadcast %cst_9 : f32 to vector<32x256xf32>
      %c0_10 = arith.constant 0 : index
      %c0_11 = arith.constant 0 : index
      %13 = vector.load %arg8[%c0_10, %c0_11] : memref<32x256xf32, #tpu.memory_space<vmem>>, vector<32x256xf32>
      tpu.vector_store %arg8[%c0_10, %c0_11], %12 {strides = array<i32>} : memref<32x256xf32, #tpu.memory_space<vmem>>, vector<32x256xf32>,
    } else {
    }
    %c0 = arith.constant 0 : index
    %c0_1 = arith.constant 0 : index
    %3 = vector.load %arg8[%c0, %c0_1] : memref<32x256xf32, #tpu.memory_space<vmem>>, vector<32x256xf32>
    %c0_2 = arith.constant 0 : index
    %c0_3 = arith.constant 0 : index
    %4 = vector.load %arg3[%c0_2, %c0_3] : memref<32x512xbf16, #tpu.memory_space<vmem>>, vector<32x512xbf16>
    %c0_4 = arith.constant 0 : index
    %c0_5 = arith.constant 0 : index
    %5 = vector.load %arg4[%c0_4, %c0_5] : memref<512x256xbf16, #tpu.memory_space<vmem>>, vector<512x256xbf16>
    %cst = arith.constant dense<0.000000e+00> : vector<32x256xf32>
    %6 = tpu.matmul %4, %5, %cst {dimension_numbers = #tpu.dot_dimension_numbers<[1], [0], [0], [1], [0, 0, 1, 1], [], []>} : vector<32x512xbf16>, vector<512x256xbf16>, vector<32x256xf32> -> vector<32x256xf32>
    %7 = arith.addf %3, %6 : vector<32x256xf32>
    %c0_6 = arith.constant 0 : index
    %c0_7 = arith.constant 0 : index
    %8 = vector.load %arg8[%c0_6, %c0_7] : memref<32x256xf32, #tpu.memory_space<vmem>>, vector<32x256xf32>
    tpu.vector_store %arg8[%c0_6, %c0_7], %7 {strides = array<i32>} : memref<32x256xf32, #tpu.memory_space<vmem>>, vector<32x256xf32>,
    %c3_i32 = arith.constant 3 : i32
    %9 = arith.cmpi eq, %arg2, %c3_i32 : i32
    %10 = arith.extui %9 : i1 to i32
    %c0_i32_8 = arith.constant 0 : i32
    %11 = arith.cmpi ne, %10, %c0_i32_8 : i32
    scf.if %11 {
      %c0_9 = arith.constant 0 : index
      %c0_10 = arith.constant 0 : index
      %12 = vector.load %arg8[%c0_9, %c0_10] : memref<32x256xf32, #tpu.memory_space<vmem>>, vector<32x256xf32>
      %c0_11 = arith.constant 0 : index
      %c0_12 = arith.constant 0 : index
      %13 = vector.load %arg5[%c0_11, %c0_12] : memref<1x256xf32, #tpu.memory_space<vmem>>, vector<1x256xf32>
      %14 = vector.broadcast %13 : vector<1x256xf32> to vector<32x256xf32>
      %15 = arith.addf %12, %14 : vector<32x256xf32>
      %c0_13 = arith.constant 0 : index
      %c0_14 = arith.constant 0 : index
      %16 = vector.load %arg6[%c0_13, %c0_14] : memref<32x256xf32, #tpu.memory_space<vmem>>, vector<32x256xf32>
      tpu.vector_store %arg6[%c0_13, %c0_14], %15 {strides = array<i32>} : memref<32x256xf32, #tpu.memory_space<vmem>>, vector<32x256xf32>,
      %cst_15 = arith.constant dense<0.000000e+00> : vector<256xf32>
      %17 = vector.multi_reduction <add>, %15, %cst_15 [0] : vector<32x256xf32> to vector<256xf32>
      %18 = vector.shape_cast %17 : vector<256xf32> to vector<1x256xf32>
      %19 = arith.mulf %15, %15 : vector<32x256xf32>
      %cst_16 = arith.constant dense<0.000000e+00> : vector<256xf32>
      %20 = vector.multi_reduction <add>, %19, %cst_16 [0] : vector<32x256xf32> to vector<256xf32>
      %21 = vector.shape_cast %20 : vector<256xf32> to vector<1x256xf32>
      %cst_17 = arith.constant 0.000000e+00 : f32
      %22 = vector.broadcast %cst_17 : f32 to vector<6x256xf32>
      %23 = tpu.concatenate %18, %21, %22 in 0 : vector<1x256xf32>, vector<1x256xf32>, vector<6x256xf32> -> vector<8x256xf32>
      %c0_18 = arith.constant 0 : index
      %c0_19 = arith.constant 0 : index
      %24 = vector.load %arg7[%c0_18, %c0_19] : memref<8x256xf32, #tpu.memory_space<vmem>>, vector<8x256xf32>
      tpu.vector_store %arg7[%c0_18, %c0_19], %23 {strides = array<i32>} : memref<8x256xf32, #tpu.memory_space<vmem>>, vector<8x256xf32>,
    } else {
    }
    return
  }
  func.func @transform_0(%arg0: i32, %arg1: i32, %arg2: i32) -> (i32, i32) {
    %c0_i32 = arith.constant 0 : i32
    return %arg0, %arg2 : i32, i32
  }
  func.func @transform_1(%arg0: i32, %arg1: i32, %arg2: i32) -> (i32, i32) {
    %c0_i32 = arith.constant 0 : i32
    return %arg2, %arg1 : i32, i32
  }
  func.func @transform_2(%arg0: i32, %arg1: i32, %arg2: i32) -> (i32, i32) {
    %c0_i32 = arith.constant 0 : i32
    %c0_i32_0 = arith.constant 0 : i32
    return %c0_i32, %arg1 : i32, i32
  }
  func.func @transform_3(%arg0: i32, %arg1: i32, %arg2: i32) -> (i32, i32) {
    %c0_i32 = arith.constant 0 : i32
    return %arg0, %arg1 : i32, i32
  }
  func.func @transform_4(%arg0: i32, %arg1: i32, %arg2: i32) -> (i32, i32) {
    %c0_i32 = arith.constant 0 : i32
    return %arg0, %arg1 : i32, i32
  }
}

module attributes {stable_mosaic.version = 11 : i64} {
  func.func @_scale_shift_lrelu_kernel(%arg0: i32, %arg1: memref<32x256xf32, #tpu.memory_space<vmem>>, %arg2: memref<1x256xf32, #tpu.memory_space<vmem>>, %arg3: memref<1x256xf32, #tpu.memory_space<vmem>>, %arg4: memref<32x256xf32, #tpu.memory_space<vmem>>) attributes {dimension_semantics = [#tpu.dimension_semantics<parallel>], iteration_bounds = array<i64: 1>, scalar_prefetch = 0 : i64, scratch_operands = 0 : i64, tpu.core_type = #tpu.core_type<tc>, window_params = [{transform_indices = @transform_0, window_bounds = array<i64: 32, 256>}, {pipeline_mode = #tpu.pipeline_mode<synchronous>, transform_indices = @transform_1, window_bounds = array<i64: 1, 256>}, {pipeline_mode = #tpu.pipeline_mode<synchronous>, transform_indices = @transform_2, window_bounds = array<i64: 1, 256>}, {transform_indices = @transform_3, window_bounds = array<i64: 32, 256>}]} {
    %c0 = arith.constant 0 : index
    %c0_0 = arith.constant 0 : index
    %0 = vector.load %arg1[%c0, %c0_0] : memref<32x256xf32, #tpu.memory_space<vmem>>, vector<32x256xf32>
    %c0_1 = arith.constant 0 : index
    %c0_2 = arith.constant 0 : index
    %1 = vector.load %arg2[%c0_1, %c0_2] : memref<1x256xf32, #tpu.memory_space<vmem>>, vector<1x256xf32>
    %2 = vector.broadcast %1 : vector<1x256xf32> to vector<32x256xf32>
    %3 = arith.mulf %0, %2 : vector<32x256xf32>
    %c0_3 = arith.constant 0 : index
    %c0_4 = arith.constant 0 : index
    %4 = vector.load %arg3[%c0_3, %c0_4] : memref<1x256xf32, #tpu.memory_space<vmem>>, vector<1x256xf32>
    %5 = vector.broadcast %4 : vector<1x256xf32> to vector<32x256xf32>
    %6 = arith.addf %3, %5 : vector<32x256xf32>
    %cst = arith.constant 0.000000e+00 : f32
    %7 = vector.broadcast %cst : f32 to vector<32x256xf32>
    %8 = arith.cmpf ogt, %6, %7 : vector<32x256xf32>
    %cst_5 = arith.constant 2.000000e-01 : f32
    %9 = vector.broadcast %cst_5 : f32 to vector<32x256xf32>
    %10 = arith.mulf %9, %6 : vector<32x256xf32>
    %11 = arith.select %8, %6, %10 : vector<32x256xi1>, vector<32x256xf32>
    %c0_6 = arith.constant 0 : index
    %c0_7 = arith.constant 0 : index
    %12 = vector.load %arg4[%c0_6, %c0_7] : memref<32x256xf32, #tpu.memory_space<vmem>>, vector<32x256xf32>
    tpu.vector_store %arg4[%c0_6, %c0_7], %11 {strides = array<i32>} : memref<32x256xf32, #tpu.memory_space<vmem>>, vector<32x256xf32>,
    return
  }
  func.func @transform_0(%arg0: i32) -> (i32, i32) {
    %c0_i32 = arith.constant 0 : i32
    %c0_i32_0 = arith.constant 0 : i32
    return %arg0, %c0_i32 : i32, i32
  }
  func.func @transform_1(%arg0: i32) -> (i32, i32) {
    %c0_i32 = arith.constant 0 : i32
    %c0_i32_0 = arith.constant 0 : i32
    %c0_i32_1 = arith.constant 0 : i32
    return %c0_i32, %c0_i32_0 : i32, i32
  }
  func.func @transform_2(%arg0: i32) -> (i32, i32) {
    %c0_i32 = arith.constant 0 : i32
    %c0_i32_0 = arith.constant 0 : i32
    %c0_i32_1 = arith.constant 0 : i32
    return %c0_i32, %c0_i32_0 : i32, i32
  }
  func.func @transform_3(%arg0: i32) -> (i32, i32) {
    %c0_i32 = arith.constant 0 : i32
    %c0_i32_0 = arith.constant 0 : i32
    return %arg0, %c0_i32 : i32, i32
  }
}

module attributes {stable_mosaic.version = 11 : i64} {
  func.func @_matmul_kernel(%arg0: i32, %arg1: i32, %arg2: i32, %arg3: memref<24x512xbf16, #tpu.memory_space<vmem>>, %arg4: memref<512x256xbf16, #tpu.memory_space<vmem>>, %arg5: memref<1x256xf32, #tpu.memory_space<vmem>>, %arg6: memref<24x256xf32, #tpu.memory_space<vmem>>, %arg7: memref<8x256xf32, #tpu.memory_space<vmem>>, %arg8: memref<24x256xf32, #tpu.memory_space<vmem>>) attributes {dimension_semantics = [#tpu.dimension_semantics<parallel>, #tpu.dimension_semantics<parallel>, #tpu.dimension_semantics<arbitrary>], iteration_bounds = array<i64: 1, 2, 8>, scalar_prefetch = 0 : i64, scratch_operands = 1 : i64, tpu.core_type = #tpu.core_type<tc>, window_params = [{transform_indices = @transform_0, window_bounds = array<i64: 24, 512>}, {transform_indices = @transform_1, window_bounds = array<i64: 512, 256>}, {transform_indices = @transform_2, window_bounds = array<i64: 1, 256>}, {transform_indices = @transform_3, window_bounds = array<i64: 24, 256>}, {transform_indices = @transform_4, window_bounds = array<i64: 8, 256>}]} {
    %c0_i32 = arith.constant 0 : i32
    %0 = arith.cmpi eq, %arg2, %c0_i32 : i32
    %1 = arith.extui %0 : i1 to i32
    %c0_i32_0 = arith.constant 0 : i32
    %2 = arith.cmpi ne, %1, %c0_i32_0 : i32
    scf.if %2 {
      %cst_9 = arith.constant 0.000000e+00 : f32
      %12 = vector.broadcast %cst_9 : f32 to vector<24x256xf32>
      %c0_10 = arith.constant 0 : index
      %c0_11 = arith.constant 0 : index
      %13 = vector.load %arg8[%c0_10, %c0_11] : memref<24x256xf32, #tpu.memory_space<vmem>>, vector<24x256xf32>
      tpu.vector_store %arg8[%c0_10, %c0_11], %12 {strides = array<i32>} : memref<24x256xf32, #tpu.memory_space<vmem>>, vector<24x256xf32>,
    } else {
    }
    %c0 = arith.constant 0 : index
    %c0_1 = arith.constant 0 : index
    %3 = vector.load %arg8[%c0, %c0_1] : memref<24x256xf32, #tpu.memory_space<vmem>>, vector<24x256xf32>
    %c0_2 = arith.constant 0 : index
    %c0_3 = arith.constant 0 : index
    %4 = vector.load %arg3[%c0_2, %c0_3] : memref<24x512xbf16, #tpu.memory_space<vmem>>, vector<24x512xbf16>
    %c0_4 = arith.constant 0 : index
    %c0_5 = arith.constant 0 : index
    %5 = vector.load %arg4[%c0_4, %c0_5] : memref<512x256xbf16, #tpu.memory_space<vmem>>, vector<512x256xbf16>
    %cst = arith.constant dense<0.000000e+00> : vector<24x256xf32>
    %6 = tpu.matmul %4, %5, %cst {dimension_numbers = #tpu.dot_dimension_numbers<[1], [0], [0], [1], [0, 0, 1, 1], [], []>} : vector<24x512xbf16>, vector<512x256xbf16>, vector<24x256xf32> -> vector<24x256xf32>
    %7 = arith.addf %3, %6 : vector<24x256xf32>
    %c0_6 = arith.constant 0 : index
    %c0_7 = arith.constant 0 : index
    %8 = vector.load %arg8[%c0_6, %c0_7] : memref<24x256xf32, #tpu.memory_space<vmem>>, vector<24x256xf32>
    tpu.vector_store %arg8[%c0_6, %c0_7], %7 {strides = array<i32>} : memref<24x256xf32, #tpu.memory_space<vmem>>, vector<24x256xf32>,
    %c7_i32 = arith.constant 7 : i32
    %9 = arith.cmpi eq, %arg2, %c7_i32 : i32
    %10 = arith.extui %9 : i1 to i32
    %c0_i32_8 = arith.constant 0 : i32
    %11 = arith.cmpi ne, %10, %c0_i32_8 : i32
    scf.if %11 {
      %c0_9 = arith.constant 0 : index
      %c0_10 = arith.constant 0 : index
      %12 = vector.load %arg8[%c0_9, %c0_10] : memref<24x256xf32, #tpu.memory_space<vmem>>, vector<24x256xf32>
      %c0_11 = arith.constant 0 : index
      %c0_12 = arith.constant 0 : index
      %13 = vector.load %arg5[%c0_11, %c0_12] : memref<1x256xf32, #tpu.memory_space<vmem>>, vector<1x256xf32>
      %14 = vector.broadcast %13 : vector<1x256xf32> to vector<24x256xf32>
      %15 = arith.addf %12, %14 : vector<24x256xf32>
      %c0_13 = arith.constant 0 : index
      %c0_14 = arith.constant 0 : index
      %16 = vector.load %arg6[%c0_13, %c0_14] : memref<24x256xf32, #tpu.memory_space<vmem>>, vector<24x256xf32>
      tpu.vector_store %arg6[%c0_13, %c0_14], %15 {strides = array<i32>} : memref<24x256xf32, #tpu.memory_space<vmem>>, vector<24x256xf32>,
      %cst_15 = arith.constant dense<0.000000e+00> : vector<256xf32>
      %17 = vector.multi_reduction <add>, %15, %cst_15 [0] : vector<24x256xf32> to vector<256xf32>
      %18 = vector.shape_cast %17 : vector<256xf32> to vector<1x256xf32>
      %19 = arith.mulf %15, %15 : vector<24x256xf32>
      %cst_16 = arith.constant dense<0.000000e+00> : vector<256xf32>
      %20 = vector.multi_reduction <add>, %19, %cst_16 [0] : vector<24x256xf32> to vector<256xf32>
      %21 = vector.shape_cast %20 : vector<256xf32> to vector<1x256xf32>
      %cst_17 = arith.constant 0.000000e+00 : f32
      %22 = vector.broadcast %cst_17 : f32 to vector<6x256xf32>
      %23 = tpu.concatenate %18, %21, %22 in 0 : vector<1x256xf32>, vector<1x256xf32>, vector<6x256xf32> -> vector<8x256xf32>
      %c0_18 = arith.constant 0 : index
      %c0_19 = arith.constant 0 : index
      %24 = vector.load %arg7[%c0_18, %c0_19] : memref<8x256xf32, #tpu.memory_space<vmem>>, vector<8x256xf32>
      tpu.vector_store %arg7[%c0_18, %c0_19], %23 {strides = array<i32>} : memref<8x256xf32, #tpu.memory_space<vmem>>, vector<8x256xf32>,
    } else {
    }
    return
  }
  func.func @transform_0(%arg0: i32, %arg1: i32, %arg2: i32) -> (i32, i32) {
    %c0_i32 = arith.constant 0 : i32
    return %arg0, %arg2 : i32, i32
  }
  func.func @transform_1(%arg0: i32, %arg1: i32, %arg2: i32) -> (i32, i32) {
    %c0_i32 = arith.constant 0 : i32
    return %arg2, %arg1 : i32, i32
  }
  func.func @transform_2(%arg0: i32, %arg1: i32, %arg2: i32) -> (i32, i32) {
    %c0_i32 = arith.constant 0 : i32
    %c0_i32_0 = arith.constant 0 : i32
    return %c0_i32, %arg1 : i32, i32
  }
  func.func @transform_3(%arg0: i32, %arg1: i32, %arg2: i32) -> (i32, i32) {
    %c0_i32 = arith.constant 0 : i32
    return %arg0, %arg1 : i32, i32
  }
  func.func @transform_4(%arg0: i32, %arg1: i32, %arg2: i32) -> (i32, i32) {
    %c0_i32 = arith.constant 0 : i32
    return %arg0, %arg1 : i32, i32
  }
}

module attributes {stable_mosaic.version = 11 : i64} {
  func.func @_scale_shift_lrelu_kernel(%arg0: i32, %arg1: memref<24x512xf32, #tpu.memory_space<vmem>>, %arg2: memref<1x512xf32, #tpu.memory_space<vmem>>, %arg3: memref<1x512xf32, #tpu.memory_space<vmem>>, %arg4: memref<24x512xf32, #tpu.memory_space<vmem>>) attributes {dimension_semantics = [#tpu.dimension_semantics<parallel>], iteration_bounds = array<i64: 1>, scalar_prefetch = 0 : i64, scratch_operands = 0 : i64, tpu.core_type = #tpu.core_type<tc>, window_params = [{transform_indices = @transform_0, window_bounds = array<i64: 24, 512>}, {pipeline_mode = #tpu.pipeline_mode<synchronous>, transform_indices = @transform_1, window_bounds = array<i64: 1, 512>}, {pipeline_mode = #tpu.pipeline_mode<synchronous>, transform_indices = @transform_2, window_bounds = array<i64: 1, 512>}, {transform_indices = @transform_3, window_bounds = array<i64: 24, 512>}]} {
    %c0 = arith.constant 0 : index
    %c0_0 = arith.constant 0 : index
    %0 = vector.load %arg1[%c0, %c0_0] : memref<24x512xf32, #tpu.memory_space<vmem>>, vector<24x512xf32>
    %c0_1 = arith.constant 0 : index
    %c0_2 = arith.constant 0 : index
    %1 = vector.load %arg2[%c0_1, %c0_2] : memref<1x512xf32, #tpu.memory_space<vmem>>, vector<1x512xf32>
    %2 = vector.broadcast %1 : vector<1x512xf32> to vector<24x512xf32>
    %3 = arith.mulf %0, %2 : vector<24x512xf32>
    %c0_3 = arith.constant 0 : index
    %c0_4 = arith.constant 0 : index
    %4 = vector.load %arg3[%c0_3, %c0_4] : memref<1x512xf32, #tpu.memory_space<vmem>>, vector<1x512xf32>
    %5 = vector.broadcast %4 : vector<1x512xf32> to vector<24x512xf32>
    %6 = arith.addf %3, %5 : vector<24x512xf32>
    %cst = arith.constant 0.000000e+00 : f32
    %7 = vector.broadcast %cst : f32 to vector<24x512xf32>
    %8 = arith.cmpf ogt, %6, %7 : vector<24x512xf32>
    %cst_5 = arith.constant 2.000000e-01 : f32
    %9 = vector.broadcast %cst_5 : f32 to vector<24x512xf32>
    %10 = arith.mulf %9, %6 : vector<24x512xf32>
    %11 = arith.select %8, %6, %10 : vector<24x512xi1>, vector<24x512xf32>
    %c0_6 = arith.constant 0 : index
    %c0_7 = arith.constant 0 : index
    %12 = vector.load %arg4[%c0_6, %c0_7] : memref<24x512xf32, #tpu.memory_space<vmem>>, vector<24x512xf32>
    tpu.vector_store %arg4[%c0_6, %c0_7], %11 {strides = array<i32>} : memref<24x512xf32, #tpu.memory_space<vmem>>, vector<24x512xf32>,
    return
  }
  func.func @transform_0(%arg0: i32) -> (i32, i32) {
    %c0_i32 = arith.constant 0 : i32
    %c0_i32_0 = arith.constant 0 : i32
    return %arg0, %c0_i32 : i32, i32
  }
  func.func @transform_1(%arg0: i32) -> (i32, i32) {
    %c0_i32 = arith.constant 0 : i32
    %c0_i32_0 = arith.constant 0 : i32
    %c0_i32_1 = arith.constant 0 : i32
    return %c0_i32, %c0_i32_0 : i32, i32
  }
  func.func @transform_2(%arg0: i32) -> (i32, i32) {
    %c0_i32 = arith.constant 0 : i32
    %c0_i32_0 = arith.constant 0 : i32
    %c0_i32_1 = arith.constant 0 : i32
    return %c0_i32, %c0_i32_0 : i32, i32
  }
  func.func @transform_3(%arg0: i32) -> (i32, i32) {
    %c0_i32 = arith.constant 0 : i32
    %c0_i32_0 = arith.constant 0 : i32
    return %arg0, %c0_i32 : i32, i32
  }
}

module attributes {stable_mosaic.version = 11 : i64} {
  func.func @_matmul_kernel(%arg0: i32, %arg1: i32, %arg2: i32, %arg3: memref<8x512xbf16, #tpu.memory_space<vmem>>, %arg4: memref<512x128xbf16, #tpu.memory_space<vmem>>, %arg5: memref<1x128xf32, #tpu.memory_space<vmem>>, %arg6: memref<8x128xf32, #tpu.memory_space<vmem>>, %arg7: memref<8x128xf32, #tpu.memory_space<vmem>>) attributes {dimension_semantics = [#tpu.dimension_semantics<parallel>, #tpu.dimension_semantics<parallel>, #tpu.dimension_semantics<arbitrary>], iteration_bounds = array<i64: 1, 1, 16>, scalar_prefetch = 0 : i64, scratch_operands = 1 : i64, tpu.core_type = #tpu.core_type<tc>, window_params = [{transform_indices = @transform_0, window_bounds = array<i64: 8, 512>}, {transform_indices = @transform_1, window_bounds = array<i64: 512, 128>}, {transform_indices = @transform_2, window_bounds = array<i64: 1, 128>}, {transform_indices = @transform_3, window_bounds = array<i64: 8, 128>}]} {
    %c0_i32 = arith.constant 0 : i32
    %0 = arith.cmpi eq, %arg2, %c0_i32 : i32
    %1 = arith.extui %0 : i1 to i32
    %c0_i32_0 = arith.constant 0 : i32
    %2 = arith.cmpi ne, %1, %c0_i32_0 : i32
    scf.if %2 {
      %cst_9 = arith.constant 0.000000e+00 : f32
      %12 = vector.broadcast %cst_9 : f32 to vector<8x128xf32>
      %c0_10 = arith.constant 0 : index
      %c0_11 = arith.constant 0 : index
      %13 = vector.load %arg7[%c0_10, %c0_11] : memref<8x128xf32, #tpu.memory_space<vmem>>, vector<8x128xf32>
      tpu.vector_store %arg7[%c0_10, %c0_11], %12 {strides = array<i32>} : memref<8x128xf32, #tpu.memory_space<vmem>>, vector<8x128xf32>,
    } else {
    }
    %c0 = arith.constant 0 : index
    %c0_1 = arith.constant 0 : index
    %3 = vector.load %arg7[%c0, %c0_1] : memref<8x128xf32, #tpu.memory_space<vmem>>, vector<8x128xf32>
    %c0_2 = arith.constant 0 : index
    %c0_3 = arith.constant 0 : index
    %4 = vector.load %arg3[%c0_2, %c0_3] : memref<8x512xbf16, #tpu.memory_space<vmem>>, vector<8x512xbf16>
    %c0_4 = arith.constant 0 : index
    %c0_5 = arith.constant 0 : index
    %5 = vector.load %arg4[%c0_4, %c0_5] : memref<512x128xbf16, #tpu.memory_space<vmem>>, vector<512x128xbf16>
    %cst = arith.constant dense<0.000000e+00> : vector<8x128xf32>
    %6 = tpu.matmul %4, %5, %cst {dimension_numbers = #tpu.dot_dimension_numbers<[1], [0], [0], [1], [0, 0, 1, 1], [], []>} : vector<8x512xbf16>, vector<512x128xbf16>, vector<8x128xf32> -> vector<8x128xf32>
    %7 = arith.addf %3, %6 : vector<8x128xf32>
    %c0_6 = arith.constant 0 : index
    %c0_7 = arith.constant 0 : index
    %8 = vector.load %arg7[%c0_6, %c0_7] : memref<8x128xf32, #tpu.memory_space<vmem>>, vector<8x128xf32>
    tpu.vector_store %arg7[%c0_6, %c0_7], %7 {strides = array<i32>} : memref<8x128xf32, #tpu.memory_space<vmem>>, vector<8x128xf32>,
    %c15_i32 = arith.constant 15 : i32
    %9 = arith.cmpi eq, %arg2, %c15_i32 : i32
    %10 = arith.extui %9 : i1 to i32
    %c0_i32_8 = arith.constant 0 : i32
    %11 = arith.cmpi ne, %10, %c0_i32_8 : i32
    scf.if %11 {
      %c0_9 = arith.constant 0 : index
      %c0_10 = arith.constant 0 : index
      %12 = vector.load %arg7[%c0_9, %c0_10] : memref<8x128xf32, #tpu.memory_space<vmem>>, vector<8x128xf32>
      %c0_11 = arith.constant 0 : index
      %c0_12 = arith.constant 0 : index
      %13 = vector.load %arg5[%c0_11, %c0_12] : memref<1x128xf32, #tpu.memory_space<vmem>>, vector<1x128xf32>
      %14 = vector.broadcast %13 : vector<1x128xf32> to vector<8x128xf32>
      %15 = arith.addf %12, %14 : vector<8x128xf32>
      %cst_13 = arith.constant 0.000000e+00 : f32
      %16 = vector.broadcast %cst_13 : f32 to vector<8x128xf32>
      %17 = arith.subf %16, %15 : vector<8x128xf32>
      %18 = math.exp %17 : vector<8x128xf32>
      %cst_14 = arith.constant 1.000000e+00 : f32
      %19 = vector.broadcast %cst_14 : f32 to vector<8x128xf32>
      %20 = arith.addf %19, %18 : vector<8x128xf32>
      %21 = tpu.reciprocal %20 {approx = true} : vector<8x128xf32> -> vector<8x128xf32>
      %c0_15 = arith.constant 0 : index
      %c0_16 = arith.constant 0 : index
      %22 = vector.load %arg6[%c0_15, %c0_16] : memref<8x128xf32, #tpu.memory_space<vmem>>, vector<8x128xf32>
      tpu.vector_store %arg6[%c0_15, %c0_16], %21 {strides = array<i32>} : memref<8x128xf32, #tpu.memory_space<vmem>>, vector<8x128xf32>,
    } else {
    }
    return
  }
  func.func @transform_0(%arg0: i32, %arg1: i32, %arg2: i32) -> (i32, i32) {
    %c0_i32 = arith.constant 0 : i32
    return %arg0, %arg2 : i32, i32
  }
  func.func @transform_1(%arg0: i32, %arg1: i32, %arg2: i32) -> (i32, i32) {
    %c0_i32 = arith.constant 0 : i32
    return %arg2, %arg1 : i32, i32
  }
  func.func @transform_2(%arg0: i32, %arg1: i32, %arg2: i32) -> (i32, i32) {
    %c0_i32 = arith.constant 0 : i32
    %c0_i32_0 = arith.constant 0 : i32
    return %c0_i32, %arg1 : i32, i32
  }
  func.func @transform_3(%arg0: i32, %arg1: i32, %arg2: i32) -> (i32, i32) {
    %c0_i32 = arith.constant 0 : i32
    return %arg0, %arg1 : i32, i32
  }
}

</mosaic_0001>

<bundles_post_ra>
// kernel: patch_discriminator_forward.8
= control target key start
LH: loop header
LB: loop body
LE: loop exit
PB: predicated region body
PF: predicated region fallthrough
CT: control target
= control target key end

     0   :  { %s1276_s12 = smov 0   ;;  %s1278_s13 = smov 0   ;;  %s1426_s0 = inlined_call_operand.vmem [shape: bf16[512,128], index: 0, kind: input, shape index: {}]   ;;  %s1427_s1 = inlined_call_operand.vmem [shape: bf16[128,128], index: 1, kind: input, shape index: {}]   ;;  %s1428_s2 = inlined_call_operand.vmem [shape: f32[1,128], index: 2, kind: input, shape index: {}]   ;;  %s1429_s3 = inlined_call_operand.vmem [shape: f32[512,128], index: 3, kind: output, shape index: {}]  }
   0x1   :  { %s1280_s14 = smov 0  }
   0x2 LB: > { %s32_s15 = sadd.s32 1, %s1250_s13  ;;  %p1064_p0 = scmp.ge.s32.totalorder %s1254_s14, 1  ;;  %s1254_s14 = sphi %s1280_s14, %s13_s14   ;;  %s1250_s13 = sphi %s1278_s13, %s1431_s13   ;;  %s1246_s12 = sphi %s1276_s12, %s1430_s12  }
   0x3   : > { %p34_p1 = scmp.ge.s32.totalorder %s32_s15, 2  ;;  %p188_p2 = scmp.lt.s32.totalorder %s1254_s14, 3 }
   0x5   : > { %s1433_s15 = smov (%p34_p1, %s32_s15), 0  ;;  %p189_p3 = pnand %p1064_p0, %p188_p2 }
   0x6   : > { %v1208_v0 = vld [vmem:[%s1427_s1] sm:$0xff] (!%p189_p3)   ;;  %s1065_s18 = sshll.u32 (!%p189_p3), %s1246_s12, 5  ;;  %v1209_v1 = vld [vmem:[%s1427_s1 + $0x8] sm:$0xff] (!%p189_p3)   ;;  %v1210_v2 = vld [vmem:[%s1427_s1 + $0x10] sm:$0xff] (!%p189_p3)  }
   0x7   : > { %192 = sbr.rel (%p189_p3) target bundleno = 288 (0x120), region = 32  ;;  %p230_p4 = scmp.lt.s32.totalorder (!%p189_p3), %s1065_s18, 63  ;;  %1120 = vmatprep.subr.bf16.mxu0 (!%p189_p3), %v1208_v0  ;;  %1168 = vmatprep.subr.bf16.mxu1 (!%p189_p3), %v1208_v0  ;;  %v1211_v3 = vld [vmem:[%s1427_s1 + $0x18] sm:$0xff] (!%p189_p3)   ;;  %v1212_v6 = vld [vmem:[%s1427_s1 + $0x20] sm:$0xff] (!%p189_p3)   ;;  %v1213_v7 = vld [vmem:[%s1427_s1 + $0x28] sm:$0xff] (!%p189_p3)  }
   0x8   : > { %1121 = vmatpush3.bf16.msra.mxu0 (!%p189_p3), %v1208_v0  ;;  %1176 = vmatpush3.bf16.msra.mxu1 (!%p189_p3), %v1208_v0  ;;  %v1214_v8 = vld [vmem:[%s1427_s1 + $0x30] sm:$0xff] (!%p189_p3)   ;;  %v1215_v9 = vld [vmem:[%s1427_s1 + $0x38] sm:$0xff] (!%p189_p3)   ;;  %v1345_v24 = vld [vmem:[%s1428_s2] ss:$0 sm:$0xff] (!%p189_p3) }
   0x9   : > { %1122 = vmatprep.subr.bf16.mxu0 (!%p189_p3), %v1209_v1  ;;  %1169 = vmatprep.subr.bf16.mxu1 (!%p189_p3), %v1209_v1 }
   0xc   : > { %1123 = vmatpush3.bf16.msra.mxu0 (!%p189_p3), %v1209_v1  ;;  %1177 = vmatpush3.bf16.msra.mxu1 (!%p189_p3), %v1209_v1 }
   0xd   : > { %1124 = vmatprep.subr.bf16.mxu0 (!%p189_p3), %v1210_v2  ;;  %1170 = vmatprep.subr.bf16.mxu1 (!%p189_p3), %v1210_v2 }
   0xe   : > { %s1435_s18 = smov (!%p230_p4, %s1065_s18), 63 }
   0xf   : > { %s1066_s23 = sshll.u32 %s1435_s18, 2  ;;  %s1068_s12 = sshll.u32 %s1435_s18, 3 }
  0x10   : > { %s1309_s26 = scalar_lea.vmem %s1426_s0, %s1066_s23  ;;  %1125 = vmatpush3.bf16.msra.mxu0 %v1210_v2  ;;  %1178 = vmatpush3.bf16.msra.mxu1 %v1210_v2  ;;  %s1355_s19 = scalar_lea.vmem %s1429_s3, %s1068_s12 }
  0x11   : > { %v1216_v4 = vld [vmem:[%s1309_s26] sm:$0xff]   ;;  %1126 = vmatprep.subr.bf16.mxu0 %v1211_v3  ;;  %1171 = vmatprep.subr.bf16.mxu1 %v1211_v3  ;;  %v1218_v10 = vld [vmem:[%s1309_s26 + $0x8] sm:$0xff]   ;;  %v1220_v12 = vld [vmem:[%s1309_s26 + $0x10] sm:$0xff]  }
  0x12   : > { %v1217_v5 = vld [vmem:[%s1309_s26 + $0x40] sm:$0xff]   ;;  %1136 = vmatprep.mubr.bf16.mxu0 %v1216_v4  ;;  %v1219_v11 = vld [vmem:[%s1309_s26 + $0x48] sm:$0xff]   ;;  %v1221_v13 = vld [vmem:[%s1309_s26 + $0x50] sm:$0xff]  }
  0x13   : > { %1152 = vmatprep.mubr.bf16.mxu1 %v1217_v5  ;;  %v1222_v14 = vld [vmem:[%s1309_s26 + $0x18] sm:$0xff]   ;;  %v1224_v16 = vld [vmem:[%s1309_s26 + $0x20] sm:$0xff]   ;;  %v1226_v18 = vld [vmem:[%s1309_s26 + $0x28] sm:$0xff]  }
  0x14   : > { %1127 = vmatpush3.bf16.msra.mxu0 %v1211_v3  ;;  %1179 = vmatpush3.bf16.msra.mxu1 %v1211_v3  ;;  %v1223_v15 = vld [vmem:[%s1309_s26 + $0x58] sm:$0xff]   ;;  %v1225_v17 = vld [vmem:[%s1309_s26 + $0x60] sm:$0xff]   ;;  %v1227_v19 = vld [vmem:[%s1309_s26 + $0x68] sm:$0xff]  }
  0x15   : > { %1128 = vmatprep.subr.bf16.mxu0 %v1212_v6  ;;  %1172 = vmatprep.subr.bf16.mxu1 %v1212_v6  ;;  %v1228_v20 = vld [vmem:[%s1309_s26 + $0x30] sm:$0xff]   ;;  %v1230_v22 = vld [vmem:[%s1309_s26 + $0x38] sm:$0xff]  }
  0x16   : > { %v1229_v21 = vld [vmem:[%s1309_s26 + $0x70] sm:$0xff]   ;;  %v1231_v23 = vld [vmem:[%s1309_s26 + $0x78] sm:$0xff]  }
  0x18   : > { %1129 = vmatpush3.bf16.msra.mxu0 %v1212_v6  ;;  %1180 = vmatpush3.bf16.msra.mxu1 %v1212_v6 }
  0x19   : > { %1130 = vmatprep.subr.bf16.mxu0 %v1213_v7  ;;  %1173 = vmatprep.subr.bf16.mxu1 %v1213_v7 }
  0x1c   : > { %1131 = vmatpush3.bf16.msra.mxu0 %v1213_v7  ;;  %1181 = vmatpush3.bf16.msra.mxu1 %v1213_v7 }
  0x1d   : > { %1132 = vmatprep.subr.bf16.mxu0 %v1214_v8  ;;  %1174 = vmatprep.subr.bf16.mxu1 %v1214_v8 }
  0x20   : > { %1133 = vmatpush3.bf16.msra.mxu0 %v1214_v8  ;;  %1182 = vmatpush3.bf16.msra.mxu1 %v1214_v8 }
  0x21   : > { %1134 = vmatprep.subr.bf16.mxu0 %v1215_v9  ;;  %1175 = vmatprep.subr.bf16.mxu1 %v1215_v9 }
  0x24   : > { %1135 = vmatpush3.bf16.msra.mxu0 %v1215_v9  ;;  %1183 = vmatpush3.bf16.msra.mxu1 %v1215_v9 }
  0x27   : > { %1137 = vmatmul.mubr.bf16.vlgmr.msra.gmra.mrb[0].mxu0 %v1218_v10  ;;  %1153 = vmatmul.mubr.bf16.vlgmr.msra.gmra.mrb[0].mxu1 %v1219_v11 }
  0x28   : > { %1140 = vmatprep.mubr.bf16.mxu0 %v1220_v12  ;;  %1156 = vmatprep.mubr.bf16.mxu1 %v1221_v13 }
  0x2f   : > { %1141 = vmatmul.mubr.bf16.gmra.mrb[4].mxu0 %v1222_v14  ;;  %1157 = vmatmul.mubr.bf16.gmra.mrb[4].mxu1 %v1223_v15 }
  0x30   : > { %1144 = vmatprep.mubr.bf16.mxu0 %v1224_v16  ;;  %1160 = vmatprep.mubr.bf16.mxu1 %v1225_v17 }
  0x37   : > { %1145 = vmatmul.mubr.bf16.gmra.mrb[8].mxu0 %v1226_v18  ;;  %1161 = vmatmul.mubr.bf16.gmra.mrb[8].mxu1 %v1227_v19 }
  0x38   : > { %1148 = vmatprep.mubr.bf16.mxu0 %v1228_v20  ;;  %1164 = vmatprep.mubr.bf16.mxu1 %v1229_v21 }
  0x3f   : > { %1149 = vmatmul.mubr.bf16.gmra.mrb[12].mxu0 %v1230_v22  ;;  %1165 = vmatmul.mubr.bf16.gmra.mrb[12].mxu1 %v1231_v23 }
  0xfa   : > { %v1138_v25 = vpop.f32.mrb[0].mxu0  ;;  %v1154_v26 = vpop.f32.mrb[0].mxu1 }
  0xfb   : > { %v789_v27 = vadd.f32 %v1138_v25, %v1345_v24  ;;  %v805_v28 = vadd.f32 %v1154_v26, %v1345_v24  ;;  %v554_v29 = vpop.f32.mrb[1].mxu0  ;;  %v618_v30 = vpop.f32.mrb[1].mxu1 }
  0xfc   : > { %v787_v31 = vadd.f32 %v1345_v24, %v554_v29  ;;  %v803_v32 = vadd.f32 %v1345_v24, %v618_v30  ;;  %v1139_v33 = vpop.f32.mrb[2].mxu0  ;;  %v1155_v34 = vpop.f32.mrb[2].mxu1 }
  0xfd   : > { %vm821_vm0 = vcmp.gt.f32.partialorder %v789_v27, 0.0  ;;  %v853_v35 = vmul.f32 0.2, %v789_v27  ;;  %vm837_vm1 = vcmp.gt.f32.partialorder %v805_v28, 0.0  ;;  %v869_v36 = vmul.f32 0.2, %v805_v28 }
  0xfe   : > { %vm819_vm2 = vcmp.gt.f32.partialorder %v787_v31, 0.0  ;;  %v851_v37 = vmul.f32 0.2, %v787_v31  ;;  %vm835_vm3 = vcmp.gt.f32.partialorder %v803_v32, 0.0  ;;  %v867_v38 = vmul.f32 0.2, %v803_v32 }
  0xff   : > { %v885_v39 = vsel %vm821_vm0, %v789_v27, %v853_v35  ;;  %v901_v40 = vsel %vm837_vm1, %v805_v28, %v869_v36  ;;  %v790_v41 = vadd.f32 %v1139_v33, %v1345_v24  ;;  %v806_v42 = vadd.f32 %v1155_v34, %v1345_v24  ;;  %v557_v43 = vpop.f32.mrb[3].mxu0  ;;  %v621_v44 = vpop.f32.mrb[3].mxu1 }
 0x100   : > { %917 = vst [vmem:[%s1355_s19 + $0x10] sm:$0xff] %v885_v39  ;;  %933 = vst [vmem:[%s1355_s19 + $0x90] sm:$0xff] %v901_v40  ;;  %v883_v45 = vsel %vm819_vm2, %v787_v31, %v851_v37  ;;  %v899_v46 = vsel %vm835_vm3, %v803_v32, %v867_v38  ;;  %v788_v47 = vadd.f32 %v1345_v24, %v557_v43 }
 0x101   : > { %v804_v48 = vadd.f32 %v1345_v24, %v621_v44  ;;  %915 = vst [vmem:[%s1355_s19] sm:$0xff] %v883_v45  ;;  %931 = vst [vmem:[%s1355_s19 + $0x80] sm:$0xff] %v899_v46  ;;  %vm822_vm4 = vcmp.gt.f32.partialorder %v790_v41, 0.0  ;;  %v854_v49 = vmul.f32 0.2, %v790_v41  ;;  %vm838_vm5 = vcmp.gt.f32.partialorder %v806_v42, 0.0 }
 0x102   : > { %v870_v50 = vmul.f32 0.2, %v806_v42  ;;  %vm820_vm6 = vcmp.gt.f32.partialorder %v788_v47, 0.0  ;;  %v852_v51 = vmul.f32 0.2, %v788_v47  ;;  %v1142_v55 = vpop.f32.mrb[4].mxu0 }
 0x103   : > { %vm836_vm7 = vcmp.gt.f32.partialorder %v804_v48, 0.0  ;;  %v868_v52 = vmul.f32 0.2, %v804_v48  ;;  %v886_v53 = vsel %vm822_vm4, %v790_v41, %v854_v49  ;;  %v1158_v56 = vpop.f32.mrb[4].mxu1  ;;  %v793_v59 = vadd.f32 %v1142_v55, %v1345_v24  ;;  %v570_v61 = vpop.f32.mrb[5].mxu0 }
 0x104   : > { %v902_v54 = vsel %vm838_vm5, %v806_v42, %v870_v50  ;;  %918 = vst [vmem:[%s1355_s19 + $0x18] sm:$0xff] %v886_v53  ;;  %v884_v57 = vsel %vm820_vm6, %v788_v47, %v852_v51  ;;  %v809_v60 = vadd.f32 %v1158_v56, %v1345_v24  ;;  %v634_v62 = vpop.f32.mrb[5].mxu1  ;;  %v791_v63 = vadd.f32 %v1345_v24, %v570_v61  ;;  %v1143_v1 = vpop.f32.mrb[6].mxu0 }
 0x105   : > { %934 = vst [vmem:[%s1355_s19 + $0x98] sm:$0xff] %v902_v54  ;;  %v900_v58 = vsel %vm836_vm7, %v804_v48, %v868_v52  ;;  %916 = vst [vmem:[%s1355_s19 + $0x8] sm:$0xff] %v884_v57  ;;  %v807_v0 = vadd.f32 %v1345_v24, %v634_v62  ;;  %v1159_v2 = vpop.f32.mrb[6].mxu1  ;;  %vm825_vm8 = vcmp.gt.f32.partialorder %v793_v59, 0.0  ;;  %v857_v3 = vmul.f32 0.2, %v793_v59 }
 0x106   : > { %932 = vst [vmem:[%s1355_s19 + $0x88] sm:$0xff] %v900_v58  ;;  %vm841_vm9 = vcmp.gt.f32.partialorder %v809_v60, 0.0  ;;  %v873_v4 = vmul.f32 0.2, %v809_v60  ;;  %vm823_vm10 = vcmp.gt.f32.partialorder %v791_v63, 0.0  ;;  %v794_v9 = vadd.f32 %v1143_v1, %v1345_v24  ;;  %v573_v11 = vpop.f32.mrb[7].mxu0 }
 0x107   : > { %v855_v5 = vmul.f32 0.2, %v791_v63  ;;  %vm839_vm11 = vcmp.gt.f32.partialorder %v807_v0, 0.0  ;;  %v871_v6 = vmul.f32 0.2, %v807_v0  ;;  %v889_v7 = vsel %vm825_vm8, %v793_v59, %v857_v3  ;;  %v637_v12 = vpop.f32.mrb[7].mxu1 }
 0x108   : > { %v905_v8 = vsel %vm841_vm9, %v809_v60, %v873_v4  ;;  %v810_v10 = vadd.f32 %v1159_v2, %v1345_v24  ;;  %921 = vst [vmem:[%s1355_s19 + $0x30] sm:$0xff] %v889_v7  ;;  %v792_v15 = vadd.f32 %v1345_v24, %v573_v11  ;;  %v808_v16 = vadd.f32 %v1345_v24, %v637_v12 }
 0x109   : > { %937 = vst [vmem:[%s1355_s19 + $0xb0] sm:$0xff] %v905_v8  ;;  %v887_v13 = vsel %vm823_vm10, %v791_v63, %v855_v5  ;;  %v903_v14 = vsel %vm839_vm11, %v807_v0, %v871_v6  ;;  %vm826_vm12 = vcmp.gt.f32.partialorder %v794_v9, 0.0  ;;  %v858_v17 = vmul.f32 0.2, %v794_v9 }
 0x10a   : > { %919 = vst [vmem:[%s1355_s19 + $0x20] sm:$0xff] %v887_v13  ;;  %935 = vst [vmem:[%s1355_s19 + $0xa0] sm:$0xff] %v903_v14  ;;  %vm842_vm13 = vcmp.gt.f32.partialorder %v810_v10, 0.0  ;;  %v874_v18 = vmul.f32 0.2, %v810_v10  ;;  %vm824_vm14 = vcmp.gt.f32.partialorder %v792_v15, 0.0 }
 0x10b   : > { %v856_v19 = vmul.f32 0.2, %v792_v15  ;;  %vm840_vm15 = vcmp.gt.f32.partialorder %v808_v16, 0.0  ;;  %v872_v20 = vmul.f32 0.2, %v808_v16  ;;  %v890_v21 = vsel %vm826_vm12, %v794_v9, %v858_v17  ;;  %v1146_v23 = vpop.f32.mrb[8].mxu0 }
 0x10c   : > { %v906_v22 = vsel %vm842_vm13, %v810_v10, %v874_v18  ;;  %v1162_v25 = vpop.f32.mrb[8].mxu1  ;;  %922 = vst [vmem:[%s1355_s19 + $0x38] sm:$0xff] %v890_v21  ;;  %v797_v28 = vadd.f32 %v1146_v23, %v1345_v24  ;;  %v586_v30 = vpop.f32.mrb[9].mxu0 }
 0x10d   : > { %938 = vst [vmem:[%s1355_s19 + $0xb8] sm:$0xff] %v906_v22  ;;  %v888_v26 = vsel %vm824_vm14, %v792_v15, %v856_v19  ;;  %v904_v27 = vsel %vm840_vm15, %v808_v16, %v872_v20  ;;  %v813_v29 = vadd.f32 %v1162_v25, %v1345_v24  ;;  %v650_v31 = vpop.f32.mrb[9].mxu1  ;;  %v795_v32 = vadd.f32 %v1345_v24, %v586_v30  ;;  %v1147_v34 = vpop.f32.mrb[10].mxu0 }
 0x10e   : > { %920 = vst [vmem:[%s1355_s19 + $0x28] sm:$0xff] %v888_v26  ;;  %936 = vst [vmem:[%s1355_s19 + $0xa8] sm:$0xff] %v904_v27  ;;  %v811_v33 = vadd.f32 %v1345_v24, %v650_v31  ;;  %v1163_v35 = vpop.f32.mrb[10].mxu1  ;;  %vm829_vm0 = vcmp.gt.f32.partialorder %v797_v28, 0.0  ;;  %v861_v36 = vmul.f32 0.2, %v797_v28  ;;  %v798_v42 = vadd.f32 %v1147_v34, %v1345_v24 }
 0x10f   : > { %vm845_vm1 = vcmp.gt.f32.partialorder %v813_v29, 0.0  ;;  %v877_v37 = vmul.f32 0.2, %v813_v29  ;;  %vm827_vm2 = vcmp.gt.f32.partialorder %v795_v32, 0.0  ;;  %v859_v38 = vmul.f32 0.2, %v795_v32 }
 0x110   : > { %vm843_vm3 = vcmp.gt.f32.partialorder %v811_v33, 0.0  ;;  %v875_v39 = vmul.f32 0.2, %v811_v33  ;;  %v893_v40 = vsel %vm829_vm0, %v797_v28, %v861_v36  ;;  %v814_v43 = vadd.f32 %v1163_v35, %v1345_v24  ;;  %v589_v44 = vpop.f32.mrb[11].mxu0  ;;  %v653_v45 = vpop.f32.mrb[11].mxu1 }
 0x111   : > { %v909_v41 = vsel %vm845_vm1, %v813_v29, %v877_v37  ;;  %925 = vst [vmem:[%s1355_s19 + $0x50] sm:$0xff] %v893_v40  ;;  %v891_v46 = vsel %vm827_vm2, %v795_v32, %v859_v38  ;;  %v796_v48 = vadd.f32 %v1345_v24, %v589_v44  ;;  %v812_v49 = vadd.f32 %v1345_v24, %v653_v45 }
 0x112   : > { %941 = vst [vmem:[%s1355_s19 + $0xd0] sm:$0xff] %v909_v41  ;;  %v907_v47 = vsel %vm843_vm3, %v811_v33, %v875_v39  ;;  %v1150_v50 = vpop.f32.mrb[12].mxu0  ;;  %v1166_v51 = vpop.f32.mrb[12].mxu1  ;;  %923 = vst [vmem:[%s1355_s19 + $0x40] sm:$0xff] %v891_v46  ;;  %vm830_vm4 = vcmp.gt.f32.partialorder %v798_v42, 0.0  ;;  %vm846_vm5 = vcmp.gt.f32.partialorder %v814_v43, 0.0 }
 0x113   : > { %939 = vst [vmem:[%s1355_s19 + $0xc0] sm:$0xff] %v907_v47  ;;  %v862_v52 = vmul.f32 0.2, %v798_v42  ;;  %v878_v53 = vmul.f32 0.2, %v814_v43  ;;  %vm828_vm6 = vcmp.gt.f32.partialorder %v796_v48, 0.0  ;;  %v801_v58 = vadd.f32 %v1150_v50, %v1345_v24 }
 0x114   : > { %v860_v54 = vmul.f32 0.2, %v796_v48  ;;  %vm844_vm7 = vcmp.gt.f32.partialorder %v812_v49, 0.0  ;;  %v876_v55 = vmul.f32 0.2, %v812_v49  ;;  %v817_v59 = vadd.f32 %v1166_v51, %v1345_v24  ;;  %v602_v60 = vpop.f32.mrb[13].mxu0 }
 0x115   : > { %v894_v56 = vsel %vm830_vm4, %v798_v42, %v862_v52  ;;  %v910_v57 = vsel %vm846_vm5, %v814_v43, %v878_v53  ;;  %v666_v61 = vpop.f32.mrb[13].mxu1  ;;  %v799_v0 = vadd.f32 %v1345_v24, %v602_v60  ;;  %v1151_v2 = vpop.f32.mrb[14].mxu0  ;;  %vm833_vm8 = vcmp.gt.f32.partialorder %v801_v58, 0.0 }
 0x116   : > { %926 = vst [vmem:[%s1355_s19 + $0x58] sm:$0xff] %v894_v56  ;;  %942 = vst [vmem:[%s1355_s19 + $0xd8] sm:$0xff] %v910_v57  ;;  %v892_v62 = vsel %vm828_vm6, %v796_v48, %v860_v54  ;;  %v908_v63 = vsel %vm844_vm7, %v812_v49, %v876_v55  ;;  %v815_v1 = vadd.f32 %v1345_v24, %v666_v61  ;;  %v1167_v3 = vpop.f32.mrb[14].mxu1  ;;  %v865_v4 = vmul.f32 0.2, %v801_v58  ;;  %v605_v12 = vpop.f32.mrb[15].mxu0 }
 0x117   : > { %924 = vst [vmem:[%s1355_s19 + $0x48] sm:$0xff] %v892_v62  ;;  %940 = vst [vmem:[%s1355_s19 + $0xc8] sm:$0xff] %v908_v63  ;;  %vm849_vm9 = vcmp.gt.f32.partialorder %v817_v59, 0.0  ;;  %v881_v5 = vmul.f32 0.2, %v817_v59  ;;  %vm831_vm10 = vcmp.gt.f32.partialorder %v799_v0, 0.0  ;;  %v802_v10 = vadd.f32 %v1151_v2, %v1345_v24 }
 0x118   : > { %v863_v6 = vmul.f32 0.2, %v799_v0  ;;  %vm847_vm11 = vcmp.gt.f32.partialorder %v815_v1, 0.0  ;;  %v879_v7 = vmul.f32 0.2, %v815_v1  ;;  %v897_v8 = vsel %vm833_vm8, %v801_v58, %v865_v4  ;;  %v669_v13 = vpop.f32.mrb[15].mxu1 }
 0x119   : > { %v913_v9 = vsel %vm849_vm9, %v817_v59, %v881_v5  ;;  %v818_v11 = vadd.f32 %v1167_v3, %v1345_v24  ;;  %929 = vst [vmem:[%s1355_s19 + $0x70] sm:$0xff] %v897_v8  ;;  %v800_v16 = vadd.f32 %v1345_v24, %v605_v12  ;;  %v816_v17 = vadd.f32 %v1345_v24, %v669_v13 }
 0x11a   : > { %945 = vst [vmem:[%s1355_s19 + $0xf0] sm:$0xff] %v913_v9  ;;  %v895_v14 = vsel %vm831_vm10, %v799_v0, %v863_v6  ;;  %v911_v15 = vsel %vm847_vm11, %v815_v1, %v879_v7  ;;  %vm834_vm12 = vcmp.gt.f32.partialorder %v802_v10, 0.0  ;;  %v866_v18 = vmul.f32 0.2, %v802_v10 }
 0x11b   : > { %927 = vst [vmem:[%s1355_s19 + $0x60] sm:$0xff] %v895_v14  ;;  %943 = vst [vmem:[%s1355_s19 + $0xe0] sm:$0xff] %v911_v15  ;;  %vm850_vm13 = vcmp.gt.f32.partialorder %v818_v11, 0.0  ;;  %v882_v19 = vmul.f32 0.2, %v818_v11  ;;  %vm832_vm14 = vcmp.gt.f32.partialorder %v800_v16, 0.0 }
 0x11c   : > { %v864_v20 = vmul.f32 0.2, %v800_v16  ;;  %vm848_vm15 = vcmp.gt.f32.partialorder %v816_v17, 0.0  ;;  %v880_v21 = vmul.f32 0.2, %v816_v17  ;;  %v898_v22 = vsel %vm834_vm12, %v802_v10, %v866_v18 }
 0x11d   : > { %v914_v23 = vsel %vm850_vm13, %v818_v11, %v882_v19  ;;  %930 = vst [vmem:[%s1355_s19 + $0x78] sm:$0xff] %v898_v22 }
 0x11e   : > { %946 = vst [vmem:[%s1355_s19 + $0xf8] sm:$0xff] %v914_v23  ;;  %v896_v25 = vsel %vm832_vm14, %v800_v16, %v864_v20  ;;  %v912_v26 = vsel %vm848_vm15, %v816_v17, %v880_v21 }
 0x11f   : > { %928 = vst [vmem:[%s1355_s19 + $0x68] sm:$0xff] %v896_v25  ;;  %944 = vst [vmem:[%s1355_s19 + $0xe8] sm:$0xff] %v912_v26 }
 0x120 PF: > { %s13_s14 = sadd.s32 1, %s1254_s14   ;;  %s1430_s12 = smov %s1250_s13 }
 0x121   : > { %p10_p5 = scmp.ge.s32.totalorder %s13_s14, 4   ;;  %s1431_s13 = smov %s1433_s15 }
 0x123   :  { %12 = sbr.rel (!%p10_p5) target bundleno = 2 (0x2), region = 76 }

// kernel: patch_discriminator_forward.9
= control target key start
LH: loop header
LB: loop body
LE: loop exit
PB: predicated region body
PF: predicated region fallthrough
CT: control target
= control target key end

     0   :  { %s1762_s15 = smov 0   ;;  %s1764_s16 = smov 0   ;;  %s2019_s0 = inlined_call_operand.vmem [shape: bf16[128,1024], index: 0, kind: input, shape index: {}]   ;;  %s2020_s1 = inlined_call_operand.vmem [shape: bf16[1024,128], index: 1, kind: input, shape index: {}]   ;;  %s2021_s2 = inlined_call_operand.vmem [shape: f32[1,128], index: 2, kind: input, shape index: {}]   ;;  %s2022_s3 = inlined_call_operand.vmem [shape: f32[128,128], index: 3, kind: output, shape index: {0}]   ;;  %s2023_s4 = inlined_call_operand.vmem [shape: f32[8,128], index: 4, kind: output, shape index: {1}]  }
   0x1   :  { %s1766_s17 = smov 0   ;;  %s1768_s18 = smov 0  }
   0x2   :  { %s1770_s19 = smov 0  }
   0x3 LB: > { %s27_s20 = sadd.s32 1, %s1730_s18  ;;  %p50_p1 = scmp.ne.s32.totalorder %s1722_s16, %s1718_s15  ;;  %s1734_s19 = sphi %s1770_s19, %s15_s19   ;;  %s1730_s18 = sphi %s1768_s18, %s2027_s18   ;;  %s1726_s17 = sphi %s1766_s17, %s2026_s17   ;;  %s1722_s16 = sphi %s1764_s16, %s2025_s16   ;;  %s1718_s15 = sphi %s1762_s15, %s2024_s15  }
   0x4   : > { %p28_p0 = scmp.ge.s32.totalorder %s27_s20, 2  ;;  %p51_p2 = scmp.eq.s32.totalorder %s1734_s19, 0 }
   0x5   : > { %s43_s22 = sadd.s32 1, %s1722_s16  ;;  %p1366_p5 = scmp.ge.s32.totalorder %s1734_s19, 2 }
   0x6   : > { %s2029_s20 = smov (%p28_p0, %s27_s20), 0  ;;  %p52_p3 = por %p51_p2, %p50_p1 }
   0x7   : > { %s39_s21 = ssub.s32 %s1730_s18, %s2029_s20  ;;  %192 = sbr.rel (%p1366_p5) target bundleno = 34 (0x22), region = 20 }
   0x8   : > { %p41_p4 = scmp.eq.s32.totalorder %s39_s21, 0 }
   0xa   : > { %s1797_s23 = scalar_select %p41_p4, %s1722_s16, %s43_s22  }
   0xe   : > { %195 = sbr.rel (!%p52_p3) target bundleno = 34 (0x22), region = 24  ;;  %s197_s24 = sand.u32 (%p52_p3), 1, %s1722_s16  }
   0xf   : > { %s1446_s25 = sshll.u32 (%p52_p3), %s1730_s18, 4  ;;  %s1367_s26 = sshll.u32 (%p52_p3), %s197_s24, 8 }
  0x10   : > { %s1805_s29 = scalar_lea.vmem (%p52_p3), %s2019_s0, %s1446_s25  ;;  %s1810_s30 = scalar_lea.vmem (%p52_p3), [#allocation3], %s1367_s26 }
  0x11   : > { %v218_v0 = vld [vmem:[%s1805_s29] sm:$0xff] (%p52_p3)  ;;  %v220_v1 = vld [vmem:[%s1805_s29 + $0x8] sm:$0xff] (%p52_p3) }
  0x12   : > { %v222_v2 = vld [vmem:[%s1805_s29 + $0x20] sm:$0xff] (%p52_p3)  ;;  %219 = vst [vmem:[%s1810_s30] sm:$0xff] (%p52_p3), %v218_v0  ;;  %221 = vst [vmem:[%s1810_s30 + $0x8] sm:$0xff] (%p52_p3), %v220_v1  ;;  %v224_v3 = vld [vmem:[%s1805_s29 + $0x28] sm:$0xff] (%p52_p3) }
  0x13   : > { %223 = vst [vmem:[%s1810_s30 + $0x10] sm:$0xff] (%p52_p3), %v222_v2  ;;  %v226_v4 = vld [vmem:[%s1805_s29 + $0x40] sm:$0xff] (%p52_p3)  ;;  %v228_v5 = vld [vmem:[%s1805_s29 + $0x48] sm:$0xff] (%p52_p3)  ;;  %225 = vst [vmem:[%s1810_s30 + $0x18] sm:$0xff] (%p52_p3), %v224_v3 }
  0x14   : > { %227 = vst [vmem:[%s1810_s30 + $0x20] sm:$0xff] (%p52_p3), %v226_v4  ;;  %229 = vst [vmem:[%s1810_s30 + $0x28] sm:$0xff] (%p52_p3), %v228_v5  ;;  %v230_v6 = vld [vmem:[%s1805_s29 + $0x60] sm:$0xff] (%p52_p3)  ;;  %v232_v7 = vld [vmem:[%s1805_s29 + $0x68] sm:$0xff] (%p52_p3) }
  0x15   : > { %v234_v8 = vld [vmem:[%s1805_s29 + $0x80] sm:$0xff]  ;;  %231 = vst [vmem:[%s1810_s30 + $0x30] sm:$0xff] %v230_v6  ;;  %233 = vst [vmem:[%s1810_s30 + $0x38] sm:$0xff] %v232_v7  ;;  %v236_v9 = vld [vmem:[%s1805_s29 + $0x88] sm:$0xff] }
  0x16   : > { %235 = vst [vmem:[%s1810_s30 + $0x40] sm:$0xff] %v234_v8  ;;  %v238_v10 = vld [vmem:[%s1805_s29 + $0xa0] sm:$0xff]  ;;  %v240_v11 = vld [vmem:[%s1805_s29 + $0xa8] sm:$0xff]  ;;  %237 = vst [vmem:[%s1810_s30 + $0x48] sm:$0xff] %v236_v9 }
  0x17   : > { %239 = vst [vmem:[%s1810_s30 + $0x50] sm:$0xff] %v238_v10  ;;  %241 = vst [vmem:[%s1810_s30 + $0x58] sm:$0xff] %v240_v11  ;;  %v242_v12 = vld [vmem:[%s1805_s29 + $0xc0] sm:$0xff]  ;;  %v244_v13 = vld [vmem:[%s1805_s29 + $0xc8] sm:$0xff] }
  0x18   : > { %v246_v14 = vld [vmem:[%s1805_s29 + $0xe0] sm:$0xff]  ;;  %243 = vst [vmem:[%s1810_s30 + $0x60] sm:$0xff] %v242_v12  ;;  %245 = vst [vmem:[%s1810_s30 + $0x68] sm:$0xff] %v244_v13  ;;  %v248_v15 = vld [vmem:[%s1805_s29 + $0xe8] sm:$0xff] }
  0x19   : > { %247 = vst [vmem:[%s1810_s30 + $0x70] sm:$0xff] %v246_v14  ;;  %v250_v16 = vld [vmem:[%s1805_s29 + $0x100] sm:$0xff]  ;;  %v252_v17 = vld [vmem:[%s1805_s29 + $0x108] sm:$0xff]  ;;  %249 = vst [vmem:[%s1810_s30 + $0x78] sm:$0xff] %v248_v15 }
  0x1a   : > { %251 = vst [vmem:[%s1810_s30 + $0x80] sm:$0xff] %v250_v16  ;;  %253 = vst [vmem:[%s1810_s30 + $0x88] sm:$0xff] %v252_v17  ;;  %v254_v18 = vld [vmem:[%s1805_s29 + $0x120] sm:$0xff]  ;;  %v256_v19 = vld [vmem:[%s1805_s29 + $0x128] sm:$0xff] }
  0x1b   : > { %v258_v20 = vld [vmem:[%s1805_s29 + $0x140] sm:$0xff]  ;;  %255 = vst [vmem:[%s1810_s30 + $0x90] sm:$0xff] %v254_v18  ;;  %257 = vst [vmem:[%s1810_s30 + $0x98] sm:$0xff] %v256_v19  ;;  %v260_v21 = vld [vmem:[%s1805_s29 + $0x148] sm:$0xff] }
  0x1c   : > { %259 = vst [vmem:[%s1810_s30 + $0xa0] sm:$0xff] %v258_v20  ;;  %v262_v22 = vld [vmem:[%s1805_s29 + $0x160] sm:$0xff]  ;;  %v264_v23 = vld [vmem:[%s1805_s29 + $0x168] sm:$0xff]  ;;  %261 = vst [vmem:[%s1810_s30 + $0xa8] sm:$0xff] %v260_v21 }
  0x1d   : > { %263 = vst [vmem:[%s1810_s30 + $0xb0] sm:$0xff] %v262_v22  ;;  %265 = vst [vmem:[%s1810_s30 + $0xb8] sm:$0xff] %v264_v23  ;;  %v266_v24 = vld [vmem:[%s1805_s29 + $0x180] sm:$0xff]  ;;  %v268_v25 = vld [vmem:[%s1805_s29 + $0x188] sm:$0xff] }
  0x1e   : > { %v270_v26 = vld [vmem:[%s1805_s29 + $0x1a0] sm:$0xff]  ;;  %267 = vst [vmem:[%s1810_s30 + $0xc0] sm:$0xff] %v266_v24  ;;  %269 = vst [vmem:[%s1810_s30 + $0xc8] sm:$0xff] %v268_v25  ;;  %v272_v27 = vld [vmem:[%s1805_s29 + $0x1a8] sm:$0xff] }
  0x1f   : > { %271 = vst [vmem:[%s1810_s30 + $0xd0] sm:$0xff] %v270_v26  ;;  %v274_v28 = vld [vmem:[%s1805_s29 + $0x1c0] sm:$0xff]  ;;  %v276_v29 = vld [vmem:[%s1805_s29 + $0x1c8] sm:$0xff]  ;;  %273 = vst [vmem:[%s1810_s30 + $0xd8] sm:$0xff] %v272_v27 }
  0x20   : > { %275 = vst [vmem:[%s1810_s30 + $0xe0] sm:$0xff] %v274_v28  ;;  %277 = vst [vmem:[%s1810_s30 + $0xe8] sm:$0xff] %v276_v29  ;;  %v278_v30 = vld [vmem:[%s1805_s29 + $0x1e0] sm:$0xff]  ;;  %v280_v31 = vld [vmem:[%s1805_s29 + $0x1e8] sm:$0xff] }
  0x21   : > { %279 = vst [vmem:[%s1810_s30 + $0xf0] sm:$0xff] %v278_v30  ;;  %281 = vst [vmem:[%s1810_s30 + $0xf8] sm:$0xff] %v280_v31 }
  0x22 PF: > { %p1370_p6 = scmp.ge.s32.totalorder %s1734_s19, 1  ;;  %p298_p7 = scmp.lt.s32.totalorder %s1734_s19, 3 }
  0x24   : > { %p299_p8 = pnand %p1370_p6, %p298_p7 }
  0x25   : > { %s305_s5 = sand.u32 (!%p299_p8), 1, %s1718_s15   ;;  %s1372_s6 = sshll.u32 (!%p299_p8), %s1726_s17, 6 }
  0x26   : > { %302 = sbr.rel (%p299_p8) target bundleno = 400 (0x190), region = 51  ;;  %s1371_s7 = sshll.u32 (!%p299_p8), %s305_s5, 8 }
  0x27   : > { %p354_p9 = scmp.lt.s32.totalorder (!%p299_p8), %s1372_s6, 127  ;;  %s1882_s12 = scalar_lea.vmem (!%p299_p8), [#allocation3], %s1371_s7 }
  0x28   : > { %p1374_p10 = scmp.ne.s32.totalorder (!%p299_p8), %s1726_s17, 0 }
  0x2d   : > { %s2031_s6 = smov (!%p354_p9, %s1372_s6), 127  ;;  %385 = sbr.rel (%p1374_p10) target bundleno = 55 (0x37), region = 59 }
  0x2e   : > { %s1373_s8 = sshll.u32 %s2031_s6, 2  ;;  %v1736_v32 = vmov (!%p1374_p10), 0.0  }
  0x2f   : > { %s1880_s11 = scalar_lea.vmem %s2020_s1, %s1373_s8  ;;  %386 = vst [vmem:[#allocation2] sm:$0xff] (!%p1374_p10), %v1736_v32  ;;  %387 = vst [vmem:[#allocation2 + $0x8] sm:$0xff] (!%p1374_p10), %v1736_v32 }
  0x30   : > { %388 = vst [vmem:[#allocation2 + $0x10] sm:$0xff] (!%p1374_p10), %v1736_v32  ;;  %389 = vst [vmem:[#allocation2 + $0x18] sm:$0xff] (!%p1374_p10), %v1736_v32 }
  0x31   : > { %390 = vst [vmem:[#allocation2 + $0x20] sm:$0xff] (!%p1374_p10), %v1736_v32  ;;  %391 = vst [vmem:[#allocation2 + $0x28] sm:$0xff] (!%p1374_p10), %v1736_v32 }
  0x32   : > { %392 = vst [vmem:[#allocation2 + $0x30] sm:$0xff] (!%p1374_p10), %v1736_v32  ;;  %393 = vst [vmem:[#allocation2 + $0x38] sm:$0xff] (!%p1374_p10), %v1736_v32 }
  0x33   : > { %394 = vst [vmem:[#allocation2 + $0x40] sm:$0xff] (!%p1374_p10), %v1736_v32  ;;  %395 = vst [vmem:[#allocation2 + $0x48] sm:$0xff] (!%p1374_p10), %v1736_v32 }
  0x34   : > { %396 = vst [vmem:[#allocation2 + $0x50] sm:$0xff] %v1736_v32  ;;  %397 = vst [vmem:[#allocation2 + $0x58] sm:$0xff] %v1736_v32 }
  0x35   : > { %398 = vst [vmem:[#allocation2 + $0x60] sm:$0xff] %v1736_v32  ;;  %399 = vst [vmem:[#allocation2 + $0x68] sm:$0xff] %v1736_v32 }
  0x36   : > { %400 = vst [vmem:[#allocation2 + $0x70] sm:$0xff] %v1736_v32  ;;  %401 = vst [vmem:[#allocation2 + $0x78] sm:$0xff] %v1736_v32 }
  0x37 PF: > { %v1616_v33 = vld [vmem:[%s1880_s11 + $0x40] sm:$0xff]   ;;  %v1620_v37 = vld [vmem:[%s1880_s11 + $0x48] sm:$0xff]   ;;  %v1624_v41 = vld [vmem:[%s1880_s11 + $0x50] sm:$0xff]   ;;  %p1439_p11 = scmp.ne.s32.totalorder %s1726_s17, 1 }
  0x38   : > { %v1617_v34 = vld [vmem:[%s1880_s11 + $0xc0] sm:$0xff]   ;;  %1447 = vmatprep.subr.bf16.mxu0 %v1616_v33  ;;  %v1621_v38 = vld [vmem:[%s1880_s11 + $0xc8] sm:$0xff]   ;;  %v1625_v42 = vld [vmem:[%s1880_s11 + $0xd0] sm:$0xff]   ;;  %vm1209_vm0 = vcmask (!%p1439_p11), 1040384   ;;  %vm1211_vm1 = vcmask (!%p1439_p11), 1041408  }
  0x39   : > { %v1618_v35 = vld [vmem:[%s1880_s11] sm:$0xff]   ;;  %1511 = vmatprep.subr.bf16.mxu1 %v1617_v34  ;;  %v1622_v39 = vld [vmem:[%s1880_s11 + $0x8] sm:$0xff]   ;;  %v1626_v43 = vld [vmem:[%s1880_s11 + $0x10] sm:$0xff]  }
  0x3a   : > { %v1619_v36 = vld [vmem:[%s1880_s11 + $0x80] sm:$0xff]   ;;  %1448 = vmatpush3.bf16.msra.mxu0 %v1618_v35  ;;  %v1623_v40 = vld [vmem:[%s1880_s11 + $0x88] sm:$0xff]   ;;  %v1627_v44 = vld [vmem:[%s1880_s11 + $0x90] sm:$0xff]  }
  0x3b   : > { %1512 = vmatpush3.bf16.msra.mxu1 %v1619_v36  ;;  %1449 = vmatprep.subr.bf16.mxu0 %v1620_v37  ;;  %v1628_v45 = vld [vmem:[%s1880_s11 + $0x58] sm:$0xff]   ;;  %v1632_v49 = vld [vmem:[%s1880_s11 + $0x60] sm:$0xff]   ;;  %v1636_v53 = vld [vmem:[%s1880_s11 + $0x68] sm:$0xff]  }
  0x3c   : > { %1513 = vmatprep.subr.bf16.mxu1 %v1621_v38  ;;  %v1629_v46 = vld [vmem:[%s1880_s11 + $0xd8] sm:$0xff]   ;;  %v1633_v50 = vld [vmem:[%s1880_s11 + $0xe0] sm:$0xff]   ;;  %v1637_v54 = vld [vmem:[%s1880_s11 + $0xe8] sm:$0xff]  }
  0x3d   : > { %v1630_v47 = vld [vmem:[%s1880_s11 + $0x18] sm:$0xff]   ;;  %v1634_v51 = vld [vmem:[%s1880_s11 + $0x20] sm:$0xff]   ;;  %v1638_v55 = vld [vmem:[%s1880_s11 + $0x28] sm:$0xff]  }
  0x3e   : > { %1450 = vmatpush3.bf16.msra.mxu0 %v1622_v39  ;;  %v1631_v48 = vld [vmem:[%s1880_s11 + $0x98] sm:$0xff]   ;;  %v1635_v52 = vld [vmem:[%s1880_s11 + $0xa0] sm:$0xff]   ;;  %v1639_v56 = vld [vmem:[%s1880_s11 + $0xa8] sm:$0xff]  }
  0x3f   : > { %1514 = vmatpush3.bf16.msra.mxu1 %v1623_v40  ;;  %1451 = vmatprep.subr.bf16.mxu0 %v1624_v41  ;;  %v1640_v57 = vld [vmem:[%s1880_s11 + $0x70] sm:$0xff]   ;;  %v1644_v61 = vld [vmem:[%s1880_s11 + $0x78] sm:$0xff]  }
  0x40   : > { %1515 = vmatprep.subr.bf16.mxu1 %v1625_v42  ;;  %v1641_v58 = vld [vmem:[%s1880_s11 + $0xf0] sm:$0xff]   ;;  %v1645_v62 = vld [vmem:[%s1880_s11 + $0xf8] sm:$0xff]   ;;  %v402_v42 = vld [vmem:[#allocation2] sm:$0xff] }
  0x41   : > { %v1642_v59 = vld [vmem:[%s1880_s11 + $0x30] sm:$0xff]   ;;  %v1646_v63 = vld [vmem:[%s1880_s11 + $0x38] sm:$0xff]  }
  0x42   : > { %1452 = vmatpush3.bf16.msra.mxu0 %v1626_v43  ;;  %v1643_v60 = vld [vmem:[%s1880_s11 + $0xb0] sm:$0xff]   ;;  %v1647_v0 = vld [vmem:[%s1880_s11 + $0xb8] sm:$0xff]  }
  0x43   : > { %1516 = vmatpush3.bf16.msra.mxu1 %v1627_v44  ;;  %1453 = vmatprep.subr.bf16.mxu0 %v1628_v45  ;;  %v1648_v1 = vld [vmem:[%s1882_s12] ss:$16 sps:$4 sm:$0xff]   ;;  %v1650_v2 = vld [vmem:[%s1882_s12 + $0x4] ss:$16 sps:$4 sm:$0xff]   ;;  %v1651_v3 = vld [vmem:[%s1882_s12 + $0x8] ss:$16 sps:$4 sm:$0xff]  }
  0x44   : > { %1517 = vmatprep.subr.bf16.mxu1 %v1629_v46  ;;  %v1653_v4 = vld [vmem:[%s1882_s12 + $0xc] ss:$16 sps:$4 sm:$0xff]   ;;  %898 = vmatprep.mubr.bf16.mxu0 %v1650_v2  ;;  %v1654_v5 = vld [vmem:[%s1882_s12 + $0x24] ss:$16 sps:$4 sm:$0xff]   ;;  %v1658_v7 = vld [vmem:[%s1882_s12 + $0x20] ss:$16 sps:$4 sm:$0xff]  }
  0x45   : > { %995 = vmatprep.mubr.bf16.mxu1 %v1653_v4  ;;  %v1656_v6 = vld [vmem:[%s1882_s12 + $0x2c] ss:$16 sps:$4 sm:$0xff]   ;;  %v1659_v8 = vld [vmem:[%s1882_s12 + $0x28] ss:$16 sps:$4 sm:$0xff]   ;;  %v1660_v9 = vld [vmem:[%s1882_s12 + $0x44] ss:$16 sps:$4 sm:$0xff]  }
  0x46   : > { %1454 = vmatpush3.bf16.msra.mxu0 %v1630_v47  ;;  %v1662_v10 = vld [vmem:[%s1882_s12 + $0x4c] ss:$16 sps:$4 sm:$0xff]   ;;  %v1664_v11 = vld [vmem:[%s1882_s12 + $0x40] ss:$16 sps:$4 sm:$0xff]   ;;  %v1665_v12 = vld [vmem:[%s1882_s12 + $0x48] ss:$16 sps:$4 sm:$0xff]  }
  0x47   : > { %1518 = vmatpush3.bf16.msra.mxu1 %v1631_v48  ;;  %1455 = vmatprep.subr.bf16.mxu0 %v1632_v49  ;;  %v1666_v13 = vld [vmem:[%s1882_s12 + $0x64] ss:$16 sps:$4 sm:$0xff]   ;;  %v1668_v14 = vld [vmem:[%s1882_s12 + $0x6c] ss:$16 sps:$4 sm:$0xff]   ;;  %v1670_v15 = vld [vmem:[%s1882_s12 + $0x60] ss:$16 sps:$4 sm:$0xff]  }
  0x48   : > { %1519 = vmatprep.subr.bf16.mxu1 %v1633_v50  ;;  %v1671_v16 = vld [vmem:[%s1882_s12 + $0x68] ss:$16 sps:$4 sm:$0xff]   ;;  %v1672_v17 = vld [vmem:[%s1882_s12 + $0x84] ss:$16 sps:$4 sm:$0xff]   ;;  %v1674_v18 = vld [vmem:[%s1882_s12 + $0x8c] ss:$16 sps:$4 sm:$0xff]  }
  0x49   : > { %v1676_v19 = vld [vmem:[%s1882_s12 + $0x80] ss:$16 sps:$4 sm:$0xff]   ;;  %v1677_v20 = vld [vmem:[%s1882_s12 + $0x88] ss:$16 sps:$4 sm:$0xff]   ;;  %v1678_v21 = vld [vmem:[%s1882_s12 + $0xa4] ss:$16 sps:$4 sm:$0xff]  }
  0x4a   : > { %1456 = vmatpush3.bf16.msra.mxu0 %v1634_v51  ;;  %v1680_v22 = vld [vmem:[%s1882_s12 + $0xac] ss:$16 sps:$4 sm:$0xff]   ;;  %v1682_v23 = vld [vmem:[%s1882_s12 + $0xa0] ss:$16 sps:$4 sm:$0xff]   ;;  %v1683_v24 = vld [vmem:[%s1882_s12 + $0xa8] ss:$16 sps:$4 sm:$0xff]  }
  0x4b   : > { %1520 = vmatpush3.bf16.msra.mxu1 %v1635_v52  ;;  %1457 = vmatprep.subr.bf16.mxu0 %v1636_v53  ;;  %v1684_v25 = vld [vmem:[%s1882_s12 + $0xc4] ss:$16 sps:$4 sm:$0xff]   ;;  %v1686_v26 = vld [vmem:[%s1882_s12 + $0xcc] ss:$16 sps:$4 sm:$0xff]   ;;  %v1688_v27 = vld [vmem:[%s1882_s12 + $0xc0] ss:$16 sps:$4 sm:$0xff]  }
  0x4c   : > { %1521 = vmatprep.subr.bf16.mxu1 %v1637_v54  ;;  %v1689_v28 = vld [vmem:[%s1882_s12 + $0xc8] ss:$16 sps:$4 sm:$0xff]   ;;  %v1690_v29 = vld [vmem:[%s1882_s12 + $0xe4] ss:$16 sps:$4 sm:$0xff]   ;;  %v1692_v30 = vld [vmem:[%s1882_s12 + $0xec] ss:$16 sps:$4 sm:$0xff]  }
  0x4d   : > { %v1694_v31 = vld [vmem:[%s1882_s12 + $0xe0] ss:$16 sps:$4 sm:$0xff]   ;;  %v1695_v32 = vld [vmem:[%s1882_s12 + $0xe8] ss:$16 sps:$4 sm:$0xff]  }
  0x4e   : > { %1458 = vmatpush3.bf16.msra.mxu0 %v1638_v55  ;;  %v403_v47 = vld [vmem:[#allocation2 + $0x8] sm:$0xff] }
  0x4f   : > { %1522 = vmatpush3.bf16.msra.mxu1 %v1639_v56  ;;  %1459 = vmatprep.subr.bf16.mxu0 %v1640_v57 }
  0x50   : > { %1523 = vmatprep.subr.bf16.mxu1 %v1641_v58 }
  0x52   : > { %1460 = vmatpush3.bf16.msra.mxu0 %v1642_v59 }
  0x53   : > { %1524 = vmatpush3.bf16.msra.mxu1 %v1643_v60  ;;  %1461 = vmatprep.subr.bf16.mxu0 %v1644_v61  ;;  %v404_v60 = vld [vmem:[#allocation2 + $0x10] sm:$0xff] }
  0x54   : > { %1525 = vmatprep.subr.bf16.mxu1 %v1645_v62 }
  0x56   : > { %1462 = vmatpush3.bf16.msra.mxu0 %v1646_v63 }
  0x57   : > { %1526 = vmatpush3.bf16.msra.mxu1 %v1647_v0 }
  0x59   : > { %899 = vmatmul.mubr.bf16.vlgmr.msra.gmra.mrb[0].mxu0 %v1648_v1  ;;  %v405_v1 = vld [vmem:[#allocation2 + $0x18] sm:$0xff] }
  0x5a   : > { %996 = vmatmul.mubr.bf16.vlgmr.msra.gmra.mrb[0].mxu1 %v1651_v3  ;;  %906 = vmatprep.mubr.bf16.mxu0 %v1654_v5 }
  0x5b   : > { %1003 = vmatprep.mubr.bf16.mxu1 %v1656_v6 }
  0x61   : > { %907 = vmatmul.mubr.bf16.gmra.mrb[4].mxu0 %v1658_v7 }
  0x62   : > { %1004 = vmatmul.mubr.bf16.gmra.mrb[4].mxu1 %v1659_v8  ;;  %914 = vmatprep.mubr.bf16.mxu0 %v1660_v9 }
  0x63   : > { %1011 = vmatprep.mubr.bf16.mxu1 %v1662_v10 }
  0x69   : > { %915 = vmatmul.mubr.bf16.gmra.mrb[8].mxu0 %v1664_v11 }
  0x6a   : > { %1012 = vmatmul.mubr.bf16.gmra.mrb[8].mxu1 %v1665_v12  ;;  %922 = vmatprep.mubr.bf16.mxu0 %v1666_v13 }
  0x6b   : > { %1019 = vmatprep.mubr.bf16.mxu1 %v1668_v14  ;;  %v406_v14 = vld [vmem:[#allocation2 + $0x20] sm:$0xff] }
  0x71   : > { %923 = vmatmul.mubr.bf16.gmra.mrb[12].mxu0 %v1670_v15 }
  0x72   : > { %1020 = vmatmul.mubr.bf16.gmra.mrb[12].mxu1 %v1671_v16  ;;  %930 = vmatprep.mubr.bf16.mxu0 %v1672_v17 }
  0x73   : > { %1027 = vmatprep.mubr.bf16.mxu1 %v1674_v18 }
  0x79   : > { %931 = vmatmul.mubr.bf16.gmra.mrb[16].mxu0 %v1676_v19  ;;  %v407_v19 = vld [vmem:[#allocation2 + $0x28] sm:$0xff] }
  0x7a   : > { %1028 = vmatmul.mubr.bf16.gmra.mrb[16].mxu1 %v1677_v20  ;;  %938 = vmatprep.mubr.bf16.mxu0 %v1678_v21 }
  0x7b   : > { %1035 = vmatprep.mubr.bf16.mxu1 %v1680_v22 }
  0x81   : > { %939 = vmatmul.mubr.bf16.gmra.mrb[20].mxu0 %v1682_v23 }
  0x82   : > { %1036 = vmatmul.mubr.bf16.gmra.mrb[20].mxu1 %v1683_v24  ;;  %946 = vmatprep.mubr.bf16.mxu0 %v1684_v25 }
  0x83   : > { %1043 = vmatprep.mubr.bf16.mxu1 %v1686_v26 }
  0x89   : > { %947 = vmatmul.mubr.bf16.gmra.mrb[24].mxu0 %v1688_v27 }
  0x8a   : > { %1044 = vmatmul.mubr.bf16.gmra.mrb[24].mxu1 %v1689_v28  ;;  %954 = vmatprep.mubr.bf16.mxu0 %v1690_v29 }
  0x8b   : > { %1051 = vmatprep.mubr.bf16.mxu1 %v1692_v30 }
  0x91   : > { %955 = vmatmul.mubr.bf16.gmra.mrb[28].mxu0 %v1694_v31 }
  0x92   : > { %1052 = vmatmul.mubr.bf16.gmra.mrb[28].mxu1 %v1695_v32  ;;  %v408_v32 = vld [vmem:[#allocation2 + $0x30] sm:$0xff] }
 0x12c   : > { %v1463_v33 = vpop.f32.mrb[0].mxu0 }
 0x12d   : > { %v1527_v34 = vpop.f32.mrb[0].mxu1  ;;  %v1464_v35 = vpop.f32.mrb[1].mxu0 }
 0x12e   : > { %v1465_v36 = vadd.f32 %v1464_v35, %v1463_v33  ;;  %v1528_v37 = vpop.f32.mrb[1].mxu1  ;;  %v1466_v38 = vpop.f32.mrb[2].mxu0 }
 0x12f   : > { %v1529_v39 = vadd.f32 %v1528_v37, %v1527_v34  ;;  %v1530_v40 = vpop.f32.mrb[2].mxu1  ;;  %v1467_v41 = vpop.f32.mrb[3].mxu0  ;;  %v409_v37 = vld [vmem:[#allocation2 + $0x38] sm:$0xff] }
 0x130   : > { %v1468_v43 = vadd.f32 %v1467_v41, %v1466_v38  ;;  %v1531_v44 = vpop.f32.mrb[3].mxu1 }
 0x131   : > { %v998_v45 = vadd.f32 %v1529_v39, %v1465_v36  ;;  %v1532_v46 = vadd.f32 %v1531_v44, %v1530_v40 }
 0x133   : > { %v1060_v48 = vadd.f32 %v998_v45, %v402_v42  ;;  %v1001_v49 = vadd.f32 %v1532_v46, %v1468_v43 }
 0x134   : > { %v1469_v50 = vpop.f32.mrb[4].mxu0 }
 0x135   : > { %1076 = vst [vmem:[#allocation2] sm:$0xff] %v1060_v48  ;;  %v1061_v51 = vadd.f32 %v1001_v49, %v403_v47  ;;  %v1533_v52 = vpop.f32.mrb[4].mxu1  ;;  %v1470_v53 = vpop.f32.mrb[5].mxu0 }
 0x136   : > { %v1471_v54 = vadd.f32 %v1470_v53, %v1469_v50  ;;  %v1534_v55 = vpop.f32.mrb[5].mxu1  ;;  %v1472_v56 = vpop.f32.mrb[6].mxu0  ;;  %v410_v50 = vld [vmem:[#allocation2 + $0x40] sm:$0xff] }
 0x137   : > { %1077 = vst [vmem:[#allocation2 + $0x8] sm:$0xff] %v1061_v51  ;;  %v1535_v57 = vadd.f32 %v1534_v55, %v1533_v52  ;;  %v1536_v58 = vpop.f32.mrb[6].mxu1  ;;  %v1473_v59 = vpop.f32.mrb[7].mxu0  ;;  %v411_v55 = vld [vmem:[#allocation2 + $0x48] sm:$0xff] }
 0x138   : > { %v1474_v61 = vadd.f32 %v1473_v59, %v1472_v56  ;;  %v1537_v62 = vpop.f32.mrb[7].mxu1 }
 0x139   : > { %v1006_v63 = vadd.f32 %v1535_v57, %v1471_v54  ;;  %v1538_v0 = vadd.f32 %v1537_v62, %v1536_v58 }
 0x13b   : > { %v1062_v2 = vadd.f32 %v1006_v63, %v404_v60  ;;  %v1009_v3 = vadd.f32 %v1538_v0, %v1474_v61 }
 0x13c   : > { %v1475_v4 = vpop.f32.mrb[8].mxu0 }
 0x13d   : > { %1078 = vst [vmem:[#allocation2 + $0x10] sm:$0xff] %v1062_v2  ;;  %v1063_v5 = vadd.f32 %v1009_v3, %v405_v1  ;;  %v1539_v6 = vpop.f32.mrb[8].mxu1  ;;  %v1476_v7 = vpop.f32.mrb[9].mxu0 }
 0x13e   : > { %v1477_v8 = vadd.f32 %v1476_v7, %v1475_v4  ;;  %v1540_v9 = vpop.f32.mrb[9].mxu1  ;;  %v1478_v10 = vpop.f32.mrb[10].mxu0  ;;  %v412_v4 = vld [vmem:[#allocation2 + $0x50] sm:$0xff] }
 0x13f   : > { %1079 = vst [vmem:[#allocation2 + $0x18] sm:$0xff] %v1063_v5  ;;  %v1541_v11 = vadd.f32 %v1540_v9, %v1539_v6  ;;  %v1542_v12 = vpop.f32.mrb[10].mxu1  ;;  %v1479_v13 = vpop.f32.mrb[11].mxu0  ;;  %v413_v9 = vld [vmem:[#allocation2 + $0x58] sm:$0xff] }
 0x140   : > { %v1480_v15 = vadd.f32 %v1479_v13, %v1478_v10  ;;  %v1543_v16 = vpop.f32.mrb[11].mxu1 }
 0x141   : > { %v1014_v17 = vadd.f32 %v1541_v11, %v1477_v8  ;;  %v1544_v18 = vadd.f32 %v1543_v16, %v1542_v12 }
 0x143   : > { %v1064_v20 = vadd.f32 %v1014_v17, %v406_v14  ;;  %v1017_v21 = vadd.f32 %v1544_v18, %v1480_v15 }
 0x144   : > { %v1481_v22 = vpop.f32.mrb[12].mxu0 }
 0x145   : > { %1080 = vst [vmem:[#allocation2 + $0x20] sm:$0xff] %v1064_v20  ;;  %v1065_v23 = vadd.f32 %v1017_v21, %v407_v19  ;;  %v1545_v24 = vpop.f32.mrb[12].mxu1  ;;  %v1482_v25 = vpop.f32.mrb[13].mxu0 }
 0x146   : > { %v1483_v26 = vadd.f32 %v1482_v25, %v1481_v22  ;;  %v1546_v27 = vpop.f32.mrb[13].mxu1  ;;  %v1484_v28 = vpop.f32.mrb[14].mxu0  ;;  %v414_v22 = vld [vmem:[#allocation2 + $0x60] sm:$0xff] }
 0x147   : > { %1081 = vst [vmem:[#allocation2 + $0x28] sm:$0xff] %v1065_v23  ;;  %v1547_v29 = vadd.f32 %v1546_v27, %v1545_v24  ;;  %v1548_v30 = vpop.f32.mrb[14].mxu1  ;;  %v1485_v31 = vpop.f32.mrb[15].mxu0  ;;  %v415_v27 = vld [vmem:[#allocation2 + $0x68] sm:$0xff] }
 0x148   : > { %v1486_v33 = vadd.f32 %v1485_v31, %v1484_v28  ;;  %v1549_v34 = vpop.f32.mrb[15].mxu1 }
 0x149   : > { %v1022_v35 = vadd.f32 %v1547_v29, %v1483_v26  ;;  %v1550_v36 = vadd.f32 %v1549_v34, %v1548_v30 }
 0x14b   : > { %v1066_v38 = vadd.f32 %v1022_v35, %v408_v32  ;;  %v1025_v39 = vadd.f32 %v1550_v36, %v1486_v33 }
 0x14c   : > { %v1487_v40 = vpop.f32.mrb[16].mxu0 }
 0x14d   : > { %1082 = vst [vmem:[#allocation2 + $0x30] sm:$0xff] %v1066_v38  ;;  %v1067_v41 = vadd.f32 %v1025_v39, %v409_v37  ;;  %v1551_v42 = vpop.f32.mrb[16].mxu1  ;;  %v1488_v43 = vpop.f32.mrb[17].mxu0 }
 0x14e   : > { %v1489_v44 = vadd.f32 %v1488_v43, %v1487_v40  ;;  %v1552_v45 = vpop.f32.mrb[17].mxu1  ;;  %v1490_v46 = vpop.f32.mrb[18].mxu0  ;;  %v416_v40 = vld [vmem:[#allocation2 + $0x70] sm:$0xff] }
 0x14f   : > { %1083 = vst [vmem:[#allocation2 + $0x38] sm:$0xff] %v1067_v41  ;;  %v1553_v47 = vadd.f32 %v1552_v45, %v1551_v42  ;;  %v1554_v48 = vpop.f32.mrb[18].mxu1  ;;  %v1491_v49 = vpop.f32.mrb[19].mxu0  ;;  %v417_v45 = vld [vmem:[#allocation2 + $0x78] sm:$0xff] }
 0x150   : > { %v1492_v51 = vadd.f32 %v1491_v49, %v1490_v46  ;;  %v1555_v52 = vpop.f32.mrb[19].mxu1  ;;  %v1096_v49 = vld [vmem:[#allocation2] sm:$0xff] (!%p1439_p11) }
 0x151   : > { %v1030_v53 = vadd.f32 %v1553_v47, %v1489_v44  ;;  %v1556_v54 = vadd.f32 %v1555_v52, %v1554_v48 }
 0x153   : > { %v1068_v56 = vadd.f32 %v1030_v53, %v410_v50  ;;  %v1033_v57 = vadd.f32 %v1556_v54, %v1492_v51  ;;  %v1440_v50 = vld [vmem:[%s2021_s2] ss:$0 sm:$0xff] (!%p1439_p11)  ;;  %v1097_v51 = vld [vmem:[#allocation2 + $0x8] sm:$0xff] (!%p1439_p11)  ;;  %v1098_v54 = vld [vmem:[#allocation2 + $0x10] sm:$0xff] (!%p1439_p11) }
 0x154   : > { %v1493_v58 = vpop.f32.mrb[20].mxu0  ;;  %v1119_v52 = vadd.f32 (!%p1439_p11), %v1440_v50, %v1096_v49  ;;  %v1120_v53 = vadd.f32 (!%p1439_p11), %v1440_v50, %v1097_v51 }
 0x155   : > { %1084 = vst [vmem:[#allocation2 + $0x40] sm:$0xff] %v1068_v56  ;;  %v1069_v59 = vadd.f32 %v1033_v57, %v411_v55  ;;  %v1557_v60 = vpop.f32.mrb[20].mxu1  ;;  %v1494_v61 = vpop.f32.mrb[21].mxu0  ;;  %v1099_v55 = vld [vmem:[#allocation2 + $0x18] sm:$0xff] (!%p1439_p11)  ;;  %v1100_v56 = vld [vmem:[#allocation2 + $0x20] sm:$0xff] (!%p1439_p11)  ;;  %v1121_v57 = vadd.f32 (!%p1439_p11), %v1440_v50, %v1098_v54 }
 0x156   : > { %v1495_v62 = vadd.f32 %v1494_v61, %v1493_v58  ;;  %v1558_v63 = vpop.f32.mrb[21].mxu1  ;;  %v1496_v0 = vpop.f32.mrb[22].mxu0  ;;  %v1122_v58 = vadd.f32 (!%p1439_p11), %v1440_v50, %v1099_v55  ;;  %v1102_v61 = vld [vmem:[#allocation2 + $0x30] sm:$0xff] (!%p1439_p11)  ;;  %1135 = vst [vmem:[%s2022_s3] sm:$0xff] (!%p1439_p11), %v1119_v52  ;;  %1136 = vst [vmem:[%s2022_s3 + $0x8] sm:$0xff] (!%p1439_p11), %v1120_v53 }
 0x157   : > { %1085 = vst [vmem:[#allocation2 + $0x48] sm:$0xff] %v1069_v59  ;;  %v1559_v1 = vadd.f32 %v1558_v63, %v1557_v60  ;;  %v1560_v2 = vpop.f32.mrb[22].mxu1  ;;  %v1497_v3 = vpop.f32.mrb[23].mxu0  ;;  %v1123_v59 = vadd.f32 (!%p1439_p11), %v1440_v50, %v1100_v56  ;;  %v1101_v60 = vld [vmem:[#allocation2 + $0x28] sm:$0xff] (!%p1439_p11)  ;;  %v1172_v63 = vmul.f32 (!%p1439_p11), %v1119_v52, %v1119_v52  ;;  %1137 = vst [vmem:[%s2022_s3 + $0x10] sm:$0xff] (!%p1439_p11), %v1121_v57 }
 0x158   : > { %v1498_v5 = vadd.f32 %v1497_v3, %v1496_v0  ;;  %v1561_v6 = vpop.f32.mrb[23].mxu1  ;;  %v1151_v0 = vadd.f32 (!%p1439_p11), %v1120_v53, %v1119_v52  ;;  %1138 = vst [vmem:[%s2022_s3 + $0x18] sm:$0xff] (!%p1439_p11), %v1122_v58 }
 0x159   : > { %v1038_v7 = vadd.f32 %v1559_v1, %v1495_v62  ;;  %v1562_v8 = vadd.f32 %v1561_v6, %v1560_v2  ;;  %v1103_v62 = vld [vmem:[#allocation2 + $0x38] sm:$0xff] (!%p1439_p11)  ;;  %v1173_v1 = vmul.f32 (!%p1439_p11), %v1120_v53, %v1120_v53  ;;  %v1124_v2 = vadd.f32 (!%p1439_p11), %v1440_v50, %v1101_v60  ;;  %1139 = vst [vmem:[%s2022_s3 + $0x20] sm:$0xff] (!%p1439_p11), %v1123_v59 }
 0x15a   : > { %v1174_v6 = vmul.f32 (!%p1439_p11), %v1121_v57, %v1121_v57 }
 0x15b   : > { %v1070_v10 = vadd.f32 %v1038_v7, %v412_v4  ;;  %v1041_v11 = vadd.f32 %v1562_v8, %v1498_v5  ;;  %v1125_v7 = vadd.f32 (!%p1439_p11), %v1440_v50, %v1102_v61  ;;  %1140 = vst [vmem:[%s2022_s3 + $0x28] sm:$0xff] (!%p1439_p11), %v1124_v2 }
 0x15c   : > { %v1499_v12 = vpop.f32.mrb[24].mxu0  ;;  %v1104_v3 = vld [vmem:[#allocation2 + $0x40] sm:$0xff] (!%p1439_p11) }
 0x15d   : > { %1086 = vst [vmem:[#allocation2 + $0x50] sm:$0xff] %v1070_v10  ;;  %v1071_v13 = vadd.f32 %v1041_v11, %v413_v9  ;;  %v1563_v14 = vpop.f32.mrb[24].mxu1  ;;  %v1500_v15 = vpop.f32.mrb[25].mxu0  ;;  %v1188_v9 = vadd.f32 (!%p1439_p11), %v1173_v1, %v1172_v63  ;;  %v1152_v10 = vadd.f32 (!%p1439_p11), %v1151_v0, %v1121_v57  ;;  %v1175_v11 = vmul.f32 (!%p1439_p11), %v1122_v58, %v1122_v58 }
 0x15e   : > { %v1501_v16 = vadd.f32 %v1500_v15, %v1499_v12  ;;  %v1564_v17 = vpop.f32.mrb[25].mxu1  ;;  %v1502_v18 = vpop.f32.mrb[26].mxu0  ;;  %v1105_v4 = vld [vmem:[#allocation2 + $0x48] sm:$0xff] (!%p1439_p11)  ;;  %v1126_v12 = vadd.f32 (!%p1439_p11), %v1440_v50, %v1103_v62  ;;  %1141 = vst [vmem:[%s2022_s3 + $0x30] sm:$0xff] (!%p1439_p11), %v1125_v7 }
 0x15f   : > { %1087 = vst [vmem:[#allocation2 + $0x58] sm:$0xff] %v1071_v13  ;;  %v1565_v19 = vadd.f32 %v1564_v17, %v1563_v14  ;;  %v1566_v20 = vpop.f32.mrb[26].mxu1  ;;  %v1503_v21 = vpop.f32.mrb[27].mxu0  ;;  %v1127_v14 = vadd.f32 (!%p1439_p11), %v1440_v50, %v1104_v3  ;;  %v1128_v15 = vadd.f32 (!%p1439_p11), %v1440_v50, %v1105_v4 }
 0x160   : > { %v1504_v23 = vadd.f32 %v1503_v21, %v1502_v18  ;;  %v1567_v24 = vpop.f32.mrb[27].mxu1  ;;  %v1189_v18 = vadd.f32 (!%p1439_p11), %v1188_v9, %v1174_v6  ;;  %1142 = vst [vmem:[%s2022_s3 + $0x38] sm:$0xff] (!%p1439_p11), %v1126_v12 }
 0x161   : > { %v1046_v25 = vadd.f32 %v1565_v19, %v1501_v16  ;;  %v1568_v26 = vadd.f32 %v1567_v24, %v1566_v20  ;;  %v1153_v19 = vadd.f32 (!%p1439_p11), %v1152_v10, %v1122_v58  ;;  %v1176_v20 = vmul.f32 (!%p1439_p11), %v1123_v59, %v1123_v59  ;;  %1143 = vst [vmem:[%s2022_s3 + $0x40] sm:$0xff] (!%p1439_p11), %v1127_v14 }
 0x162   : > { %1144 = vst [vmem:[%s2022_s3 + $0x48] sm:$0xff] (!%p1439_p11), %v1128_v15 }
 0x163   : > { %v1072_v28 = vadd.f32 %v1046_v25, %v414_v22  ;;  %v1049_v29 = vadd.f32 %v1568_v26, %v1504_v23  ;;  %v1190_v25 = vadd.f32 (!%p1439_p11), %v1189_v18, %v1175_v11  ;;  %v1154_v26 = vadd.f32 (!%p1439_p11), %v1153_v19, %v1123_v59 }
 0x164   : > { %v1505_v30 = vpop.f32.mrb[28].mxu0  ;;  %v1106_v5 = vld [vmem:[#allocation2 + $0x50] sm:$0xff] (!%p1439_p11) }
 0x165   : > { %1088 = vst [vmem:[#allocation2 + $0x60] sm:$0xff] %v1072_v28  ;;  %v1073_v31 = vadd.f32 %v1049_v29, %v415_v27  ;;  %v1569_v32 = vpop.f32.mrb[28].mxu1  ;;  %v1506_v33 = vpop.f32.mrb[29].mxu0  ;;  %v1129_v16 = vadd.f32 (!%p1439_p11), %v1440_v50, %v1106_v5  ;;  %v1177_v27 = vmul.f32 (!%p1439_p11), %v1124_v2, %v1124_v2 }
 0x166   : > { %v1507_v34 = vadd.f32 %v1506_v33, %v1505_v30  ;;  %v1570_v35 = vpop.f32.mrb[29].mxu1  ;;  %v1508_v36 = vpop.f32.mrb[30].mxu0  ;;  %v1107_v8 = vld [vmem:[#allocation2 + $0x58] sm:$0xff] (!%p1439_p11)  ;;  %v1178_v33 = vmul.f32 (!%p1439_p11), %v1125_v7, %v1125_v7 }
 0x167   : > { %1089 = vst [vmem:[#allocation2 + $0x68] sm:$0xff] %v1073_v31  ;;  %v1571_v37 = vadd.f32 %v1570_v35, %v1569_v32  ;;  %v1572_v38 = vpop.f32.mrb[30].mxu1  ;;  %v1509_v39 = vpop.f32.mrb[31].mxu0  ;;  %v1130_v21 = vadd.f32 (!%p1439_p11), %v1440_v50, %v1107_v8  ;;  %1145 = vst [vmem:[%s2022_s3 + $0x50] sm:$0xff] (!%p1439_p11), %v1129_v16  ;;  %v1191_v31 = vadd.f32 (!%p1439_p11), %v1190_v25, %v1176_v20 }
 0x168   : > { %v1510_v41 = vadd.f32 %v1509_v39, %v1508_v36  ;;  %v1573_v42 = vpop.f32.mrb[31].mxu1  ;;  %v1155_v32 = vadd.f32 (!%p1439_p11), %v1154_v26, %v1124_v2  ;;  %v1179_v36 = vmul.f32 (!%p1439_p11), %v1126_v12, %v1126_v12  ;;  %v1180_v39 = vmul.f32 (!%p1439_p11), %v1127_v14, %v1127_v14 }
 0x169   : > { %v1054_v43 = vadd.f32 %v1571_v37, %v1507_v34  ;;  %v1574_v44 = vadd.f32 %v1573_v42, %v1572_v38  ;;  %1095 = sbr.rel (%p1439_p11) target bundleno = 400 (0x190), region = 63  ;;  %1146 = vst [vmem:[%s2022_s3 + $0x58] sm:$0xff] (!%p1439_p11), %v1130_v21  ;;  %v1192_v34 = vadd.f32 (!%p1439_p11), %v1191_v31, %v1177_v27  ;;  %v1181_v42 = vmul.f32 (!%p1439_p11), %v1128_v15, %v1128_v15 }
 0x16a   : > { %v1156_v35 = vadd.f32 (!%p1439_p11), %v1155_v32, %v1125_v7 }
 0x16b   : > { %v1074_v46 = vadd.f32 %v1054_v43, %v416_v40  ;;  %v1057_v47 = vadd.f32 %v1574_v44, %v1510_v41  ;;  %v1193_v37 = vadd.f32 (!%p1439_p11), %v1192_v34, %v1178_v33 }
 0x16c   : > { %v1108_v13 = vld [vmem:[#allocation2 + $0x60] sm:$0xff] (!%p1439_p11)  ;;  %v1157_v38 = vadd.f32 (!%p1439_p11), %v1156_v35, %v1126_v12 }
 0x16d   : > { %1090 = vst [vmem:[#allocation2 + $0x70] sm:$0xff] %v1074_v46  ;;  %v1075_v48 = vadd.f32 %v1057_v47, %v417_v45  ;;  %v1131_v24 = vadd.f32 (!%p1439_p11), %v1440_v50, %v1108_v13  ;;  %v1194_v40 = vadd.f32 (!%p1439_p11), %v1193_v37, %v1179_v36  ;;  %v1182_v45 = vmul.f32 (!%p1439_p11), %v1129_v16, %v1129_v16 }
 0x16e   : > { %v1109_v17 = vld [vmem:[#allocation2 + $0x68] sm:$0xff] (!%p1439_p11)  ;;  %v1158_v41 = vadd.f32 (!%p1439_p11), %v1157_v38, %v1127_v14 }
 0x16f   : > { %1091 = vst [vmem:[#allocation2 + $0x78] sm:$0xff] %v1075_v48  ;;  %v1132_v28 = vadd.f32 (!%p1439_p11), %v1440_v50, %v1109_v17  ;;  %1147 = vst [vmem:[%s2022_s3 + $0x60] sm:$0xff] (!%p1439_p11), %v1131_v24  ;;  %v1195_v43 = vadd.f32 (!%p1439_p11), %v1194_v40, %v1180_v39  ;;  %v1183_v48 = vmul.f32 (!%p1439_p11), %v1130_v21, %v1130_v21 }
 0x170   : > { %v1159_v44 = vadd.f32 %v1158_v41, %v1128_v15  ;;  %v1184_v51 = vmul.f32 %v1131_v24, %v1131_v24 }
 0x171   : > { %1148 = vst [vmem:[%s2022_s3 + $0x68] sm:$0xff] %v1132_v28  ;;  %v1196_v46 = vadd.f32 %v1195_v43, %v1181_v42  ;;  %v1185_v54 = vmul.f32 %v1132_v28, %v1132_v28 }
 0x172   : > { %v1160_v47 = vadd.f32 %v1159_v44, %v1129_v16 }
 0x173   : > { %v1197_v49 = vadd.f32 %v1196_v46, %v1182_v45 }
 0x174   : > { %v1110_v22 = vld [vmem:[#allocation2 + $0x70] sm:$0xff] }
 0x175   : > { %v1133_v29 = vadd.f32 %v1440_v50, %v1110_v22  ;;  %v1198_v52 = vadd.f32 %v1197_v49, %v1183_v48 }
 0x176   : > { %v1111_v23 = vld [vmem:[#allocation2 + $0x78] sm:$0xff] }
 0x177   : > { %v1134_v30 = vadd.f32 %v1440_v50, %v1111_v23  ;;  %1149 = vst [vmem:[%s2022_s3 + $0x70] sm:$0xff] %v1133_v29  ;;  %v1161_v50 = vadd.f32 %v1160_v47, %v1130_v21  ;;  %v1199_v55 = vadd.f32 %v1198_v52, %v1184_v51  ;;  %v1186_v57 = vmul.f32 %v1133_v29, %v1133_v29 }
 0x179   : > { %1150 = vst [vmem:[%s2022_s3 + $0x78] sm:$0xff] %v1134_v30  ;;  %v1162_v53 = vadd.f32 %v1161_v50, %v1131_v24  ;;  %v1200_v58 = vadd.f32 %v1199_v55, %v1185_v54  ;;  %v1187_v60 = vmul.f32 %v1134_v30, %v1134_v30 }
 0x17b   : > { %v1163_v56 = vadd.f32 %v1162_v53, %v1132_v28  ;;  %v1201_v61 = vadd.f32 %v1200_v58, %v1186_v57 }
 0x17d   : > { %v1164_v59 = vadd.f32 %v1163_v56, %v1133_v29  ;;  %v1202_v0 = vadd.f32 %v1201_v61, %v1187_v60 }
 0x17f   : > { %v1165_v62 = vadd.f32 %v1164_v59, %v1134_v30  ;;  %v1203_v2 = vrot.slane %v1202_v0, 4 }
 0x181   : > { %v1166_v63 = vrot.slane %v1165_v62, 4  ;;  %v1204_v4 = vadd.f32 %v1203_v2, %v1202_v0 }
 0x183   : > { %v1167_v1 = vadd.f32 %v1166_v63, %v1165_v62  ;;  %v1205_v6 = vrot.slane %v1204_v4, 2 }
 0x185   : > { %v1168_v3 = vrot.slane %v1167_v1, 2  ;;  %v1206_v8 = vadd.f32 %v1205_v6, %v1204_v4 }
 0x187   : > { %v1169_v5 = vadd.f32 %v1168_v3, %v1167_v1  ;;  %v1207_v10 = vrot.slane %v1206_v8, 1 }
 0x189   : > { %v1170_v7 = vrot.slane %v1169_v5, 1  ;;  %v1208_v11 = vadd.f32 %v1207_v10, %v1206_v8 }
 0x18b   : > { %v1171_v9 = vadd.f32 %v1170_v7, %v1169_v5 }
 0x18d   : > { %v1210_v12 = vsel %vm1209_vm0, %v1171_v9, %v1208_v11 }
 0x18e   : > { %v1212_v13 = vsel %vm1211_vm1, %v1210_v12, 0.0 }
 0x18f   : > { %1213 = vst [vmem:[%s2023_s4] sm:$0xff] %v1212_v13 }
 0x190 PF: > { %s15_s19 = sadd.s32 1, %s1734_s19   ;;  %s2024_s15 = smov %s1722_s16 }
 0x191   : > { %p12_p12 = scmp.ge.s32.totalorder %s15_s19, 4   ;;  %s2025_s16 = smov %s1797_s23 }
 0x192   : > { %s2026_s17 = smov %s1730_s18  ;;  %s2027_s18 = smov %s2029_s20 }
 0x193   :  { %14 = sbr.rel (!%p12_p12) target bundleno = 3 (0x3), region = 116 }

// kernel: patch_discriminator_forward.10
= control target key start
LH: loop header
LB: loop body
LE: loop exit
PB: predicated region body
PF: predicated region fallthrough
CT: control target
= control target key end

     0   :  { %s305_s0 = inlined_call_operand.vmem [shape: f32[128,128], index: 0, kind: input, shape index: {}]   ;;  %s306_s1 = inlined_call_operand.vmem [shape: f32[1,128], index: 1, kind: input, shape index: {}]   ;;  %s307_s2 = inlined_call_operand.vmem [shape: f32[1,128], index: 2, kind: input, shape index: {}]   ;;  %s308_s3 = inlined_call_operand.vmem [shape: f32[128,128], index: 3, kind: output, shape index: {}]  }
   0x1   :  { %v14_v0 = vld [vmem:[%s305_s0] sm:$0xff]  ;;  %v15_v4 = vld [vmem:[%s305_s0 + $0x8] sm:$0xff]  ;;  %v16_v5 = vld [vmem:[%s305_s0 + $0x10] sm:$0xff] }
   0x2   :  { %v172_v1 = vld [vmem:[%s306_s1] ss:$0 sm:$0xff]  ;;  %v17_v6 = vld [vmem:[%s305_s0 + $0x18] sm:$0xff]  ;;  %v19_v11 = vld [vmem:[%s305_s0 + $0x28] sm:$0xff] }
   0x3   :  { %v177_v2 = vld [vmem:[%s307_s2] ss:$0 sm:$0xff]  ;;  %v37_v3 = vmul.f32 %v172_v1, %v14_v0  ;;  %v38_v7 = vmul.f32 %v172_v1, %v15_v4  ;;  %v39_v8 = vmul.f32 %v172_v1, %v16_v5  ;;  %v40_v9 = vmul.f32 %v172_v1, %v17_v6  ;;  %v20_v12 = vld [vmem:[%s305_s0 + $0x30] sm:$0xff]  ;;  %v21_v17 = vld [vmem:[%s305_s0 + $0x38] sm:$0xff] }
   0x4   :  { %v18_v10 = vld [vmem:[%s305_s0 + $0x20] sm:$0xff]  ;;  %v42_v15 = vmul.f32 %v172_v1, %v19_v11  ;;  %v43_v16 = vmul.f32 %v172_v1, %v20_v12  ;;  %v44_v21 = vmul.f32 %v172_v1, %v21_v17  ;;  %v23_v30 = vld [vmem:[%s305_s0 + $0x48] sm:$0xff]  ;;  %v24_v31 = vld [vmem:[%s305_s0 + $0x50] sm:$0xff] }
   0x5   :  { %v60_v13 = vadd.f32 %v177_v2, %v37_v3  ;;  %v41_v14 = vmul.f32 %v172_v1, %v18_v10  ;;  %v61_v18 = vadd.f32 %v177_v2, %v38_v7  ;;  %v62_v19 = vadd.f32 %v177_v2, %v39_v8  ;;  %v22_v25 = vld [vmem:[%s305_s0 + $0x40] sm:$0xff]  ;;  %v25_v43 = vld [vmem:[%s305_s0 + $0x58] sm:$0xff]  ;;  %v27_v45 = vld [vmem:[%s305_s0 + $0x68] sm:$0xff] }
   0x6   :  { %v63_v20 = vadd.f32 %v177_v2, %v40_v9  ;;  %v65_v24 = vadd.f32 %v177_v2, %v42_v15  ;;  %v66_v37 = vadd.f32 %v177_v2, %v43_v16  ;;  %v67_v38 = vadd.f32 %v177_v2, %v44_v21  ;;  %v26_v44 = vld [vmem:[%s305_s0 + $0x60] sm:$0xff]  ;;  %v28_v56 = vld [vmem:[%s305_s0 + $0x70] sm:$0xff]  ;;  %v29_v4 = vld [vmem:[%s305_s0 + $0x78] sm:$0xff] }
   0x7   :  { %vm76_vm0 = vcmp.gt.f32.partialorder %v60_v13, 0.0  ;;  %v92_v22 = vmul.f32 0.2, %v60_v13  ;;  %v64_v23 = vadd.f32 %v177_v2, %v41_v14  ;;  %vm77_vm1 = vcmp.gt.f32.partialorder %v61_v18, 0.0 }
   0x8   :  { %v93_v26 = vmul.f32 0.2, %v61_v18  ;;  %vm78_vm2 = vcmp.gt.f32.partialorder %v62_v19, 0.0  ;;  %v94_v27 = vmul.f32 0.2, %v62_v19  ;;  %vm79_vm3 = vcmp.gt.f32.partialorder %v63_v20, 0.0 }
   0x9   :  { %v108_v28 = vsel %vm76_vm0, %v60_v13, %v92_v22  ;;  %v95_v29 = vmul.f32 0.2, %v63_v20  ;;  %vm80_vm4 = vcmp.gt.f32.partialorder %v64_v23, 0.0  ;;  %v96_v34 = vmul.f32 0.2, %v64_v23 }
   0xa   :  { %124 = vst [vmem:[%s308_s3] sm:$0xff] %v108_v28  ;;  %v109_v32 = vsel %vm77_vm1, %v61_v18, %v93_v26  ;;  %v110_v33 = vsel %vm78_vm2, %v62_v19, %v94_v27  ;;  %vm81_vm5 = vcmp.gt.f32.partialorder %v65_v24, 0.0  ;;  %v97_v36 = vmul.f32 0.2, %v65_v24 }
   0xb   :  { %125 = vst [vmem:[%s308_s3 + $0x8] sm:$0xff] %v109_v32  ;;  %126 = vst [vmem:[%s308_s3 + $0x10] sm:$0xff] %v110_v33  ;;  %v111_v35 = vsel %vm79_vm3, %v63_v20, %v95_v29  ;;  %v112_v39 = vsel %vm80_vm4, %v64_v23, %v96_v34  ;;  %v45_v40 = vmul.f32 %v172_v1, %v22_v25  ;;  %vm82_vm6 = vcmp.gt.f32.partialorder %v66_v37, 0.0 }
   0xc   :  { %127 = vst [vmem:[%s308_s3 + $0x18] sm:$0xff] %v111_v35  ;;  %v46_v41 = vmul.f32 %v172_v1, %v23_v30  ;;  %v47_v42 = vmul.f32 %v172_v1, %v24_v31  ;;  %128 = vst [vmem:[%s308_s3 + $0x20] sm:$0xff] %v112_v39  ;;  %v113_v46 = vsel %vm81_vm5, %v65_v24, %v97_v36  ;;  %v98_v47 = vmul.f32 0.2, %v66_v37 }
   0xd   :  { %vm83_vm7 = vcmp.gt.f32.partialorder %v67_v38, 0.0  ;;  %129 = vst [vmem:[%s308_s3 + $0x28] sm:$0xff] %v113_v46  ;;  %v99_v48 = vmul.f32 0.2, %v67_v38  ;;  %v68_v49 = vadd.f32 %v177_v2, %v45_v40  ;;  %v48_v53 = vmul.f32 %v172_v1, %v25_v43 }
   0xe   :  { %v69_v50 = vadd.f32 %v177_v2, %v46_v41  ;;  %v70_v51 = vadd.f32 %v177_v2, %v47_v42  ;;  %v114_v52 = vsel %vm82_vm6, %v66_v37, %v98_v47  ;;  %v49_v54 = vmul.f32 %v172_v1, %v26_v44 }
   0xf   :  { %v50_v55 = vmul.f32 %v172_v1, %v27_v45  ;;  %130 = vst [vmem:[%s308_s3 + $0x30] sm:$0xff] %v114_v52  ;;  %v115_v57 = vsel %vm83_vm7, %v67_v38, %v99_v48  ;;  %vm84_vm8 = vcmp.gt.f32.partialorder %v68_v49, 0.0  ;;  %v100_v58 = vmul.f32 0.2, %v68_v49 }
  0x10   :  { %vm85_vm9 = vcmp.gt.f32.partialorder %v69_v50, 0.0  ;;  %131 = vst [vmem:[%s308_s3 + $0x38] sm:$0xff] %v115_v57  ;;  %v101_v59 = vmul.f32 0.2, %v69_v50  ;;  %vm86_vm10 = vcmp.gt.f32.partialorder %v70_v51, 0.0  ;;  %v71_v61 = vadd.f32 %v177_v2, %v48_v53 }
  0x11   :  { %v102_v60 = vmul.f32 0.2, %v70_v51  ;;  %v116_v62 = vsel %vm84_vm8, %v68_v49, %v100_v58  ;;  %v72_v63 = vadd.f32 %v177_v2, %v49_v54  ;;  %v73_v0 = vadd.f32 %v177_v2, %v50_v55 }
  0x12   :  { %v51_v3 = vmul.f32 %v172_v1, %v28_v56  ;;  %132 = vst [vmem:[%s308_s3 + $0x40] sm:$0xff] %v116_v62  ;;  %v117_v5 = vsel %vm85_vm9, %v69_v50, %v101_v59  ;;  %vm87_vm11 = vcmp.gt.f32.partialorder %v71_v61, 0.0  ;;  %v103_v7 = vmul.f32 0.2, %v71_v61 }
  0x13   :  { %v118_v6 = vsel %vm86_vm10, %v70_v51, %v102_v60  ;;  %133 = vst [vmem:[%s308_s3 + $0x48] sm:$0xff] %v117_v5  ;;  %vm88_vm12 = vcmp.gt.f32.partialorder %v72_v63, 0.0  ;;  %v104_v8 = vmul.f32 0.2, %v72_v63  ;;  %vm89_vm13 = vcmp.gt.f32.partialorder %v73_v0, 0.0 }
  0x14   :  { %134 = vst [vmem:[%s308_s3 + $0x50] sm:$0xff] %v118_v6  ;;  %v105_v9 = vmul.f32 0.2, %v73_v0  ;;  %v119_v10 = vsel %vm87_vm11, %v71_v61, %v103_v7  ;;  %v74_v11 = vadd.f32 %v177_v2, %v51_v3  ;;  %v52_v12 = vmul.f32 %v172_v1, %v29_v4 }
  0x15   :  { %135 = vst [vmem:[%s308_s3 + $0x58] sm:$0xff] %v119_v10  ;;  %v120_v13 = vsel %vm88_vm12, %v72_v63, %v104_v8 }
  0x16   :  { %v121_v14 = vsel %vm89_vm13, %v73_v0, %v105_v9  ;;  %136 = vst [vmem:[%s308_s3 + $0x60] sm:$0xff] %v120_v13  ;;  %vm90_vm14 = vcmp.gt.f32.partialorder %v74_v11, 0.0  ;;  %v106_v15 = vmul.f32 0.2, %v74_v11  ;;  %v75_v16 = vadd.f32 %v177_v2, %v52_v12 }
  0x17   :  { %137 = vst [vmem:[%s308_s3 + $0x68] sm:$0xff] %v121_v14 }
  0x18   :  { %v122_v17 = vsel %vm90_vm14, %v74_v11, %v106_v15  ;;  %vm91_vm15 = vcmp.gt.f32.partialorder %v75_v16, 0.0  ;;  %v107_v1 = vmul.f32 0.2, %v75_v16 }
  0x19   :  { %138 = vst [vmem:[%s308_s3 + $0x70] sm:$0xff] %v122_v17 }
  0x1a   :  { %v123_v18 = vsel %vm91_vm15, %v75_v16, %v107_v1 }
  0x1b   :  { %139 = vst [vmem:[%s308_s3 + $0x78] sm:$0xff] %v123_v18 }

// kernel: patch_discriminator_forward.11
= control target key start
LH: loop header
LB: loop body
LE: loop exit
PB: predicated region body
PF: predicated region fallthrough
CT: control target
= control target key end

     0   :  { %s1509_s15 = smov 0   ;;  %s1511_s16 = smov 0   ;;  %s1685_s0 = inlined_call_operand.vmem [shape: bf16[32,2048], index: 0, kind: input, shape index: {}]   ;;  %s1686_s1 = inlined_call_operand.vmem [shape: bf16[2048,256], index: 1, kind: input, shape index: {}]   ;;  %s1687_s2 = inlined_call_operand.vmem [shape: f32[1,256], index: 2, kind: input, shape index: {}]   ;;  %s1688_s3 = inlined_call_operand.vmem [shape: f32[32,256], index: 3, kind: output, shape index: {0}]   ;;  %s1689_s4 = inlined_call_operand.vmem [shape: f32[8,256], index: 4, kind: output, shape index: {1}]  }
   0x1   :  { %s1513_s17 = smov 0   ;;  %s1515_s18 = smov 0  }
   0x2   :  { %s1517_s19 = smov 0  }
   0x3 LB: > { %s27_s20 = sadd.s32 1, %s1477_s18  ;;  %p50_p1 = scmp.ne.s32.totalorder %s1469_s16, %s1465_s15  ;;  %s1481_s19 = sphi %s1517_s19, %s15_s19   ;;  %s1477_s18 = sphi %s1515_s18, %s1693_s18   ;;  %s1473_s17 = sphi %s1513_s17, %s1692_s17   ;;  %s1469_s16 = sphi %s1511_s16, %s1691_s16   ;;  %s1465_s15 = sphi %s1509_s15, %s1690_s15  }
   0x4   : > { %p28_p0 = scmp.ge.s32.totalorder %s27_s20, 4  ;;  %p51_p2 = scmp.eq.s32.totalorder %s1481_s19, 0 }
   0x5   : > { %s43_s22 = sadd.s32 1, %s1469_s16  ;;  %p1195_p5 = scmp.ge.s32.totalorder %s1481_s19, 4 }
   0x6   : > { %s1695_s20 = smov (%p28_p0, %s27_s20), 0  ;;  %p52_p3 = por %p51_p2, %p50_p1 }
   0x7   : > { %s39_s21 = ssub.s32 %s1477_s18, %s1695_s20  ;;  %194 = sbr.rel (%p1195_p5) target bundleno = 22 (0x16), region = 20 }
   0x8   : > { %p41_p4 = scmp.eq.s32.totalorder %s39_s21, 0 }
   0xa   : > { %s1544_s23 = scalar_select %p41_p4, %s1469_s16, %s43_s22  }
   0xe   : > { %197 = sbr.rel (!%p52_p3) target bundleno = 22 (0x16), region = 24  ;;  %s199_s24 = sand.u32 (%p52_p3), 1, %s1469_s16  }
   0xf   : > { %s1284_s25 = sshll.u32 (%p52_p3), %s1477_s18, 4  ;;  %s1196_s26 = sshll.u32 (%p52_p3), %s199_s24, 6 }
  0x10   : > { %s207_s29 = scalar_lea.vmem (%p52_p3), %s1685_s0, %s1284_s25  ;;  %s201_s30 = scalar_lea.vmem (%p52_p3), [#allocation3], %s1196_s26 }
  0x11   : > { %v220_v0 = vld [vmem:[%s207_s29] sm:$0xff] (%p52_p3)  ;;  %v222_v1 = vld [vmem:[%s207_s29 + $0x8] sm:$0xff] (%p52_p3) }
  0x12   : > { %v224_v2 = vld [vmem:[%s207_s29 + $0x40] sm:$0xff] (%p52_p3)  ;;  %221 = vst [vmem:[%s201_s30] sm:$0xff] (%p52_p3), %v220_v0  ;;  %223 = vst [vmem:[%s201_s30 + $0x8] sm:$0xff] (%p52_p3), %v222_v1  ;;  %v226_v3 = vld [vmem:[%s207_s29 + $0x48] sm:$0xff] (%p52_p3) }
  0x13   : > { %225 = vst [vmem:[%s201_s30 + $0x10] sm:$0xff] (%p52_p3), %v224_v2  ;;  %v228_v4 = vld [vmem:[%s207_s29 + $0x80] sm:$0xff] (%p52_p3)  ;;  %v230_v5 = vld [vmem:[%s207_s29 + $0x88] sm:$0xff] (%p52_p3)  ;;  %227 = vst [vmem:[%s201_s30 + $0x18] sm:$0xff] (%p52_p3), %v226_v3 }
  0x14   : > { %229 = vst [vmem:[%s201_s30 + $0x20] sm:$0xff] (%p52_p3), %v228_v4  ;;  %231 = vst [vmem:[%s201_s30 + $0x28] sm:$0xff] (%p52_p3), %v230_v5  ;;  %v232_v6 = vld [vmem:[%s207_s29 + $0xc0] sm:$0xff] (%p52_p3)  ;;  %v234_v7 = vld [vmem:[%s207_s29 + $0xc8] sm:$0xff] (%p52_p3) }
  0x15   : > { %233 = vst [vmem:[%s201_s30 + $0x30] sm:$0xff] %v232_v6  ;;  %235 = vst [vmem:[%s201_s30 + $0x38] sm:$0xff] %v234_v7 }
  0x16 PF: > { %p1199_p6 = scmp.ge.s32.totalorder %s1481_s19, 1  ;;  %p255_p7 = scmp.lt.s32.totalorder %s1481_s19, 5 }
  0x18   : > { %p256_p8 = pnand %p1199_p6, %p255_p7 }
  0x19   : > { %s262_s5 = sand.u32 (!%p256_p8), 1, %s1465_s15   ;;  %s1201_s6 = sshll.u32 (!%p256_p8), %s1473_s17, 6 }
  0x1a   : > { %259 = sbr.rel (%p256_p8) target bundleno = 362 (0x16a), region = 51  ;;  %s1200_s7 = sshll.u32 (!%p256_p8), %s262_s5, 6 }
  0x1b   : > { %p319_p9 = scmp.lt.s32.totalorder (!%p256_p8), %s1201_s6, 255  ;;  %s1561_s12 = scalar_lea.vmem (!%p256_p8), [#allocation3], %s1200_s7 }
  0x1c   : > { %p1204_p10 = scmp.ne.s32.totalorder (!%p256_p8), %s1473_s17, 0 }
  0x21   : > { %s1697_s6 = smov (!%p319_p9, %s1201_s6), 255  ;;  %359 = sbr.rel (%p1204_p10) target bundleno = 40 (0x28), region = 59 }
  0x22   : > { %s1285_s8 = sshll.u32 %s1697_s6, 3  ;;  %v1483_v8 = vmov (!%p1204_p10), 0.0  }
  0x23   : > { %s1559_s11 = scalar_lea.vmem %s1686_s1, %s1285_s8  ;;  %360 = vst [vmem:[#allocation2] sm:$0xff] (!%p1204_p10), %v1483_v8  ;;  %361 = vst [vmem:[#allocation2 + $0x8] sm:$0xff] (!%p1204_p10), %v1483_v8 }
  0x24   : > { %362 = vst [vmem:[#allocation2 + $0x10] sm:$0xff] (!%p1204_p10), %v1483_v8  ;;  %363 = vst [vmem:[#allocation2 + $0x18] sm:$0xff] (!%p1204_p10), %v1483_v8 }
  0x25   : > { %364 = vst [vmem:[#allocation2 + $0x20] sm:$0xff] (!%p1204_p10), %v1483_v8  ;;  %365 = vst [vmem:[#allocation2 + $0x28] sm:$0xff] (!%p1204_p10), %v1483_v8 }
  0x26   : > { %366 = vst [vmem:[#allocation2 + $0x30] sm:$0xff] (!%p1204_p10), %v1483_v8  ;;  %367 = vst [vmem:[#allocation2 + $0x38] sm:$0xff] (!%p1204_p10), %v1483_v8 }
  0x28 PF: > { %v1335_v9 = vld [vmem:[%s1559_s11 + $0x4] ss:$8 sps:$4 sm:$0xff]   ;;  %v1339_v11 = vld [vmem:[%s1559_s11] ss:$8 sps:$4 sm:$0xff]   ;;  %v1341_v13 = vld [vmem:[%s1559_s11 + $0x14] ss:$8 sps:$4 sm:$0xff]  }
  0x29   : > { %v1337_v10 = vld [vmem:[%s1559_s11 + $0x104] ss:$8 sps:$4 sm:$0xff]   ;;  %808 = vmatprep.subr.bf16.mxu1 %v1335_v9  ;;  %v1340_v12 = vld [vmem:[%s1559_s11 + $0x100] ss:$8 sps:$4 sm:$0xff]   ;;  %v1343_v14 = vld [vmem:[%s1559_s11 + $0x114] ss:$8 sps:$4 sm:$0xff]  }
  0x2a   : > { %861 = vmatprep.subr.bf16.mxu0 %v1337_v10  ;;  %809 = vmatpush1.bf16.msra.mxu1 %v1339_v11  ;;  %v1345_v15 = vld [vmem:[%s1559_s11 + $0x10] ss:$8 sps:$4 sm:$0xff]   ;;  %v1347_v17 = vld [vmem:[%s1559_s11 + $0x24] ss:$8 sps:$4 sm:$0xff]   ;;  %v1351_v19 = vld [vmem:[%s1559_s11 + $0x20] ss:$8 sps:$4 sm:$0xff]  }
  0x2b   : > { %862 = vmatpush1.bf16.msra.mxu0 %v1340_v12  ;;  %810 = vmatprep.subr.bf16.mxu1 %v1341_v13  ;;  %v1346_v16 = vld [vmem:[%s1559_s11 + $0x110] ss:$8 sps:$4 sm:$0xff]   ;;  %v1349_v18 = vld [vmem:[%s1559_s11 + $0x124] ss:$8 sps:$4 sm:$0xff]   ;;  %v1352_v20 = vld [vmem:[%s1559_s11 + $0x120] ss:$8 sps:$4 sm:$0xff]  }
  0x2c   : > { %863 = vmatprep.subr.bf16.mxu0 %v1343_v14  ;;  %v1353_v21 = vld [vmem:[%s1559_s11 + $0x34] ss:$8 sps:$4 sm:$0xff]   ;;  %v1357_v23 = vld [vmem:[%s1559_s11 + $0x30] ss:$8 sps:$4 sm:$0xff]   ;;  %v1359_v25 = vld [vmem:[%s1559_s11 + $0x44] ss:$8 sps:$4 sm:$0xff]  }
  0x2d   : > { %v1355_v22 = vld [vmem:[%s1559_s11 + $0x134] ss:$8 sps:$4 sm:$0xff]   ;;  %v1358_v24 = vld [vmem:[%s1559_s11 + $0x130] ss:$8 sps:$4 sm:$0xff]   ;;  %v1361_v26 = vld [vmem:[%s1559_s11 + $0x144] ss:$8 sps:$4 sm:$0xff]  }
  0x2e   : > { %811 = vmatpush1.bf16.msra.mxu1 %v1345_v15  ;;  %v1363_v27 = vld [vmem:[%s1559_s11 + $0x40] ss:$8 sps:$4 sm:$0xff]   ;;  %v1365_v29 = vld [vmem:[%s1559_s11 + $0x54] ss:$8 sps:$4 sm:$0xff]   ;;  %v1369_v31 = vld [vmem:[%s1559_s11 + $0x50] ss:$8 sps:$4 sm:$0xff]  }
  0x2f   : > { %864 = vmatpush1.bf16.msra.mxu0 %v1346_v16  ;;  %812 = vmatprep.subr.bf16.mxu1 %v1347_v17  ;;  %v1364_v28 = vld [vmem:[%s1559_s11 + $0x140] ss:$8 sps:$4 sm:$0xff]   ;;  %v1367_v30 = vld [vmem:[%s1559_s11 + $0x154] ss:$8 sps:$4 sm:$0xff]   ;;  %v1370_v32 = vld [vmem:[%s1559_s11 + $0x150] ss:$8 sps:$4 sm:$0xff]  }
  0x30   : > { %865 = vmatprep.subr.bf16.mxu0 %v1349_v18  ;;  %v1371_v33 = vld [vmem:[%s1559_s11 + $0x64] ss:$8 sps:$4 sm:$0xff]   ;;  %v1375_v35 = vld [vmem:[%s1559_s11 + $0x60] ss:$8 sps:$4 sm:$0xff]   ;;  %v1377_v37 = vld [vmem:[%s1559_s11 + $0x74] ss:$8 sps:$4 sm:$0xff]  }
  0x31   : > { %v1373_v34 = vld [vmem:[%s1559_s11 + $0x164] ss:$8 sps:$4 sm:$0xff]   ;;  %v1376_v36 = vld [vmem:[%s1559_s11 + $0x160] ss:$8 sps:$4 sm:$0xff]   ;;  %v1379_v38 = vld [vmem:[%s1559_s11 + $0x174] ss:$8 sps:$4 sm:$0xff]  }
  0x32   : > { %813 = vmatpush1.bf16.msra.mxu1 %v1351_v19  ;;  %v1381_v39 = vld [vmem:[%s1559_s11 + $0x70] ss:$8 sps:$4 sm:$0xff]   ;;  %v1383_v41 = vld [vmem:[%s1559_s11 + $0x84] ss:$8 sps:$4 sm:$0xff]   ;;  %v1387_v43 = vld [vmem:[%s1559_s11 + $0x80] ss:$8 sps:$4 sm:$0xff]  }
  0x33   : > { %866 = vmatpush1.bf16.msra.mxu0 %v1352_v20  ;;  %814 = vmatprep.subr.bf16.mxu1 %v1353_v21  ;;  %v1382_v40 = vld [vmem:[%s1559_s11 + $0x170] ss:$8 sps:$4 sm:$0xff]   ;;  %v1385_v42 = vld [vmem:[%s1559_s11 + $0x184] ss:$8 sps:$4 sm:$0xff]   ;;  %v1388_v44 = vld [vmem:[%s1559_s11 + $0x180] ss:$8 sps:$4 sm:$0xff]  }
  0x34   : > { %867 = vmatprep.subr.bf16.mxu0 %v1355_v22  ;;  %v1389_v45 = vld [vmem:[%s1559_s11 + $0x94] ss:$8 sps:$4 sm:$0xff]   ;;  %v1393_v47 = vld [vmem:[%s1559_s11 + $0x90] ss:$8 sps:$4 sm:$0xff]   ;;  %v1395_v49 = vld [vmem:[%s1559_s11 + $0xa4] ss:$8 sps:$4 sm:$0xff]  }
  0x35   : > { %v1391_v46 = vld [vmem:[%s1559_s11 + $0x194] ss:$8 sps:$4 sm:$0xff]   ;;  %v1394_v48 = vld [vmem:[%s1559_s11 + $0x190] ss:$8 sps:$4 sm:$0xff]   ;;  %v1397_v50 = vld [vmem:[%s1559_s11 + $0x1a4] ss:$8 sps:$4 sm:$0xff]  }
  0x36   : > { %815 = vmatpush1.bf16.msra.mxu1 %v1357_v23  ;;  %v1399_v51 = vld [vmem:[%s1559_s11 + $0xa0] ss:$8 sps:$4 sm:$0xff]   ;;  %v1401_v53 = vld [vmem:[%s1559_s11 + $0xb4] ss:$8 sps:$4 sm:$0xff]   ;;  %v1405_v55 = vld [vmem:[%s1559_s11 + $0xb0] ss:$8 sps:$4 sm:$0xff]  }
  0x37   : > { %868 = vmatpush1.bf16.msra.mxu0 %v1358_v24  ;;  %816 = vmatprep.subr.bf16.mxu1 %v1359_v25  ;;  %v1400_v52 = vld [vmem:[%s1559_s11 + $0x1a0] ss:$8 sps:$4 sm:$0xff]   ;;  %v1403_v54 = vld [vmem:[%s1559_s11 + $0x1b4] ss:$8 sps:$4 sm:$0xff]   ;;  %v1406_v56 = vld [vmem:[%s1559_s11 + $0x1b0] ss:$8 sps:$4 sm:$0xff]  }
  0x38   : > { %869 = vmatprep.subr.bf16.mxu0 %v1361_v26  ;;  %v1407_v57 = vld [vmem:[%s1559_s11 + $0xc4] ss:$8 sps:$4 sm:$0xff]   ;;  %v1411_v61 = vld [vmem:[%s1559_s11 + $0xc0] ss:$8 sps:$4 sm:$0xff]   ;;  %v1413_v63 = vld [vmem:[%s1559_s11 + $0xd4] ss:$8 sps:$4 sm:$0xff]  }
  0x39   : > { %v1433_v58 = vld [vmem:[%s1561_s12 + $0x4] ss:$16 sps:$4 sm:$0xff]   ;;  %v1436_v60 = vld [vmem:[%s1561_s12 + $0xc] ss:$16 sps:$4 sm:$0xff]   ;;  %v1412_v62 = vld [vmem:[%s1559_s11 + $0x1c0] ss:$8 sps:$4 sm:$0xff]  }
  0x3a   : > { %817 = vmatpush1.bf16.msra.mxu1 %v1363_v27  ;;  %v1409_v59 = vld [vmem:[%s1559_s11 + $0x1c4] ss:$8 sps:$4 sm:$0xff]   ;;  %840 = vmatprep.mubr.bf16.mxu1 %v1433_v58  ;;  %v1415_v0 = vld [vmem:[%s1559_s11 + $0x1d4] ss:$8 sps:$4 sm:$0xff]   ;;  %v1417_v1 = vld [vmem:[%s1559_s11 + $0xd0] ss:$8 sps:$4 sm:$0xff]  }
  0x3b   : > { %870 = vmatpush1.bf16.msra.mxu0 %v1364_v28  ;;  %818 = vmatprep.subr.bf16.mxu1 %v1365_v29  ;;  %v1418_v2 = vld [vmem:[%s1559_s11 + $0x1d0] ss:$8 sps:$4 sm:$0xff]   ;;  %v1419_v3 = vld [vmem:[%s1559_s11 + $0xe4] ss:$8 sps:$4 sm:$0xff]   ;;  %v1423_v5 = vld [vmem:[%s1559_s11 + $0xe0] ss:$8 sps:$4 sm:$0xff]  }
  0x3c   : > { %871 = vmatprep.subr.bf16.mxu0 %v1367_v30  ;;  %893 = vmatprep.mubr.bf16.mxu0 %v1436_v60  ;;  %v1421_v4 = vld [vmem:[%s1559_s11 + $0x1e4] ss:$8 sps:$4 sm:$0xff]   ;;  %v1424_v6 = vld [vmem:[%s1559_s11 + $0x1e0] ss:$8 sps:$4 sm:$0xff]   ;;  %v1425_v7 = vld [vmem:[%s1559_s11 + $0xf4] ss:$8 sps:$4 sm:$0xff]  }
  0x3d   : > { %v1427_v8 = vld [vmem:[%s1559_s11 + $0x1f4] ss:$8 sps:$4 sm:$0xff]   ;;  %v1429_v9 = vld [vmem:[%s1559_s11 + $0xf0] ss:$8 sps:$4 sm:$0xff]   ;;  %v368_v18 = vld [vmem:[#allocation2] sm:$0xff]  ;;  %p1277_p11 = scmp.ne.s32.totalorder %s1473_s17, 3 }
  0x3e   : > { %819 = vmatpush1.bf16.msra.mxu1 %v1369_v31  ;;  %v1430_v10 = vld [vmem:[%s1559_s11 + $0x1f0] ss:$8 sps:$4 sm:$0xff]   ;;  %v1437_v13 = vld [vmem:[%s1561_s12 + $0x24] ss:$16 sps:$4 sm:$0xff]   ;;  %v1439_v14 = vld [vmem:[%s1561_s12 + $0x2c] ss:$16 sps:$4 sm:$0xff]  }
  0x3f   : > { %872 = vmatpush1.bf16.msra.mxu0 %v1370_v32  ;;  %820 = vmatprep.subr.bf16.mxu1 %v1371_v33  ;;  %v1431_v11 = vld [vmem:[%s1561_s12] ss:$16 sps:$4 sm:$0xff]   ;;  %v1434_v12 = vld [vmem:[%s1561_s12 + $0x8] ss:$16 sps:$4 sm:$0xff]   ;;  %vm1014_vm0 = vcmask (!%p1277_p11), 1040384   ;;  %vm1017_vm1 = vcmask (!%p1277_p11), 1041408  }
  0x40   : > { %873 = vmatprep.subr.bf16.mxu0 %v1373_v34  ;;  %v1441_v15 = vld [vmem:[%s1561_s12 + $0x20] ss:$16 sps:$4 sm:$0xff]   ;;  %v1442_v16 = vld [vmem:[%s1561_s12 + $0x28] ss:$16 sps:$4 sm:$0xff]  }
  0x41   : > { %v369_v22 = vld [vmem:[#allocation2 + $0x8] sm:$0xff]  ;;  %v370_v26 = vld [vmem:[#allocation2 + $0x10] sm:$0xff]  ;;  %v371_v31 = vld [vmem:[#allocation2 + $0x18] sm:$0xff] }
  0x42   : > { %821 = vmatpush1.bf16.msra.mxu1 %v1375_v35 }
  0x43   : > { %874 = vmatpush1.bf16.msra.mxu0 %v1376_v36  ;;  %822 = vmatprep.subr.bf16.mxu1 %v1377_v37 }
  0x44   : > { %875 = vmatprep.subr.bf16.mxu0 %v1379_v38  ;;  %v372_v38 = vld [vmem:[#allocation2 + $0x20] sm:$0xff] }
  0x46   : > { %823 = vmatpush1.bf16.msra.mxu1 %v1381_v39 }
  0x47   : > { %876 = vmatpush1.bf16.msra.mxu0 %v1382_v40  ;;  %824 = vmatprep.subr.bf16.mxu1 %v1383_v41 }
  0x48   : > { %877 = vmatprep.subr.bf16.mxu0 %v1385_v42  ;;  %v373_v42 = vld [vmem:[#allocation2 + $0x28] sm:$0xff] }
  0x4a   : > { %825 = vmatpush1.bf16.msra.mxu1 %v1387_v43 }
  0x4b   : > { %878 = vmatpush1.bf16.msra.mxu0 %v1388_v44  ;;  %826 = vmatprep.subr.bf16.mxu1 %v1389_v45 }
  0x4c   : > { %879 = vmatprep.subr.bf16.mxu0 %v1391_v46  ;;  %v374_v46 = vld [vmem:[#allocation2 + $0x30] sm:$0xff] }
  0x4e   : > { %827 = vmatpush1.bf16.msra.mxu1 %v1393_v47 }
  0x4f   : > { %880 = vmatpush1.bf16.msra.mxu0 %v1394_v48  ;;  %828 = vmatprep.subr.bf16.mxu1 %v1395_v49 }
  0x50   : > { %881 = vmatprep.subr.bf16.mxu0 %v1397_v50 }
  0x52   : > { %829 = vmatpush1.bf16.msra.mxu1 %v1399_v51  ;;  %v375_v51 = vld [vmem:[#allocation2 + $0x38] sm:$0xff] }
  0x53   : > { %882 = vmatpush1.bf16.msra.mxu0 %v1400_v52  ;;  %830 = vmatprep.subr.bf16.mxu1 %v1401_v53 }
  0x54   : > { %883 = vmatprep.subr.bf16.mxu0 %v1403_v54 }
  0x56   : > { %831 = vmatpush1.bf16.msra.mxu1 %v1405_v55 }
  0x57   : > { %884 = vmatpush1.bf16.msra.mxu0 %v1406_v56  ;;  %832 = vmatprep.subr.bf16.mxu1 %v1407_v57  ;;  %v944_v57 = vlaneseq (!%p1277_p11) }
  0x58   : > { %885 = vmatprep.subr.bf16.mxu0 %v1409_v59  ;;  %v942_v59 = vld [vmem:[%s1687_s2] sm:$0x3] (!%p1277_p11) }
  0x59   : > { %v945_v58 = vshrl.u32 (!%p1277_p11), %v944_v57, 7 }
  0x5a   : > { %833 = vmatpush1.bf16.msra.mxu1 %v1411_v61 }
  0x5b   : > { %886 = vmatpush1.bf16.msra.mxu0 %v1412_v62  ;;  %834 = vmatprep.subr.bf16.mxu1 %v1413_v63  ;;  %v946_v61 = vsub.s32 (!%p1277_p11), 0, %v945_v58  ;;  %v950_v63 = vsub.s32 (!%p1277_p11), 1, %v945_v58 }
  0x5c   : > { %887 = vmatprep.subr.bf16.mxu0 %v1415_v0 }
  0x5e   : > { %835 = vmatpush1.bf16.msra.mxu1 %v1417_v1 }
  0x5f   : > { %888 = vmatpush1.bf16.msra.mxu0 %v1418_v2  ;;  %836 = vmatprep.subr.bf16.mxu1 %v1419_v3  ;;  %v947_v3 = vrot.slane (!%p1277_p11), %v942_v59, %v946_v61 }
  0x60   : > { %889 = vmatprep.subr.bf16.mxu0 %v1421_v4  ;;  %v951_v4 = vrot.slane (!%p1277_p11), %v942_v59, %v950_v63 }
  0x62   : > { %837 = vmatpush1.bf16.msra.mxu1 %v1423_v5 }
  0x63   : > { %890 = vmatpush1.bf16.msra.mxu0 %v1424_v6  ;;  %838 = vmatprep.subr.bf16.mxu1 %v1425_v7 }
  0x64   : > { %891 = vmatprep.subr.bf16.mxu0 %v1427_v8 }
  0x66   : > { %839 = vmatpush1.bf16.msra.mxu1 %v1429_v9 }
  0x67   : > { %892 = vmatpush1.bf16.msra.mxu0 %v1430_v10 }
  0x69   : > { %841 = vmatmul.mubr.bf16.vlgmr.msra.gmra.mrb[0].mxu1 %v1431_v11 }
  0x6a   : > { %894 = vmatmul.mubr.bf16.vlgmr.msra.gmra.mrb[0].mxu0 %v1434_v12  ;;  %850 = vmatprep.mubr.bf16.mxu1 %v1437_v13 }
  0x6b   : > { %903 = vmatprep.mubr.bf16.mxu0 %v1439_v14 }
  0x71   : > { %851 = vmatmul.mubr.bf16.gmra.mrb[4].mxu1 %v1441_v15 }
  0x72   : > { %904 = vmatmul.mubr.bf16.gmra.mrb[4].mxu0 %v1442_v16 }
 0x13c   : > { %v842_v17 = vpop.f32.mrb[0].mxu1 }
 0x13d   : > { %v895_v19 = vpop.f32.mrb[0].mxu0  ;;  %v844_v21 = vpop.f32.mrb[1].mxu1 }
 0x13e   : > { %v896_v20 = vadd.f32 %v895_v19, %v842_v17  ;;  %v897_v23 = vpop.f32.mrb[1].mxu0  ;;  %v846_v25 = vpop.f32.mrb[2].mxu1 }
 0x13f   : > { %v898_v24 = vadd.f32 %v897_v23, %v844_v21  ;;  %v899_v27 = vpop.f32.mrb[2].mxu0  ;;  %v848_v30 = vpop.f32.mrb[3].mxu1 }
 0x140   : > { %v914_v28 = vadd.f32 %v896_v20, %v368_v18  ;;  %v900_v29 = vadd.f32 %v899_v27, %v846_v25  ;;  %v901_v32 = vpop.f32.mrb[3].mxu0 }
 0x141   : > { %v915_v33 = vadd.f32 %v898_v24, %v369_v22  ;;  %v902_v34 = vadd.f32 %v901_v32, %v848_v30 }
 0x142   : > { %922 = vst [vmem:[#allocation2] sm:$0xff] %v914_v28  ;;  %v916_v35 = vadd.f32 %v900_v29, %v370_v26 }
 0x143   : > { %923 = vst [vmem:[#allocation2 + $0x8] sm:$0xff] %v915_v33  ;;  %v917_v36 = vadd.f32 %v902_v34, %v371_v31 }
 0x144   : > { %924 = vst [vmem:[#allocation2 + $0x10] sm:$0xff] %v916_v35  ;;  %v852_v37 = vpop.f32.mrb[4].mxu1 }
 0x145   : > { %925 = vst [vmem:[#allocation2 + $0x18] sm:$0xff] %v917_v36  ;;  %v905_v39 = vpop.f32.mrb[4].mxu0  ;;  %v854_v41 = vpop.f32.mrb[5].mxu1 }
 0x146   : > { %v906_v40 = vadd.f32 %v905_v39, %v852_v37  ;;  %v907_v43 = vpop.f32.mrb[5].mxu0  ;;  %v856_v45 = vpop.f32.mrb[6].mxu1 }
 0x147   : > { %v908_v44 = vadd.f32 %v907_v43, %v854_v41  ;;  %v909_v47 = vpop.f32.mrb[6].mxu0  ;;  %v858_v50 = vpop.f32.mrb[7].mxu1  ;;  %933 = sbr.rel (%p1277_p11) target bundleno = 362 (0x16a), region = 63 }
 0x148   : > { %v918_v48 = vadd.f32 %v906_v40, %v372_v38  ;;  %v910_v49 = vadd.f32 %v909_v47, %v856_v45  ;;  %v911_v52 = vpop.f32.mrb[7].mxu0 }
 0x149   : > { %v919_v53 = vadd.f32 %v908_v44, %v373_v42  ;;  %v912_v54 = vadd.f32 %v911_v52, %v858_v50  ;;  %v934_v60 = vld [vmem:[#allocation2] sm:$0xff] (!%p1277_p11) }
 0x14a   : > { %926 = vst [vmem:[#allocation2 + $0x20] sm:$0xff] %v918_v48  ;;  %v920_v55 = vadd.f32 %v910_v49, %v374_v46  ;;  %v935_v62 = vld [vmem:[#allocation2 + $0x8] sm:$0xff] (!%p1277_p11)  ;;  %v954_v8 = vadd.f32 (!%p1277_p11), %v947_v3, %v934_v60 }
 0x14b   : > { %927 = vst [vmem:[#allocation2 + $0x28] sm:$0xff] %v919_v53  ;;  %v921_v56 = vadd.f32 %v912_v54, %v375_v51  ;;  %v936_v0 = vld [vmem:[#allocation2 + $0x10] sm:$0xff] (!%p1277_p11)  ;;  %v955_v9 = vadd.f32 (!%p1277_p11), %v951_v4, %v935_v62 }
 0x14c   : > { %928 = vst [vmem:[#allocation2 + $0x30] sm:$0xff] %v920_v55  ;;  %v937_v1 = vld [vmem:[#allocation2 + $0x18] sm:$0xff] (!%p1277_p11)  ;;  %v956_v10 = vadd.f32 (!%p1277_p11), %v947_v3, %v936_v0  ;;  %962 = vst [vmem:[%s1688_s3] sm:$0xff] (!%p1277_p11), %v954_v8  ;;  %v988_v16 = vmul.f32 (!%p1277_p11), %v954_v8, %v954_v8 }
 0x14d   : > { %929 = vst [vmem:[#allocation2 + $0x38] sm:$0xff] %v921_v56  ;;  %v957_v11 = vadd.f32 (!%p1277_p11), %v951_v4, %v937_v1  ;;  %963 = vst [vmem:[%s1688_s3 + $0x8] sm:$0xff] (!%p1277_p11), %v955_v9  ;;  %v989_v17 = vmul.f32 (!%p1277_p11), %v955_v9, %v955_v9 }
 0x14e   : > { %964 = vst [vmem:[%s1688_s3 + $0x10] sm:$0xff] %v956_v10  ;;  %v970_v18 = vadd.f32 %v956_v10, %v954_v8  ;;  %v990_v19 = vmul.f32 %v956_v10, %v956_v10 }
 0x14f   : > { %965 = vst [vmem:[%s1688_s3 + $0x18] sm:$0xff] %v957_v11  ;;  %v979_v20 = vadd.f32 %v957_v11, %v955_v9  ;;  %v991_v21 = vmul.f32 %v957_v11, %v957_v11 }
 0x150   : > { %v996_v24 = vadd.f32 %v990_v19, %v988_v16 }
 0x151   : > { %v938_v2 = vld [vmem:[#allocation2 + $0x20] sm:$0xff]  ;;  %v1005_v27 = vadd.f32 %v991_v21, %v989_v17 }
 0x152   : > { %v939_v5 = vld [vmem:[#allocation2 + $0x28] sm:$0xff]  ;;  %v958_v12 = vadd.f32 %v947_v3, %v938_v2 }
 0x153   : > { %v940_v6 = vld [vmem:[#allocation2 + $0x30] sm:$0xff]  ;;  %v959_v13 = vadd.f32 %v951_v4, %v939_v5 }
 0x154   : > { %v941_v7 = vld [vmem:[#allocation2 + $0x38] sm:$0xff]  ;;  %v960_v14 = vadd.f32 %v947_v3, %v940_v6  ;;  %966 = vst [vmem:[%s1688_s3 + $0x20] sm:$0xff] %v958_v12  ;;  %v992_v22 = vmul.f32 %v958_v12, %v958_v12  ;;  %v971_v25 = vadd.f32 %v970_v18, %v958_v12 }
 0x155   : > { %v961_v15 = vadd.f32 %v951_v4, %v941_v7  ;;  %967 = vst [vmem:[%s1688_s3 + $0x28] sm:$0xff] %v959_v13  ;;  %v993_v23 = vmul.f32 %v959_v13, %v959_v13  ;;  %v980_v28 = vadd.f32 %v979_v20, %v959_v13 }
 0x156   : > { %968 = vst [vmem:[%s1688_s3 + $0x30] sm:$0xff] %v960_v14  ;;  %v994_v26 = vmul.f32 %v960_v14, %v960_v14  ;;  %v997_v30 = vadd.f32 %v996_v24, %v992_v22  ;;  %v972_v31 = vadd.f32 %v971_v25, %v960_v14 }
 0x157   : > { %969 = vst [vmem:[%s1688_s3 + $0x38] sm:$0xff] %v961_v15  ;;  %v995_v29 = vmul.f32 %v961_v15, %v961_v15  ;;  %v1006_v32 = vadd.f32 %v1005_v27, %v993_v23  ;;  %v981_v33 = vadd.f32 %v980_v28, %v961_v15 }
 0x158   : > { %v973_v34 = vrot.slane %v972_v31, 4  ;;  %v998_v35 = vadd.f32 %v997_v30, %v994_v26 }
 0x159   : > { %v982_v36 = vrot.slane %v981_v33, 4  ;;  %v1007_v37 = vadd.f32 %v1006_v32, %v995_v29 }
 0x15a   : > { %v974_v38 = vadd.f32 %v973_v34, %v972_v31  ;;  %v999_v39 = vrot.slane %v998_v35, 4 }
 0x15b   : > { %v983_v40 = vadd.f32 %v982_v36, %v981_v33  ;;  %v1008_v41 = vrot.slane %v1007_v37, 4 }
 0x15c   : > { %v975_v42 = vrot.slane %v974_v38, 2  ;;  %v1000_v43 = vadd.f32 %v999_v39, %v998_v35 }
 0x15d   : > { %v984_v44 = vrot.slane %v983_v40, 2  ;;  %v1009_v45 = vadd.f32 %v1008_v41, %v1007_v37 }
 0x15e   : > { %v976_v46 = vadd.f32 %v975_v42, %v974_v38  ;;  %v1001_v47 = vrot.slane %v1000_v43, 2 }
 0x15f   : > { %v985_v48 = vadd.f32 %v984_v44, %v983_v40  ;;  %v1010_v49 = vrot.slane %v1009_v45, 2 }
 0x160   : > { %v977_v50 = vrot.slane %v976_v46, 1  ;;  %v1002_v51 = vadd.f32 %v1001_v47, %v1000_v43 }
 0x161   : > { %v986_v52 = vrot.slane %v985_v48, 1  ;;  %v1011_v53 = vadd.f32 %v1010_v49, %v1009_v45 }
 0x162   : > { %v978_v54 = vadd.f32 %v977_v50, %v976_v46  ;;  %v1003_v55 = vrot.slane %v1002_v51, 1 }
 0x163   : > { %v987_v56 = vadd.f32 %v986_v52, %v985_v48  ;;  %v1012_v57 = vrot.slane %v1011_v53, 1 }
 0x164   : > { %v1004_v58 = vadd.f32 %v1003_v55, %v1002_v51 }
 0x165   : > { %v1013_v59 = vadd.f32 %v1012_v57, %v1011_v53 }
 0x166   : > { %v1015_v60 = vsel %vm1014_vm0, %v978_v54, %v1004_v58 }
 0x167   : > { %v1018_v61 = vsel %vm1017_vm1, %v1015_v60, 0.0  ;;  %v1016_v62 = vsel %vm1014_vm0, %v987_v56, %v1013_v59 }
 0x168   : > { %1020 = vst [vmem:[%s1689_s4] sm:$0xff] %v1018_v61  ;;  %v1019_v63 = vsel %vm1017_vm1, %v1016_v62, 0.0 }
 0x169   : > { %1021 = vst [vmem:[%s1689_s4 + $0x8] sm:$0xff] %v1019_v63 }
 0x16a PF: > { %s15_s19 = sadd.s32 1, %s1481_s19   ;;  %s1690_s15 = smov %s1469_s16 }
 0x16b   : > { %p12_p12 = scmp.ge.s32.totalorder %s15_s19, 6   ;;  %s1691_s16 = smov %s1544_s23 }
 0x16c   : > { %s1692_s17 = smov %s1477_s18  ;;  %s1693_s18 = smov %s1695_s20 }
 0x16d   :  { %14 = sbr.rel (!%p12_p12) target bundleno = 3 (0x3), region = 116 }

// kernel: patch_discriminator_forward.12
= control target key start
LH: loop header
LB: loop body
LE: loop exit
PB: predicated region body
PF: predicated region fallthrough
CT: control target
= control target key end

     0   :  { %v24_v0 = vlaneseq  ;;  %s172_s1 = inlined_call_operand.vmem [shape: f32[1,256], index: 1, kind: input, shape index: {}]   ;;  %s173_s2 = inlined_call_operand.vmem [shape: f32[1,256], index: 2, kind: input, shape index: {}]   ;;  %s174_s0 = inlined_call_operand.vmem [shape: f32[32,256], index: 0, kind: input, shape index: {}]   ;;  %s175_s3 = inlined_call_operand.vmem [shape: f32[32,256], index: 3, kind: output, shape index: {}]  }
   0x1   :  { %v22_v2 = vld [vmem:[%s172_s1] sm:$0x3]  ;;  %v15_v6 = vld [vmem:[%s174_s0 + $0x8] sm:$0xff]  ;;  %v16_v8 = vld [vmem:[%s174_s0 + $0x10] sm:$0xff] }
   0x2   :  { %v25_v1 = vshrl.u32 %v24_v0, 7  ;;  %v42_v3 = vld [vmem:[%s173_s2] sm:$0x3]  ;;  %v17_v9 = vld [vmem:[%s174_s0 + $0x18] sm:$0xff]  ;;  %v19_v15 = vld [vmem:[%s174_s0 + $0x28] sm:$0xff] }
   0x3   :  { %v14_v4 = vld [vmem:[%s174_s0] sm:$0xff]  ;;  %v20_v16 = vld [vmem:[%s174_s0 + $0x30] sm:$0xff]  ;;  %v21_v17 = vld [vmem:[%s174_s0 + $0x38] sm:$0xff] }
   0x4   :  { %v26_v5 = vsub.s32 0, %v25_v1  ;;  %v30_v7 = vsub.s32 1, %v25_v1  ;;  %v18_v10 = vld [vmem:[%s174_s0 + $0x20] sm:$0xff] }
   0x6   :  { %v27_v11 = vrot.slane %v22_v2, %v26_v5  ;;  %v47_v12 = vrot.slane %v42_v3, %v26_v5  ;;  %v31_v13 = vrot.slane %v22_v2, %v30_v7  ;;  %v51_v14 = vrot.slane %v42_v3, %v30_v7 }
   0x8   :  { %v34_v18 = vmul.f32 %v27_v11, %v14_v4  ;;  %v35_v19 = vmul.f32 %v31_v13, %v15_v6  ;;  %v36_v20 = vmul.f32 %v27_v11, %v16_v8  ;;  %v37_v21 = vmul.f32 %v31_v13, %v17_v9 }
   0x9   :  { %v38_v22 = vmul.f32 %v27_v11, %v18_v10  ;;  %v39_v23 = vmul.f32 %v31_v13, %v19_v15  ;;  %v40_v24 = vmul.f32 %v27_v11, %v20_v16  ;;  %v41_v25 = vmul.f32 %v31_v13, %v21_v17 }
   0xa   :  { %v54_v26 = vadd.f32 %v47_v12, %v34_v18  ;;  %v55_v27 = vadd.f32 %v51_v14, %v35_v19  ;;  %v56_v28 = vadd.f32 %v47_v12, %v36_v20  ;;  %v57_v29 = vadd.f32 %v51_v14, %v37_v21 }
   0xb   :  { %v58_v30 = vadd.f32 %v47_v12, %v38_v22  ;;  %v59_v31 = vadd.f32 %v51_v14, %v39_v23  ;;  %v60_v32 = vadd.f32 %v47_v12, %v40_v24  ;;  %v61_v33 = vadd.f32 %v51_v14, %v41_v25 }
   0xc   :  { %vm62_vm0 = vcmp.gt.f32.partialorder %v54_v26, 0.0  ;;  %v70_v34 = vmul.f32 0.2, %v54_v26  ;;  %vm63_vm1 = vcmp.gt.f32.partialorder %v55_v27, 0.0  ;;  %v71_v35 = vmul.f32 0.2, %v55_v27 }
   0xd   :  { %vm64_vm2 = vcmp.gt.f32.partialorder %v56_v28, 0.0  ;;  %v72_v36 = vmul.f32 0.2, %v56_v28  ;;  %vm65_vm3 = vcmp.gt.f32.partialorder %v57_v29, 0.0  ;;  %v73_v37 = vmul.f32 0.2, %v57_v29 }
   0xe   :  { %v78_v38 = vsel %vm62_vm0, %v54_v26, %v70_v34  ;;  %v79_v39 = vsel %vm63_vm1, %v55_v27, %v71_v35  ;;  %vm66_vm4 = vcmp.gt.f32.partialorder %v58_v30, 0.0  ;;  %v74_v40 = vmul.f32 0.2, %v58_v30 }
   0xf   :  { %86 = vst [vmem:[%s175_s3] sm:$0xff] %v78_v38  ;;  %87 = vst [vmem:[%s175_s3 + $0x8] sm:$0xff] %v79_v39  ;;  %v80_v41 = vsel %vm64_vm2, %v56_v28, %v72_v36  ;;  %v81_v42 = vsel %vm65_vm3, %v57_v29, %v73_v37  ;;  %vm67_vm5 = vcmp.gt.f32.partialorder %v59_v31, 0.0  ;;  %v75_v43 = vmul.f32 0.2, %v59_v31 }
  0x10   :  { %88 = vst [vmem:[%s175_s3 + $0x10] sm:$0xff] %v80_v41  ;;  %89 = vst [vmem:[%s175_s3 + $0x18] sm:$0xff] %v81_v42  ;;  %v82_v44 = vsel %vm66_vm4, %v58_v30, %v74_v40  ;;  %vm68_vm6 = vcmp.gt.f32.partialorder %v60_v32, 0.0  ;;  %v76_v45 = vmul.f32 0.2, %v60_v32  ;;  %vm69_vm7 = vcmp.gt.f32.partialorder %v61_v33, 0.0 }
  0x11   :  { %90 = vst [vmem:[%s175_s3 + $0x20] sm:$0xff] %v82_v44  ;;  %v83_v46 = vsel %vm67_vm5, %v59_v31, %v75_v43  ;;  %v77_v47 = vmul.f32 0.2, %v61_v33 }
  0x12   :  { %91 = vst [vmem:[%s175_s3 + $0x28] sm:$0xff] %v83_v46  ;;  %v84_v48 = vsel %vm68_vm6, %v60_v32, %v76_v45 }
  0x13   :  { %92 = vst [vmem:[%s175_s3 + $0x30] sm:$0xff] %v84_v48  ;;  %v85_v49 = vsel %vm69_vm7, %v61_v33, %v77_v47 }
  0x14   :  { %93 = vst [vmem:[%s175_s3 + $0x38] sm:$0xff] %v85_v49 }

// kernel: patch_discriminator_forward.13
= control target key start
LH: loop header
LB: loop body
LE: loop exit
PB: predicated region body
PF: predicated region fallthrough
CT: control target
= control target key end

     0   :  { %s2253_s0 = inlined_call_operand.vmem [shape: bf16[24,4096], index: 0, kind: input, shape index: {}]   ;;  %s2254_s1 = inlined_call_operand.vmem [shape: bf16[4096,512], index: 1, kind: input, shape index: {}]   ;;  %s2255_s2 = inlined_call_operand.vmem [shape: f32[1,512], index: 2, kind: input, shape index: {}]   ;;  %s2256_s3 = inlined_call_operand.vmem [shape: f32[24,512], index: 3, kind: output, shape index: {0}]   ;;  %s2257_s4 = inlined_call_operand.vmem [shape: f32[8,512], index: 4, kind: output, shape index: {1}]  }
   0x1   :  { %2260 = sst [smem:[#allocation8_spill]] %s2253_s0 }
   0x2   :  { %2261 = sst [smem:[#allocation9_spill]] %s2254_s1 }
   0x3   :  { %s1853_s15 = smov 0   ;;  %s1855_s16 = smov 0  }
   0x4   :  { %s1857_s17 = smov 0   ;;  %s1859_s18 = smov 0  }
   0x5   :  { %s1861_s19 = smov 0   ;;  %s1863_s20 = smov 0  }
   0x6   :  { %s1865_s21 = smov 0   ;;  %s1867_s22 = smov 0  }
   0x7   :  { %s1869_s23 = smov 0   ;;  %s1871_s24 = smov 0  }
   0x8   :  { %s1873_s25 = smov 0  }
   0x9 LB: > { %s1440_s26 = sadd.s32 4294967295, %s1825_s25   ;;  %s27_s27 = sadd.s32 1, %s1817_s23  ;;  %s1825_s25 = sphi %s1873_s25, %s15_s25   ;;  %s1821_s24 = sphi %s1871_s24, %s2280_s24   ;;  %s1817_s23 = sphi %s1869_s23, %s2279_s23   ;;  %s1813_s22 = sphi %s1867_s22, %s2278_s22   ;;  %s1809_s21 = sphi %s1865_s21, %s2277_s21   ;;  %s1805_s20 = sphi %s1863_s20, %s2276_s20   ;;  %s1801_s19 = sphi %s1861_s19, %s2275_s19   ;;  %s1797_s18 = sphi %s1859_s18, %s2274_s18   ;;  %s1793_s17 = sphi %s1857_s17, %s2273_s17   ;;  %s1789_s16 = sphi %s1855_s16, %s2272_s16   ;;  %s1785_s15 = sphi %s1853_s15, %s2271_s15  }
   0xa   : > { %p28_p0 = scmp.ge.s32.totalorder %s27_s27, 8  ;;  %s30_s28 = sadd.s32 1, %s1821_s24 }
   0xb   : > { %s43_s29 = sadd.s32 1, %s1805_s20  ;;  %p50_p1 = scmp.ne.s32.totalorder %s1805_s20, %s1801_s19 }
   0xc   : > { %s2282_s27 = smov (%p28_p0, %s27_s27), 0  ;;  %s2284_s28 = smov (!%p28_p0, %s30_s28), %s1821_s24 }
   0xd   : > { %2262 = sst [smem:[#allocation6_spill]] %s2282_s27  ;;  %s39_s30 = ssub.s32 %s1817_s23, %s2282_s27 }
   0xe   : > { %p51_p2 = scmp.eq.s32.totalorder %s1825_s25, 0  ;;  %p32_p3 = scmp.ge.s32.totalorder %s2284_s28, 2 }
   0xf   : > { %p41_p4 = scmp.eq.s32.totalorder %s39_s30, 0  ;;  %s71_s6 = sadd.s32 1, %s1797_s18 }
  0x10   : > { %p1920_p5 = por %p51_p2, %p50_p1  ;;  %s2286_s28 = smov (%p32_p3, %s2284_s28), 0 }
  0x11   : > { %2264 = sst [smem:[#allocation7_spill]] %s2286_s28  ;;  %s67_s8 = ssub.s32 %s1821_s24, %s2286_s28 }
  0x12   : > { %s1928_s7 = scalar_select %p41_p4, %s1805_s20, %s43_s29  }
  0x13   : > { %p78_p6 = scmp.ne.s32.totalorder %s1797_s18, %s1793_s17  ;;  %s68_s9 = sor.u32 %s67_s8, %s39_s30 }
  0x14   : > { %p123_p7 = scmp.eq.s32.totalorder %s67_s8, 0  ;;  %p69_p8 = scmp.eq.s32.totalorder %s68_s9, 0 }
  0x15   : > { %p1934_p9 = por %p78_p6, %p51_p2  ;;  %s125_s11 = sadd.s32 1, %s1789_s16 }
  0x16   : > { %p135_p10 = scmp.ne.s32.totalorder %s1789_s16, %s1785_s15  ;;  %p136_p11 = scmp.eq.s32.totalorder %s1440_s26, 15 }
  0x17   : > { %s1942_s12 = scalar_select %p69_p8, %s1797_s18, %s71_s6  }
  0x18   : > { %s1945_s13 = scalar_select %p123_p7, %s1789_s16, %s125_s11  }
  0x19   : > { %p1947_p12 = por %p136_p11, %p135_p10  ;;  %p1443_p13 = scmp.ge.s32.totalorder %s1825_s25, 16 }
  0x1b   : > { %186 = sbr.rel (%p1443_p13) target bundleno = 89 (0x59), region = 16 }
  0x22   : > { %189 = sbr.rel (!%p1920_p5) target bundleno = 47 (0x2f), region = 20  ;;  %s191_s29 = sand.u32 (%p1920_p5), 1, %s1805_s20  }
  0x23   : > { %s1534_s30 = sshll.u32 (%p1920_p5), %s1817_s23, 4  ;;  %s1541_s8 = smul.u32 (%p1920_p5), 48, %s191_s29 }
  0x24   : > { %s2267_s0 = sld [smem:[#allocation8_spill]] (%p1920_p5) }
  0x25   : > { %s193_s26 = scalar_lea.vmem (%p1920_p5), [#allocation3], %s1541_s8 }
  0x2a   : > { %s199_s11 = scalar_lea.vmem %s2267_s0, %s1534_s30 }
  0x2b   : > { %v212_v0 = vld [vmem:[%s199_s11] sm:$0xff]  ;;  %v214_v1 = vld [vmem:[%s199_s11 + $0x8] sm:$0xff] }
  0x2c   : > { %v216_v2 = vld [vmem:[%s199_s11 + $0x80] sm:$0xff]  ;;  %v218_v3 = vld [vmem:[%s199_s11 + $0x88] sm:$0xff]  ;;  %213 = vst [vmem:[%s193_s26] sm:$0xff] %v212_v0  ;;  %215 = vst [vmem:[%s193_s26 + $0x8] sm:$0xff] %v214_v1 }
  0x2d   : > { %v220_v4 = vld [vmem:[%s199_s11 + $0x100] sm:$0xff]  ;;  %v222_v5 = vld [vmem:[%s199_s11 + $0x108] sm:$0xff]  ;;  %217 = vst [vmem:[%s193_s26 + $0x10] sm:$0xff] %v216_v2  ;;  %219 = vst [vmem:[%s193_s26 + $0x18] sm:$0xff] %v218_v3 }
  0x2e   : > { %221 = vst [vmem:[%s193_s26 + $0x20] sm:$0xff] %v220_v4  ;;  %223 = vst [vmem:[%s193_s26 + $0x28] sm:$0xff] %v222_v5 }
  0x2f PF: > { %229 = sbr.rel (!%p1934_p9) target bundleno = 89 (0x59), region = 43  ;;  %s231_s5 = sand.u32 (%p1934_p9), 1, %s1797_s18  }
  0x30   : > { %s1448_s29 = sshll.u32 (%p1934_p9), %s1821_s24, 1  ;;  %s1446_s30 = sshll.u32 (%p1934_p9), %s231_s5, 9 }
  0x31   : > { %s1535_s6 = sshll.u32 (%p1934_p9), %s1817_s23, 8  ;;  %s2268_s1 = sld [smem:[#allocation9_spill]] (%p1934_p9) }
  0x32   : > { %s237_s9 = sadd.s32 (%p1934_p9), %s1535_s6, %s1448_s29  ;;  %s1972_s10 = scalar_lea.vmem (%p1934_p9), [#allocation4], %s1446_s30 }
  0x33   : > { %s1450_s11 = sshll.u32 (%p1934_p9), %s237_s9, 2 }
  0x37   : > { %s1967_s28 = scalar_lea.vmem %s2268_s1, %s1450_s11 }
  0x38   : > { %v393_v6 = vld [vmem:[%s1967_s28] sm:$0xff]  ;;  %v395_v7 = vld [vmem:[%s1967_s28 + $0x10] sm:$0xff] }
  0x39   : > { %v397_v8 = vld [vmem:[%s1967_s28 + $0x20] sm:$0xff]  ;;  %394 = vst [vmem:[%s1972_s10] sm:$0xff] %v393_v6  ;;  %396 = vst [vmem:[%s1972_s10 + $0x8] sm:$0xff] %v395_v7  ;;  %v399_v9 = vld [vmem:[%s1967_s28 + $0x30] sm:$0xff] }
  0x3a   : > { %398 = vst [vmem:[%s1972_s10 + $0x10] sm:$0xff] %v397_v8  ;;  %v401_v10 = vld [vmem:[%s1967_s28 + $0x40] sm:$0xff]  ;;  %v403_v11 = vld [vmem:[%s1967_s28 + $0x50] sm:$0xff]  ;;  %400 = vst [vmem:[%s1972_s10 + $0x18] sm:$0xff] %v399_v9 }
  0x3b   : > { %402 = vst [vmem:[%s1972_s10 + $0x20] sm:$0xff] %v401_v10  ;;  %404 = vst [vmem:[%s1972_s10 + $0x28] sm:$0xff] %v403_v11  ;;  %v405_v12 = vld [vmem:[%s1967_s28 + $0x60] sm:$0xff]  ;;  %v407_v13 = vld [vmem:[%s1967_s28 + $0x70] sm:$0xff] }
  0x3c   : > { %v409_v14 = vld [vmem:[%s1967_s28 + $0x80] sm:$0xff]  ;;  %406 = vst [vmem:[%s1972_s10 + $0x30] sm:$0xff] %v405_v12  ;;  %408 = vst [vmem:[%s1972_s10 + $0x38] sm:$0xff] %v407_v13  ;;  %v411_v15 = vld [vmem:[%s1967_s28 + $0x90] sm:$0xff] }
  0x3d   : > { %410 = vst [vmem:[%s1972_s10 + $0x40] sm:$0xff] %v409_v14  ;;  %v413_v16 = vld [vmem:[%s1967_s28 + $0xa0] sm:$0xff]  ;;  %v415_v17 = vld [vmem:[%s1967_s28 + $0xb0] sm:$0xff]  ;;  %412 = vst [vmem:[%s1972_s10 + $0x48] sm:$0xff] %v411_v15 }
  0x3e   : > { %414 = vst [vmem:[%s1972_s10 + $0x50] sm:$0xff] %v413_v16  ;;  %416 = vst [vmem:[%s1972_s10 + $0x58] sm:$0xff] %v415_v17  ;;  %v417_v18 = vld [vmem:[%s1967_s28 + $0xc0] sm:$0xff]  ;;  %v419_v19 = vld [vmem:[%s1967_s28 + $0xd0] sm:$0xff] }
  0x3f   : > { %v421_v20 = vld [vmem:[%s1967_s28 + $0xe0] sm:$0xff]  ;;  %418 = vst [vmem:[%s1972_s10 + $0x60] sm:$0xff] %v417_v18  ;;  %420 = vst [vmem:[%s1972_s10 + $0x68] sm:$0xff] %v419_v19  ;;  %v423_v21 = vld [vmem:[%s1967_s28 + $0xf0] sm:$0xff] }
  0x40   : > { %422 = vst [vmem:[%s1972_s10 + $0x70] sm:$0xff] %v421_v20  ;;  %v425_v22 = vld [vmem:[%s1967_s28 + $0x100] sm:$0xff]  ;;  %v427_v23 = vld [vmem:[%s1967_s28 + $0x110] sm:$0xff]  ;;  %424 = vst [vmem:[%s1972_s10 + $0x78] sm:$0xff] %v423_v21 }
  0x41   : > { %426 = vst [vmem:[%s1972_s10 + $0x80] sm:$0xff] %v425_v22  ;;  %428 = vst [vmem:[%s1972_s10 + $0x88] sm:$0xff] %v427_v23  ;;  %v429_v24 = vld [vmem:[%s1967_s28 + $0x120] sm:$0xff]  ;;  %v431_v25 = vld [vmem:[%s1967_s28 + $0x130] sm:$0xff] }
  0x42   : > { %v433_v26 = vld [vmem:[%s1967_s28 + $0x140] sm:$0xff]  ;;  %430 = vst [vmem:[%s1972_s10 + $0x90] sm:$0xff] %v429_v24  ;;  %432 = vst [vmem:[%s1972_s10 + $0x98] sm:$0xff] %v431_v25  ;;  %v435_v27 = vld [vmem:[%s1967_s28 + $0x150] sm:$0xff] }
  0x43   : > { %434 = vst [vmem:[%s1972_s10 + $0xa0] sm:$0xff] %v433_v26  ;;  %v437_v28 = vld [vmem:[%s1967_s28 + $0x160] sm:$0xff]  ;;  %v439_v29 = vld [vmem:[%s1967_s28 + $0x170] sm:$0xff]  ;;  %436 = vst [vmem:[%s1972_s10 + $0xa8] sm:$0xff] %v435_v27 }
  0x44   : > { %438 = vst [vmem:[%s1972_s10 + $0xb0] sm:$0xff] %v437_v28  ;;  %440 = vst [vmem:[%s1972_s10 + $0xb8] sm:$0xff] %v439_v29  ;;  %v441_v30 = vld [vmem:[%s1967_s28 + $0x180] sm:$0xff]  ;;  %v443_v31 = vld [vmem:[%s1967_s28 + $0x190] sm:$0xff] }
  0x45   : > { %v445_v32 = vld [vmem:[%s1967_s28 + $0x1a0] sm:$0xff]  ;;  %442 = vst [vmem:[%s1972_s10 + $0xc0] sm:$0xff] %v441_v30  ;;  %444 = vst [vmem:[%s1972_s10 + $0xc8] sm:$0xff] %v443_v31  ;;  %v447_v33 = vld [vmem:[%s1967_s28 + $0x1b0] sm:$0xff] }
  0x46   : > { %446 = vst [vmem:[%s1972_s10 + $0xd0] sm:$0xff] %v445_v32  ;;  %v449_v34 = vld [vmem:[%s1967_s28 + $0x1c0] sm:$0xff]  ;;  %v451_v35 = vld [vmem:[%s1967_s28 + $0x1d0] sm:$0xff]  ;;  %448 = vst [vmem:[%s1972_s10 + $0xd8] sm:$0xff] %v447_v33 }
  0x47   : > { %450 = vst [vmem:[%s1972_s10 + $0xe0] sm:$0xff] %v449_v34  ;;  %452 = vst [vmem:[%s1972_s10 + $0xe8] sm:$0xff] %v451_v35  ;;  %v453_v36 = vld [vmem:[%s1967_s28 + $0x1e0] sm:$0xff]  ;;  %v455_v37 = vld [vmem:[%s1967_s28 + $0x1f0] sm:$0xff] }
  0x48   : > { %v457_v38 = vld [vmem:[%s1967_s28 + $0x200] sm:$0xff]  ;;  %454 = vst [vmem:[%s1972_s10 + $0xf0] sm:$0xff] %v453_v36  ;;  %456 = vst [vmem:[%s1972_s10 + $0xf8] sm:$0xff] %v455_v37  ;;  %v459_v39 = vld [vmem:[%s1967_s28 + $0x210] sm:$0xff] }
  0x49   : > { %458 = vst [vmem:[%s1972_s10 + $0x100] sm:$0xff] %v457_v38  ;;  %v461_v40 = vld [vmem:[%s1967_s28 + $0x220] sm:$0xff]  ;;  %v463_v41 = vld [vmem:[%s1967_s28 + $0x230] sm:$0xff]  ;;  %460 = vst [vmem:[%s1972_s10 + $0x108] sm:$0xff] %v459_v39 }
  0x4a   : > { %462 = vst [vmem:[%s1972_s10 + $0x110] sm:$0xff] %v461_v40  ;;  %464 = vst [vmem:[%s1972_s10 + $0x118] sm:$0xff] %v463_v41  ;;  %v465_v42 = vld [vmem:[%s1967_s28 + $0x240] sm:$0xff]  ;;  %v467_v43 = vld [vmem:[%s1967_s28 + $0x250] sm:$0xff] }
  0x4b   : > { %v469_v44 = vld [vmem:[%s1967_s28 + $0x260] sm:$0xff]  ;;  %466 = vst [vmem:[%s1972_s10 + $0x120] sm:$0xff] %v465_v42  ;;  %468 = vst [vmem:[%s1972_s10 + $0x128] sm:$0xff] %v467_v43  ;;  %v471_v45 = vld [vmem:[%s1967_s28 + $0x270] sm:$0xff] }
  0x4c   : > { %470 = vst [vmem:[%s1972_s10 + $0x130] sm:$0xff] %v469_v44  ;;  %v473_v46 = vld [vmem:[%s1967_s28 + $0x280] sm:$0xff]  ;;  %v475_v47 = vld [vmem:[%s1967_s28 + $0x290] sm:$0xff]  ;;  %472 = vst [vmem:[%s1972_s10 + $0x138] sm:$0xff] %v471_v45 }
  0x4d   : > { %474 = vst [vmem:[%s1972_s10 + $0x140] sm:$0xff] %v473_v46  ;;  %476 = vst [vmem:[%s1972_s10 + $0x148] sm:$0xff] %v475_v47  ;;  %v477_v48 = vld [vmem:[%s1967_s28 + $0x2a0] sm:$0xff]  ;;  %v479_v49 = vld [vmem:[%s1967_s28 + $0x2b0] sm:$0xff] }
  0x4e   : > { %v481_v50 = vld [vmem:[%s1967_s28 + $0x2c0] sm:$0xff]  ;;  %478 = vst [vmem:[%s1972_s10 + $0x150] sm:$0xff] %v477_v48  ;;  %480 = vst [vmem:[%s1972_s10 + $0x158] sm:$0xff] %v479_v49  ;;  %v483_v51 = vld [vmem:[%s1967_s28 + $0x2d0] sm:$0xff] }
  0x4f   : > { %482 = vst [vmem:[%s1972_s10 + $0x160] sm:$0xff] %v481_v50  ;;  %v485_v52 = vld [vmem:[%s1967_s28 + $0x2e0] sm:$0xff]  ;;  %v487_v53 = vld [vmem:[%s1967_s28 + $0x2f0] sm:$0xff]  ;;  %484 = vst [vmem:[%s1972_s10 + $0x168] sm:$0xff] %v483_v51 }
  0x50   : > { %486 = vst [vmem:[%s1972_s10 + $0x170] sm:$0xff] %v485_v52  ;;  %488 = vst [vmem:[%s1972_s10 + $0x178] sm:$0xff] %v487_v53  ;;  %v489_v54 = vld [vmem:[%s1967_s28 + $0x300] sm:$0xff]  ;;  %v491_v55 = vld [vmem:[%s1967_s28 + $0x310] sm:$0xff] }
  0x51   : > { %v493_v56 = vld [vmem:[%s1967_s28 + $0x320] sm:$0xff]  ;;  %490 = vst [vmem:[%s1972_s10 + $0x180] sm:$0xff] %v489_v54  ;;  %492 = vst [vmem:[%s1972_s10 + $0x188] sm:$0xff] %v491_v55  ;;  %v495_v57 = vld [vmem:[%s1967_s28 + $0x330] sm:$0xff] }
  0x52   : > { %494 = vst [vmem:[%s1972_s10 + $0x190] sm:$0xff] %v493_v56  ;;  %v497_v58 = vld [vmem:[%s1967_s28 + $0x340] sm:$0xff]  ;;  %v499_v59 = vld [vmem:[%s1967_s28 + $0x350] sm:$0xff]  ;;  %496 = vst [vmem:[%s1972_s10 + $0x198] sm:$0xff] %v495_v57 }
  0x53   : > { %498 = vst [vmem:[%s1972_s10 + $0x1a0] sm:$0xff] %v497_v58  ;;  %500 = vst [vmem:[%s1972_s10 + $0x1a8] sm:$0xff] %v499_v59  ;;  %v501_v60 = vld [vmem:[%s1967_s28 + $0x360] sm:$0xff]  ;;  %v503_v61 = vld [vmem:[%s1967_s28 + $0x370] sm:$0xff] }
  0x54   : > { %v505_v62 = vld [vmem:[%s1967_s28 + $0x380] sm:$0xff]  ;;  %502 = vst [vmem:[%s1972_s10 + $0x1b0] sm:$0xff] %v501_v60  ;;  %504 = vst [vmem:[%s1972_s10 + $0x1b8] sm:$0xff] %v503_v61  ;;  %v507_v63 = vld [vmem:[%s1967_s28 + $0x390] sm:$0xff] }
  0x55   : > { %506 = vst [vmem:[%s1972_s10 + $0x1c0] sm:$0xff] %v505_v62  ;;  %v509_v0 = vld [vmem:[%s1967_s28 + $0x3a0] sm:$0xff]  ;;  %v511_v1 = vld [vmem:[%s1967_s28 + $0x3b0] sm:$0xff]  ;;  %508 = vst [vmem:[%s1972_s10 + $0x1c8] sm:$0xff] %v507_v63 }
  0x56   : > { %510 = vst [vmem:[%s1972_s10 + $0x1d0] sm:$0xff] %v509_v0  ;;  %512 = vst [vmem:[%s1972_s10 + $0x1d8] sm:$0xff] %v511_v1  ;;  %v513_v2 = vld [vmem:[%s1967_s28 + $0x3c0] sm:$0xff]  ;;  %v515_v3 = vld [vmem:[%s1967_s28 + $0x3d0] sm:$0xff] }
  0x57   : > { %v517_v4 = vld [vmem:[%s1967_s28 + $0x3e0] sm:$0xff]  ;;  %514 = vst [vmem:[%s1972_s10 + $0x1e0] sm:$0xff] %v513_v2  ;;  %516 = vst [vmem:[%s1972_s10 + $0x1e8] sm:$0xff] %v515_v3  ;;  %v519_v5 = vld [vmem:[%s1967_s28 + $0x3f0] sm:$0xff] }
  0x58   : > { %518 = vst [vmem:[%s1972_s10 + $0x1f0] sm:$0xff] %v517_v4  ;;  %520 = vst [vmem:[%s1972_s10 + $0x1f8] sm:$0xff] %v519_v5 }
  0x59 PF: > { %p1451_p0 = scmp.ge.s32.totalorder %s1825_s25, 1  ;;  %p533_p1 = scmp.lt.s32.totalorder %s1825_s25, 17 }
  0x5b   : > { %p534_p2 = pnand %p1451_p0, %p533_p1 }
  0x5c   : > { %s540_s0 = sand.u32 (!%p534_p2), 1, %s1801_s19   ;;  %s547_s26 = sand.u32 (!%p534_p2), 1, %s1793_s17  }
  0x5d   : > { %537 = sbr.rel (%p534_p2) target bundleno = 436 (0x1b4), region = 85  ;;  %s1452_s29 = sshll.u32 (!%p534_p2), %s547_s26, 9 }
  0x5e   : > { %s1542_s5 = smul.u32 (!%p534_p2), 48, %s540_s0  ;;  %s574_s30 = sand.u32 (!%p534_p2), 1, %s1785_s15  }
  0x5f   : > { %s1543_s6 = smul.u32 (!%p534_p2), 48, %s574_s30  ;;  %s1453_s28 = sshll.u32 (!%p534_p2), %s1813_s22, 1 }
  0x60   : > { %p593_p3 = scmp.lt.s32.totalorder (!%p534_p2), %s1453_s28, 3  ;;  %s2117_s17 = scalar_lea.vmem (!%p534_p2), [#allocation3], %s1542_s5 }
  0x61   : > { %s2119_s15 = scalar_lea.vmem (!%p534_p2), [#allocation4], %s1452_s29  ;;  %s2121_s0 = scalar_lea.vmem (!%p534_p2), [#allocation5], %s1543_s6 }
  0x62   : > { %p1456_p4 = scmp.ne.s32.totalorder (!%p534_p2), %s1809_s21, 0 }
  0x64   : > { %s2288_s28 = smov (!%p593_p3, %s1453_s28), 3  ;;  %612 = sbr.rel (%p1456_p4) target bundleno = 107 (0x6b), region = 97 }
  0x65   : > { %s595_s8 = scalar_lea.vmem %s2255_s2, %s2288_s28  ;;  %s1455_s10 = sshll.u32 %s2288_s28, 3  ;;  %v1827_v6 = vmov (!%p1456_p4), 0.0  }
  0x66   : > { %s2115_s19 = scalar_lea.vmem %s2257_s4, %s1455_s10  ;;  %613 = vst [vmem:[#allocation2] sm:$0xff] (!%p1456_p4), %v1827_v6  ;;  %614 = vst [vmem:[#allocation2 + $0x8] sm:$0xff] (!%p1456_p4), %v1827_v6 }
  0x67   : > { %615 = vst [vmem:[#allocation2 + $0x10] sm:$0xff] (!%p1456_p4), %v1827_v6  ;;  %616 = vst [vmem:[#allocation2 + $0x18] sm:$0xff] (!%p1456_p4), %v1827_v6 }
  0x68   : > { %617 = vst [vmem:[#allocation2 + $0x20] sm:$0xff] (!%p1456_p4), %v1827_v6  ;;  %618 = vst [vmem:[#allocation2 + $0x28] sm:$0xff] (!%p1456_p4), %v1827_v6 }
  0x6b PF: > { %v1633_v7 = vld [vmem:[%s2119_s15 + $0x4] ss:$8 sps:$4 sm:$0xff]   ;;  %v1637_v9 = vld [vmem:[%s2119_s15] ss:$8 sps:$4 sm:$0xff]   ;;  %v1639_v11 = vld [vmem:[%s2119_s15 + $0x14] ss:$8 sps:$4 sm:$0xff]  }
  0x6c   : > { %v1635_v8 = vld [vmem:[%s2119_s15 + $0x104] ss:$8 sps:$4 sm:$0xff]   ;;  %1049 = vmatprep.subr.bf16.mxu1 %v1633_v7  ;;  %v1638_v10 = vld [vmem:[%s2119_s15 + $0x100] ss:$8 sps:$4 sm:$0xff]   ;;  %v1641_v12 = vld [vmem:[%s2119_s15 + $0x114] ss:$8 sps:$4 sm:$0xff]  }
  0x6d   : > { %1100 = vmatprep.subr.bf16.mxu0 %v1635_v8  ;;  %1050 = vmatpush1.bf16.msra.mxu1 %v1637_v9  ;;  %v1643_v13 = vld [vmem:[%s2119_s15 + $0x10] ss:$8 sps:$4 sm:$0xff]   ;;  %v1645_v15 = vld [vmem:[%s2119_s15 + $0x24] ss:$8 sps:$4 sm:$0xff]   ;;  %v1649_v17 = vld [vmem:[%s2119_s15 + $0x20] ss:$8 sps:$4 sm:$0xff]  }
  0x6e   : > { %1101 = vmatpush1.bf16.msra.mxu0 %v1638_v10  ;;  %1051 = vmatprep.subr.bf16.mxu1 %v1639_v11  ;;  %v1644_v14 = vld [vmem:[%s2119_s15 + $0x110] ss:$8 sps:$4 sm:$0xff]   ;;  %v1647_v16 = vld [vmem:[%s2119_s15 + $0x124] ss:$8 sps:$4 sm:$0xff]   ;;  %v1650_v18 = vld [vmem:[%s2119_s15 + $0x120] ss:$8 sps:$4 sm:$0xff]  }
  0x6f   : > { %1102 = vmatprep.subr.bf16.mxu0 %v1641_v12  ;;  %v1651_v19 = vld [vmem:[%s2119_s15 + $0x34] ss:$8 sps:$4 sm:$0xff]   ;;  %v1655_v21 = vld [vmem:[%s2119_s15 + $0x30] ss:$8 sps:$4 sm:$0xff]   ;;  %v1657_v23 = vld [vmem:[%s2119_s15 + $0x44] ss:$8 sps:$4 sm:$0xff]  }
  0x70   : > { %v1653_v20 = vld [vmem:[%s2119_s15 + $0x134] ss:$8 sps:$4 sm:$0xff]   ;;  %v1656_v22 = vld [vmem:[%s2119_s15 + $0x130] ss:$8 sps:$4 sm:$0xff]   ;;  %v1659_v24 = vld [vmem:[%s2119_s15 + $0x144] ss:$8 sps:$4 sm:$0xff]  }
  0x71   : > { %1052 = vmatpush1.bf16.msra.mxu1 %v1643_v13  ;;  %v1661_v25 = vld [vmem:[%s2119_s15 + $0x40] ss:$8 sps:$4 sm:$0xff]   ;;  %v1663_v27 = vld [vmem:[%s2119_s15 + $0x54] ss:$8 sps:$4 sm:$0xff]   ;;  %v1667_v29 = vld [vmem:[%s2119_s15 + $0x50] ss:$8 sps:$4 sm:$0xff]  }
  0x72   : > { %1103 = vmatpush1.bf16.msra.mxu0 %v1644_v14  ;;  %1053 = vmatprep.subr.bf16.mxu1 %v1645_v15  ;;  %v1662_v26 = vld [vmem:[%s2119_s15 + $0x140] ss:$8 sps:$4 sm:$0xff]   ;;  %v1665_v28 = vld [vmem:[%s2119_s15 + $0x154] ss:$8 sps:$4 sm:$0xff]   ;;  %v1668_v30 = vld [vmem:[%s2119_s15 + $0x150] ss:$8 sps:$4 sm:$0xff]  }
  0x73   : > { %1104 = vmatprep.subr.bf16.mxu0 %v1647_v16  ;;  %v1669_v31 = vld [vmem:[%s2119_s15 + $0x64] ss:$8 sps:$4 sm:$0xff]   ;;  %v1673_v33 = vld [vmem:[%s2119_s15 + $0x60] ss:$8 sps:$4 sm:$0xff]   ;;  %v1675_v35 = vld [vmem:[%s2119_s15 + $0x74] ss:$8 sps:$4 sm:$0xff]  }
  0x74   : > { %v1671_v32 = vld [vmem:[%s2119_s15 + $0x164] ss:$8 sps:$4 sm:$0xff]   ;;  %v1674_v34 = vld [vmem:[%s2119_s15 + $0x160] ss:$8 sps:$4 sm:$0xff]   ;;  %v1677_v36 = vld [vmem:[%s2119_s15 + $0x174] ss:$8 sps:$4 sm:$0xff]  }
  0x75   : > { %1054 = vmatpush1.bf16.msra.mxu1 %v1649_v17  ;;  %v1679_v37 = vld [vmem:[%s2119_s15 + $0x70] ss:$8 sps:$4 sm:$0xff]   ;;  %v1681_v39 = vld [vmem:[%s2119_s15 + $0x84] ss:$8 sps:$4 sm:$0xff]   ;;  %v1685_v41 = vld [vmem:[%s2119_s15 + $0x80] ss:$8 sps:$4 sm:$0xff]  }
  0x76   : > { %1105 = vmatpush1.bf16.msra.mxu0 %v1650_v18  ;;  %1055 = vmatprep.subr.bf16.mxu1 %v1651_v19  ;;  %v1680_v38 = vld [vmem:[%s2119_s15 + $0x170] ss:$8 sps:$4 sm:$0xff]   ;;  %v1683_v40 = vld [vmem:[%s2119_s15 + $0x184] ss:$8 sps:$4 sm:$0xff]   ;;  %v1686_v42 = vld [vmem:[%s2119_s15 + $0x180] ss:$8 sps:$4 sm:$0xff]  }
  0x77   : > { %1106 = vmatprep.subr.bf16.mxu0 %v1653_v20  ;;  %v1687_v43 = vld [vmem:[%s2119_s15 + $0x94] ss:$8 sps:$4 sm:$0xff]   ;;  %v1691_v45 = vld [vmem:[%s2119_s15 + $0x90] ss:$8 sps:$4 sm:$0xff]   ;;  %v1693_v47 = vld [vmem:[%s2119_s15 + $0xa4] ss:$8 sps:$4 sm:$0xff]  }
  0x78   : > { %v1689_v44 = vld [vmem:[%s2119_s15 + $0x194] ss:$8 sps:$4 sm:$0xff]   ;;  %v1692_v46 = vld [vmem:[%s2119_s15 + $0x190] ss:$8 sps:$4 sm:$0xff]   ;;  %v1695_v48 = vld [vmem:[%s2119_s15 + $0x1a4] ss:$8 sps:$4 sm:$0xff]  }
  0x79   : > { %1056 = vmatpush1.bf16.msra.mxu1 %v1655_v21  ;;  %v1697_v49 = vld [vmem:[%s2119_s15 + $0xa0] ss:$8 sps:$4 sm:$0xff]   ;;  %v1699_v51 = vld [vmem:[%s2119_s15 + $0xb4] ss:$8 sps:$4 sm:$0xff]   ;;  %v1703_v53 = vld [vmem:[%s2119_s15 + $0xb0] ss:$8 sps:$4 sm:$0xff]  }
  0x7a   : > { %1107 = vmatpush1.bf16.msra.mxu0 %v1656_v22  ;;  %1057 = vmatprep.subr.bf16.mxu1 %v1657_v23  ;;  %v1698_v50 = vld [vmem:[%s2119_s15 + $0x1a0] ss:$8 sps:$4 sm:$0xff]   ;;  %v1701_v52 = vld [vmem:[%s2119_s15 + $0x1b4] ss:$8 sps:$4 sm:$0xff]   ;;  %v1704_v55 = vld [vmem:[%s2119_s15 + $0x1b0] ss:$8 sps:$4 sm:$0xff]  }
  0x7b   : > { %1108 = vmatprep.subr.bf16.mxu0 %v1659_v24  ;;  %v1731_v54 = vld [vmem:[%s2117_s17 + $0x4] ss:$16 sps:$4 sm:$0xff]   ;;  %v1734_v58 = vld [vmem:[%s2117_s17 + $0xc] ss:$16 sps:$4 sm:$0xff]   ;;  %v1709_v59 = vld [vmem:[%s2119_s15 + $0xc0] ss:$8 sps:$4 sm:$0xff]  }
  0x7c   : > { %v1705_v56 = vld [vmem:[%s2119_s15 + $0xc4] ss:$8 sps:$4 sm:$0xff]   ;;  %1081 = vmatprep.mubr.bf16.mxu1 %v1731_v54  ;;  %1132 = vmatprep.mubr.bf16.mxu0 %v1734_v58  ;;  %v1710_v60 = vld [vmem:[%s2119_s15 + $0x1c0] ss:$8 sps:$4 sm:$0xff]   ;;  %v1711_v61 = vld [vmem:[%s2119_s15 + $0xd4] ss:$8 sps:$4 sm:$0xff]  }
  0x7d   : > { %1058 = vmatpush1.bf16.msra.mxu1 %v1661_v25  ;;  %v1707_v57 = vld [vmem:[%s2119_s15 + $0x1c4] ss:$8 sps:$4 sm:$0xff]   ;;  %v1713_v62 = vld [vmem:[%s2119_s15 + $0x1d4] ss:$8 sps:$4 sm:$0xff]   ;;  %v1715_v63 = vld [vmem:[%s2119_s15 + $0xd0] ss:$8 sps:$4 sm:$0xff]  }
  0x7e   : > { %1109 = vmatpush1.bf16.msra.mxu0 %v1662_v26  ;;  %1059 = vmatprep.subr.bf16.mxu1 %v1663_v27  ;;  %v1716_v0 = vld [vmem:[%s2119_s15 + $0x1d0] ss:$8 sps:$4 sm:$0xff]   ;;  %v1717_v1 = vld [vmem:[%s2119_s15 + $0xe4] ss:$8 sps:$4 sm:$0xff]   ;;  %v1721_v3 = vld [vmem:[%s2119_s15 + $0xe0] ss:$8 sps:$4 sm:$0xff]  }
  0x7f   : > { %1110 = vmatprep.subr.bf16.mxu0 %v1665_v28  ;;  %v1719_v2 = vld [vmem:[%s2119_s15 + $0x1e4] ss:$8 sps:$4 sm:$0xff]   ;;  %v1722_v4 = vld [vmem:[%s2119_s15 + $0x1e0] ss:$8 sps:$4 sm:$0xff]   ;;  %v1723_v5 = vld [vmem:[%s2119_s15 + $0xf4] ss:$8 sps:$4 sm:$0xff]  }
  0x80   : > { %v1725_v6 = vld [vmem:[%s2119_s15 + $0x1f4] ss:$8 sps:$4 sm:$0xff]   ;;  %v1727_v7 = vld [vmem:[%s2119_s15 + $0xf0] ss:$8 sps:$4 sm:$0xff]   ;;  %v621_v26 = vld [vmem:[#allocation2 + $0x10] sm:$0xff]  ;;  %p1529_p5 = scmp.ne.s32.totalorder %s1809_s21, 7 }
  0x81   : > { %1060 = vmatpush1.bf16.msra.mxu1 %v1667_v29  ;;  %v1728_v8 = vld [vmem:[%s2119_s15 + $0x1f0] ss:$8 sps:$4 sm:$0xff]   ;;  %vm1235_vm0 = vcmask (!%p1529_p5), 1040384   ;;  %vm1238_vm1 = vcmask (!%p1529_p5), 1041408  }
  0x82   : > { %1111 = vmatpush1.bf16.msra.mxu0 %v1668_v30  ;;  %1061 = vmatprep.subr.bf16.mxu1 %v1669_v31  ;;  %v629_v9 = vld [vmem:[%s2117_s17 + $0x20] sm:$0xff]  ;;  %v630_v10 = vld [vmem:[%s2117_s17 + $0x28] sm:$0xff] }
  0x83   : > { %1112 = vmatprep.subr.bf16.mxu0 %v1671_v32  ;;  %v1729_v11 = vld [vmem:[%s2117_s17] ss:$16 sps:$4 sm:$0xff]   ;;  %v1732_v12 = vld [vmem:[%s2117_s17 + $0x8] ss:$16 sps:$4 sm:$0xff]   ;;  %v1462_v13 = vcombine.high %v629_v9, %v629_v9  ;;  %v1464_v14 = vcombine.high %v630_v10, %v630_v10  ;;  %v1461_v15 = vcombine.low %v629_v9, %v629_v9  ;;  %v1463_v16 = vcombine.low %v630_v10, %v630_v10 }
  0x84   : > { %v619_v18 = vld [vmem:[#allocation2] sm:$0xff]  ;;  %v620_v22 = vld [vmem:[#allocation2 + $0x8] sm:$0xff]  ;;  %v622_v31 = vld [vmem:[#allocation2 + $0x18] sm:$0xff] }
  0x85   : > { %1062 = vmatpush1.bf16.msra.mxu1 %v1673_v33 }
  0x86   : > { %1113 = vmatpush1.bf16.msra.mxu0 %v1674_v34  ;;  %1063 = vmatprep.subr.bf16.mxu1 %v1675_v35 }
  0x87   : > { %1114 = vmatprep.subr.bf16.mxu0 %v1677_v36 }
  0x89   : > { %1064 = vmatpush1.bf16.msra.mxu1 %v1679_v37 }
  0x8a   : > { %1115 = vmatpush1.bf16.msra.mxu0 %v1680_v38  ;;  %1065 = vmatprep.subr.bf16.mxu1 %v1681_v39  ;;  %v623_v38 = vld [vmem:[#allocation2 + $0x20] sm:$0xff] }
  0x8b   : > { %1116 = vmatprep.subr.bf16.mxu0 %v1683_v40 }
  0x8d   : > { %1066 = vmatpush1.bf16.msra.mxu1 %v1685_v41 }
  0x8e   : > { %1117 = vmatpush1.bf16.msra.mxu0 %v1686_v42  ;;  %1067 = vmatprep.subr.bf16.mxu1 %v1687_v43  ;;  %v624_v42 = vld [vmem:[#allocation2 + $0x28] sm:$0xff] }
  0x8f   : > { %1118 = vmatprep.subr.bf16.mxu0 %v1689_v44 }
  0x91   : > { %1068 = vmatpush1.bf16.msra.mxu1 %v1691_v45 }
  0x92   : > { %1119 = vmatpush1.bf16.msra.mxu0 %v1692_v46  ;;  %1069 = vmatprep.subr.bf16.mxu1 %v1693_v47 }
  0x93   : > { %1120 = vmatprep.subr.bf16.mxu0 %v1695_v48 }
  0x95   : > { %1070 = vmatpush1.bf16.msra.mxu1 %v1697_v49 }
  0x96   : > { %1121 = vmatpush1.bf16.msra.mxu0 %v1698_v50  ;;  %1071 = vmatprep.subr.bf16.mxu1 %v1699_v51  ;;  %v1175_v51 = vlaneseq (!%p1529_p5) }
  0x97   : > { %1122 = vmatprep.subr.bf16.mxu0 %v1701_v52 }
  0x98   : > { %v1176_v52 = vshrl.u32 (!%p1529_p5), %v1175_v51, 7 }
  0x99   : > { %1072 = vmatpush1.bf16.msra.mxu1 %v1703_v53  ;;  %v1173_v53 = vld [vmem:[%s595_s8] sm:$0x3] (!%p1529_p5) }
  0x9a   : > { %1123 = vmatpush1.bf16.msra.mxu0 %v1704_v55  ;;  %1073 = vmatprep.subr.bf16.mxu1 %v1705_v56  ;;  %v1177_v55 = vsub.s32 (!%p1529_p5), 0, %v1176_v52  ;;  %v1181_v56 = vsub.s32 (!%p1529_p5), 1, %v1176_v52 }
  0x9b   : > { %1124 = vmatprep.subr.bf16.mxu0 %v1707_v57 }
  0x9d   : > { %1074 = vmatpush1.bf16.msra.mxu1 %v1709_v59 }
  0x9e   : > { %1125 = vmatpush1.bf16.msra.mxu0 %v1710_v60  ;;  %1075 = vmatprep.subr.bf16.mxu1 %v1711_v61  ;;  %v1178_v60 = vrot.slane (!%p1529_p5), %v1173_v53, %v1177_v55  ;;  %v1182_v61 = vrot.slane (!%p1529_p5), %v1173_v53, %v1181_v56 }
  0x9f   : > { %1126 = vmatprep.subr.bf16.mxu0 %v1713_v62 }
  0xa1   : > { %1076 = vmatpush1.bf16.msra.mxu1 %v1715_v63 }
  0xa2   : > { %1127 = vmatpush1.bf16.msra.mxu0 %v1716_v0  ;;  %1077 = vmatprep.subr.bf16.mxu1 %v1717_v1 }
  0xa3   : > { %1128 = vmatprep.subr.bf16.mxu0 %v1719_v2 }
  0xa5   : > { %1078 = vmatpush1.bf16.msra.mxu1 %v1721_v3 }
  0xa6   : > { %1129 = vmatpush1.bf16.msra.mxu0 %v1722_v4  ;;  %1079 = vmatprep.subr.bf16.mxu1 %v1723_v5 }
  0xa7   : > { %1130 = vmatprep.subr.bf16.mxu0 %v1725_v6 }
  0xa9   : > { %1080 = vmatpush1.bf16.msra.mxu1 %v1727_v7 }
  0xaa   : > { %1131 = vmatpush1.bf16.msra.mxu0 %v1728_v8 }
  0xac   : > { %1082 = vmatmul.mubr.bf16.vlgmr.msra.gmra.mrb[0].mxu1 %v1729_v11 }
  0xad   : > { %1133 = vmatmul.mubr.bf16.vlgmr.msra.gmra.mrb[0].mxu0 %v1732_v12  ;;  %1091 = vmatprep.mubr.bf16.mxu1 %v1462_v13 }
  0xae   : > { %1142 = vmatprep.mubr.bf16.mxu0 %v1464_v14 }
  0xb4   : > { %1092 = vmatmul.mubr.bf16.gmra.mrb[4].mxu1 %v1461_v15 }
  0xb5   : > { %1143 = vmatmul.mubr.bf16.gmra.mrb[4].mxu0 %v1463_v16 }
 0x17f   : > { %v1083_v17 = vpop.f32.mrb[0].mxu1 }
 0x180   : > { %v1134_v19 = vpop.f32.mrb[0].mxu0  ;;  %v1085_v21 = vpop.f32.mrb[1].mxu1 }
 0x181   : > { %v1135_v20 = vadd.f32 %v1134_v19, %v1083_v17  ;;  %v1136_v23 = vpop.f32.mrb[1].mxu0  ;;  %v1087_v25 = vpop.f32.mrb[2].mxu1 }
 0x182   : > { %v1137_v24 = vadd.f32 %v1136_v23, %v1085_v21  ;;  %v1138_v27 = vpop.f32.mrb[2].mxu0  ;;  %v1089_v30 = vpop.f32.mrb[3].mxu1 }
 0x183   : > { %v1151_v28 = vadd.f32 %v1135_v20, %v619_v18  ;;  %v1139_v29 = vadd.f32 %v1138_v27, %v1087_v25  ;;  %v1140_v32 = vpop.f32.mrb[3].mxu0 }
 0x184   : > { %v1152_v33 = vadd.f32 %v1137_v24, %v620_v22  ;;  %v1141_v34 = vadd.f32 %v1140_v32, %v1089_v30 }
 0x185   : > { %1157 = vst [vmem:[#allocation2] sm:$0xff] %v1151_v28  ;;  %v1153_v35 = vadd.f32 %v1139_v29, %v621_v26 }
 0x186   : > { %1158 = vst [vmem:[#allocation2 + $0x8] sm:$0xff] %v1152_v33  ;;  %v1154_v36 = vadd.f32 %v1141_v34, %v622_v31 }
 0x187   : > { %1159 = vst [vmem:[#allocation2 + $0x10] sm:$0xff] %v1153_v35  ;;  %v1093_v37 = vpop.f32.mrb[4].mxu1 }
 0x188   : > { %1160 = vst [vmem:[#allocation2 + $0x18] sm:$0xff] %v1154_v36  ;;  %v1144_v39 = vpop.f32.mrb[4].mxu0  ;;  %v1095_v41 = vpop.f32.mrb[5].mxu1  ;;  %1166 = sbr.rel (%p1529_p5) target bundleno = 427 (0x1ab), region = 101 }
 0x189   : > { %v1145_v40 = vadd.f32 %v1144_v39, %v1093_v37  ;;  %v1146_v43 = vpop.f32.mrb[5].mxu0  ;;  %v1097_v45 = vpop.f32.mrb[6].mxu1 }
 0x18a   : > { %v1147_v44 = vadd.f32 %v1146_v43, %v1095_v41  ;;  %v1148_v46 = vpop.f32.mrb[6].mxu0  ;;  %v1098_v48 = vpop.f32.mrb[7].mxu1 }
 0x18b   : > { %v1155_v47 = vadd.f32 %v1145_v40, %v623_v38  ;;  %v1149_v49 = vpop.f32.mrb[7].mxu0 }
 0x18c   : > { %v1156_v50 = vadd.f32 %v1147_v44, %v624_v42  ;;  %v1167_v54 = vld [vmem:[#allocation2] sm:$0xff] (!%p1529_p5) }
 0x18d   : > { %1161 = vst [vmem:[#allocation2 + $0x20] sm:$0xff] %v1155_v47  ;;  %v1168_v59 = vld [vmem:[#allocation2 + $0x8] sm:$0xff] (!%p1529_p5)  ;;  %v1185_v0 = vadd.f32 (!%p1529_p5), %v1178_v60, %v1167_v54 }
 0x18e   : > { %1162 = vst [vmem:[#allocation2 + $0x28] sm:$0xff] %v1156_v50  ;;  %v1169_v57 = vld [vmem:[#allocation2 + $0x10] sm:$0xff] (!%p1529_p5)  ;;  %v1186_v3 = vadd.f32 (!%p1529_p5), %v1182_v61, %v1168_v59 }
 0x18f   : > { %v1170_v62 = vld [vmem:[#allocation2 + $0x18] sm:$0xff]  ;;  %v1187_v1 = vadd.f32 %v1178_v60, %v1169_v57  ;;  %v1213_v7 = vmul.f32 %v1185_v0, %v1185_v0  ;;  %1191 = vst [vmem:[%s2121_s0] sm:$0xff] %v1185_v0 }
 0x190   : > { %v1188_v4 = vadd.f32 %v1182_v61, %v1170_v62  ;;  %1192 = vst [vmem:[%s2121_s0 + $0x8] sm:$0xff] %v1186_v3  ;;  %v1214_v10 = vmul.f32 %v1186_v3, %v1186_v3 }
 0x191   : > { %v1197_v6 = vadd.f32 %v1187_v1, %v1185_v0  ;;  %v1215_v8 = vmul.f32 %v1187_v1, %v1187_v1  ;;  %1193 = vst [vmem:[%s2121_s0 + $0x10] sm:$0xff] %v1187_v1 }
 0x192   : > { %1194 = vst [vmem:[%s2121_s0 + $0x18] sm:$0xff] %v1188_v4  ;;  %v1205_v11 = vadd.f32 %v1188_v4, %v1186_v3  ;;  %v1216_v12 = vmul.f32 %v1188_v4, %v1188_v4 }
 0x193   : > { %v1219_v15 = vadd.f32 %v1215_v8, %v1213_v7 }
 0x194   : > { %v1171_v58 = vld [vmem:[#allocation2 + $0x20] sm:$0xff]  ;;  %v1227_v16 = vadd.f32 %v1216_v12, %v1214_v10 }
 0x195   : > { %v1172_v63 = vld [vmem:[#allocation2 + $0x28] sm:$0xff]  ;;  %v1189_v2 = vadd.f32 %v1178_v60, %v1171_v58 }
 0x196   : > { %v1190_v5 = vadd.f32 %v1182_v61, %v1172_v63 }
 0x197   : > { %v1217_v9 = vmul.f32 %v1189_v2, %v1189_v2  ;;  %1195 = vst [vmem:[%s2121_s0 + $0x20] sm:$0xff] %v1189_v2  ;;  %v1198_v14 = vadd.f32 %v1197_v6, %v1189_v2 }
 0x198   : > { %1196 = vst [vmem:[%s2121_s0 + $0x28] sm:$0xff] %v1190_v5  ;;  %v1218_v13 = vmul.f32 %v1190_v5, %v1190_v5  ;;  %v1206_v17 = vadd.f32 %v1205_v11, %v1190_v5 }
 0x199   : > { %v1199_v18 = vrot.slane %v1198_v14, 4  ;;  %v1220_v19 = vadd.f32 %v1219_v15, %v1217_v9 }
 0x19a   : > { %v1207_v20 = vrot.slane %v1206_v17, 4  ;;  %v1228_v21 = vadd.f32 %v1227_v16, %v1218_v13 }
 0x19b   : > { %v1200_v22 = vadd.f32 %v1199_v18, %v1198_v14  ;;  %v1221_v23 = vrot.slane %v1220_v19, 4 }
 0x19c   : > { %v1208_v24 = vadd.f32 %v1207_v20, %v1206_v17  ;;  %v1229_v25 = vrot.slane %v1228_v21, 4 }
 0x19d   : > { %v1201_v26 = vrot.slane %v1200_v22, 2  ;;  %v1222_v27 = vadd.f32 %v1221_v23, %v1220_v19 }
 0x19e   : > { %v1209_v28 = vrot.slane %v1208_v24, 2  ;;  %v1230_v29 = vadd.f32 %v1229_v25, %v1228_v21 }
 0x19f   : > { %v1202_v30 = vadd.f32 %v1201_v26, %v1200_v22  ;;  %v1223_v31 = vrot.slane %v1222_v27, 2 }
 0x1a0   : > { %v1210_v32 = vadd.f32 %v1209_v28, %v1208_v24  ;;  %v1231_v33 = vrot.slane %v1230_v29, 2 }
 0x1a1   : > { %v1203_v34 = vrot.slane %v1202_v30, 1  ;;  %v1224_v35 = vadd.f32 %v1223_v31, %v1222_v27 }
 0x1a2   : > { %v1211_v36 = vrot.slane %v1210_v32, 1  ;;  %v1232_v37 = vadd.f32 %v1231_v33, %v1230_v29 }
 0x1a3   : > { %v1204_v38 = vadd.f32 %v1203_v34, %v1202_v30  ;;  %v1225_v39 = vrot.slane %v1224_v35, 1 }
 0x1a4   : > { %v1212_v40 = vadd.f32 %v1211_v36, %v1210_v32  ;;  %v1233_v41 = vrot.slane %v1232_v37, 1 }
 0x1a5   : > { %v1226_v42 = vadd.f32 %v1225_v39, %v1224_v35 }
 0x1a6   : > { %v1234_v43 = vadd.f32 %v1233_v41, %v1232_v37 }
 0x1a7   : > { %v1236_v44 = vsel %vm1235_vm0, %v1204_v38, %v1226_v42 }
 0x1a8   : > { %v1239_v45 = vsel %vm1238_vm1, %v1236_v44, 0.0  ;;  %v1237_v46 = vsel %vm1235_vm0, %v1212_v40, %v1234_v43 }
 0x1a9   : > { %1241 = vst [vmem:[%s2115_s19] sm:$0xff] %v1239_v45  ;;  %v1240_v47 = vsel %vm1238_vm1, %v1237_v46, 0.0 }
 0x1aa   : > { %1242 = vst [vmem:[%s2115_s19 + $0x8] sm:$0xff] %v1240_v47 }
 0x1ab PF: > { %1258 = sbr.rel (!%p1947_p12) target bundleno = 436 (0x1b4), region = 105  ;;  %s1536_s21 = sshll.u32 (%p1947_p12), %s1813_s22, 4  ;;  %v1279_v49 = vld [vmem:[%s2121_s0 + $0x8] sm:$0xff] (%p1947_p12)  ;;  %v1281_v50 = vld [vmem:[%s2121_s0 + $0x10] sm:$0xff] (%p1947_p12)  ;;  %v1283_v51 = vld [vmem:[%s2121_s0 + $0x18] sm:$0xff] (%p1947_p12) }
 0x1ac   : > { %s1264_s29 = scalar_lea.vmem (%p1947_p12), %s2256_s3, %s1536_s21  ;;  %v1285_v52 = vld [vmem:[%s2121_s0 + $0x20] sm:$0xff] (%p1947_p12)  ;;  %v1287_v53 = vld [vmem:[%s2121_s0 + $0x28] sm:$0xff] (%p1947_p12) }
 0x1ad   : > { %1280 = vst [vmem:[%s1264_s29 + $0x8] sm:$0xff] (%p1947_p12), %v1279_v49  ;;  %1282 = vst [vmem:[%s1264_s29 + $0x20] sm:$0xff] (%p1947_p12), %v1281_v50 }
 0x1ae   : > { %1284 = vst [vmem:[%s1264_s29 + $0x28] sm:$0xff] (%p1947_p12), %v1283_v51  ;;  %1286 = vst [vmem:[%s1264_s29 + $0x40] sm:$0xff] (%p1947_p12), %v1285_v52 }
 0x1af   : > { %1288 = vst [vmem:[%s1264_s29 + $0x48] sm:$0xff] (%p1947_p12), %v1287_v53 }
 0x1b2   : > { %v1277_v48 = vld [vmem:[%s2121_s0] sm:$0xff] }
 0x1b3   : > { %1278 = vst [vmem:[%s1264_s29] sm:$0xff] %v1277_v48 }
 0x1b4 PF: > { %s15_s25 = sadd.s32 1, %s1825_s25   ;;  %s2269_s14 = sld [smem:[#allocation6_spill]] }
 0x1b5   : > { %p12_p6 = scmp.ge.s32.totalorder %s15_s25, 18   ;;  %s2270_s30 = sld [smem:[#allocation7_spill]] }
 0x1b6   : > { %s2271_s15 = smov %s1789_s16  ;;  %s2272_s16 = smov %s1945_s13 }
 0x1b7   : > { %s2273_s17 = smov %s1797_s18  ;;  %s2274_s18 = smov %s1942_s12 }
 0x1b8   : > { %s2275_s19 = smov %s1805_s20  ;;  %s2276_s20 = smov %s1928_s7 }
 0x1b9   : > { %s2277_s21 = smov %s1817_s23  ;;  %s2278_s22 = smov %s1821_s24 }
 0x1ba   : > { %s2279_s23 = smov %s2269_s14  ;;  %14 = sbr.rel (!%p12_p6) target bundleno = 9 (0x9), region = 182 }
 0x1bb   : > { %s2280_s24 = smov %s2270_s30 }

// kernel: patch_discriminator_forward.14
= control target key start
LH: loop header
LB: loop body
LE: loop exit
PB: predicated region body
PF: predicated region fallthrough
CT: control target
= control target key end

     0   :  { %v28_v0 = vlaneseq  ;;  %s254_s1 = inlined_call_operand.vmem [shape: f32[1,512], index: 1, kind: input, shape index: {}]   ;;  %s255_s2 = inlined_call_operand.vmem [shape: f32[1,512], index: 2, kind: input, shape index: {}]   ;;  %s256_s0 = inlined_call_operand.vmem [shape: f32[24,512], index: 0, kind: input, shape index: {}]   ;;  %s257_s3 = inlined_call_operand.vmem [shape: f32[24,512], index: 3, kind: output, shape index: {}]  }
   0x1   :  { %v26_v2 = vld [vmem:[%s254_s1] sm:$0xf]  ;;  %v15_v6 = vld [vmem:[%s256_s0 + $0x8] sm:$0xff]  ;;  %v16_v10 = vld [vmem:[%s256_s0 + $0x10] sm:$0xff] }
   0x2   :  { %v29_v1 = vshrl.u32 %v28_v0, 7  ;;  %v60_v3 = vld [vmem:[%s255_s2] sm:$0xf]  ;;  %v19_v12 = vld [vmem:[%s256_s0 + $0x28] sm:$0xff]  ;;  %v17_v17 = vld [vmem:[%s256_s0 + $0x18] sm:$0xff] }
   0x3   :  { %v14_v4 = vld [vmem:[%s256_s0] sm:$0xff]  ;;  %v20_v18 = vld [vmem:[%s256_s0 + $0x30] sm:$0xff]  ;;  %v21_v19 = vld [vmem:[%s256_s0 + $0x38] sm:$0xff] }
   0x4   :  { %v30_v5 = vsub.s32 0, %v29_v1  ;;  %v34_v7 = vsub.s32 1, %v29_v1  ;;  %v38_v8 = vsub.s32 2, %v29_v1  ;;  %v42_v9 = vsub.s32 3, %v29_v1  ;;  %v18_v11 = vld [vmem:[%s256_s0 + $0x20] sm:$0xff]  ;;  %v23_v48 = vld [vmem:[%s256_s0 + $0x48] sm:$0xff] }
   0x5   :  { %v22_v47 = vld [vmem:[%s256_s0 + $0x40] sm:$0xff]  ;;  %v24_v52 = vld [vmem:[%s256_s0 + $0x50] sm:$0xff]  ;;  %v25_v53 = vld [vmem:[%s256_s0 + $0x58] sm:$0xff] }
   0x6   :  { %v31_v13 = vrot.slane %v26_v2, %v30_v5  ;;  %v187_v14 = vrot.slane %v60_v3, %v30_v5  ;;  %v35_v15 = vrot.slane %v26_v2, %v34_v7  ;;  %v189_v16 = vrot.slane %v60_v3, %v34_v7 }
   0x7   :  { %v39_v20 = vrot.slane %v26_v2, %v38_v8  ;;  %v73_v21 = vrot.slane %v60_v3, %v38_v8  ;;  %v43_v22 = vrot.slane %v26_v2, %v42_v9  ;;  %v77_v23 = vrot.slane %v60_v3, %v42_v9 }
   0x8   :  { %v48_v24 = vmul.f32 %v31_v13, %v14_v4  ;;  %v49_v25 = vmul.f32 %v35_v15, %v15_v6  ;;  %v52_v26 = vmul.f32 %v31_v13, %v18_v11  ;;  %v53_v27 = vmul.f32 %v35_v15, %v19_v12 }
   0x9   :  { %v50_v28 = vmul.f32 %v39_v20, %v16_v10  ;;  %v51_v29 = vmul.f32 %v43_v22, %v17_v17  ;;  %v54_v30 = vmul.f32 %v39_v20, %v20_v18  ;;  %v55_v31 = vmul.f32 %v43_v22, %v21_v19 }
   0xa   :  { %v82_v32 = vadd.f32 %v187_v14, %v48_v24  ;;  %v83_v33 = vadd.f32 %v189_v16, %v49_v25  ;;  %v86_v34 = vadd.f32 %v187_v14, %v52_v26  ;;  %v87_v35 = vadd.f32 %v189_v16, %v53_v27 }
   0xb   :  { %v84_v36 = vadd.f32 %v73_v21, %v50_v28  ;;  %v85_v37 = vadd.f32 %v77_v23, %v51_v29  ;;  %v88_v38 = vadd.f32 %v73_v21, %v54_v30  ;;  %v89_v39 = vadd.f32 %v77_v23, %v55_v31 }
   0xc   :  { %vm94_vm0 = vcmp.gt.f32.partialorder %v82_v32, 0.0  ;;  %v106_v40 = vmul.f32 0.2, %v82_v32  ;;  %vm95_vm1 = vcmp.gt.f32.partialorder %v83_v33, 0.0  ;;  %v107_v41 = vmul.f32 0.2, %v83_v33 }
   0xd   :  { %vm96_vm2 = vcmp.gt.f32.partialorder %v84_v36, 0.0  ;;  %v108_v42 = vmul.f32 0.2, %v84_v36  ;;  %vm97_vm3 = vcmp.gt.f32.partialorder %v85_v37, 0.0  ;;  %v109_v43 = vmul.f32 0.2, %v85_v37 }
   0xe   :  { %v118_v44 = vsel %vm94_vm0, %v82_v32, %v106_v40  ;;  %v119_v45 = vsel %vm95_vm1, %v83_v33, %v107_v41  ;;  %vm98_vm4 = vcmp.gt.f32.partialorder %v86_v34, 0.0  ;;  %v110_v46 = vmul.f32 0.2, %v86_v34 }
   0xf   :  { %130 = vst [vmem:[%s257_s3] sm:$0xff] %v118_v44  ;;  %131 = vst [vmem:[%s257_s3 + $0x8] sm:$0xff] %v119_v45  ;;  %v120_v49 = vsel %vm96_vm2, %v84_v36, %v108_v42  ;;  %v121_v50 = vsel %vm97_vm3, %v85_v37, %v109_v43  ;;  %vm99_vm5 = vcmp.gt.f32.partialorder %v87_v35, 0.0  ;;  %v111_v51 = vmul.f32 0.2, %v87_v35 }
  0x10   :  { %132 = vst [vmem:[%s257_s3 + $0x10] sm:$0xff] %v120_v49  ;;  %133 = vst [vmem:[%s257_s3 + $0x18] sm:$0xff] %v121_v50  ;;  %v122_v54 = vsel %vm98_vm4, %v86_v34, %v110_v46  ;;  %vm100_vm6 = vcmp.gt.f32.partialorder %v88_v38, 0.0  ;;  %v112_v55 = vmul.f32 0.2, %v88_v38  ;;  %vm101_vm7 = vcmp.gt.f32.partialorder %v89_v39, 0.0 }
  0x11   :  { %134 = vst [vmem:[%s257_s3 + $0x20] sm:$0xff] %v122_v54  ;;  %v123_v56 = vsel %vm99_vm5, %v87_v35, %v111_v51  ;;  %v113_v57 = vmul.f32 0.2, %v89_v39  ;;  %v56_v58 = vmul.f32 %v31_v13, %v22_v47  ;;  %v57_v59 = vmul.f32 %v35_v15, %v23_v48 }
  0x12   :  { %135 = vst [vmem:[%s257_s3 + $0x28] sm:$0xff] %v123_v56  ;;  %v124_v60 = vsel %vm100_vm6, %v88_v38, %v112_v55  ;;  %v58_v61 = vmul.f32 %v39_v20, %v24_v52  ;;  %v59_v62 = vmul.f32 %v43_v22, %v25_v53 }
  0x13   :  { %136 = vst [vmem:[%s257_s3 + $0x30] sm:$0xff] %v124_v60  ;;  %v125_v63 = vsel %vm101_vm7, %v89_v39, %v113_v57  ;;  %v90_v0 = vadd.f32 %v187_v14, %v56_v58  ;;  %v91_v1 = vadd.f32 %v189_v16, %v57_v59 }
  0x14   :  { %137 = vst [vmem:[%s257_s3 + $0x38] sm:$0xff] %v125_v63  ;;  %v92_v2 = vadd.f32 %v73_v21, %v58_v61  ;;  %v93_v3 = vadd.f32 %v77_v23, %v59_v62 }
  0x15   :  { %vm102_vm8 = vcmp.gt.f32.partialorder %v90_v0, 0.0  ;;  %v114_v4 = vmul.f32 0.2, %v90_v0  ;;  %vm103_vm9 = vcmp.gt.f32.partialorder %v91_v1, 0.0  ;;  %v115_v5 = vmul.f32 0.2, %v91_v1 }
  0x16   :  { %vm104_vm10 = vcmp.gt.f32.partialorder %v92_v2, 0.0  ;;  %v116_v6 = vmul.f32 0.2, %v92_v2  ;;  %vm105_vm11 = vcmp.gt.f32.partialorder %v93_v3, 0.0  ;;  %v117_v7 = vmul.f32 0.2, %v93_v3 }
  0x17   :  { %v126_v8 = vsel %vm102_vm8, %v90_v0, %v114_v4  ;;  %v127_v9 = vsel %vm103_vm9, %v91_v1, %v115_v5 }
  0x18   :  { %138 = vst [vmem:[%s257_s3 + $0x40] sm:$0xff] %v126_v8  ;;  %139 = vst [vmem:[%s257_s3 + $0x48] sm:$0xff] %v127_v9  ;;  %v128_v10 = vsel %vm104_vm10, %v92_v2, %v116_v6  ;;  %v129_v11 = vsel %vm105_vm11, %v93_v3, %v117_v7 }
  0x19   :  { %140 = vst [vmem:[%s257_s3 + $0x50] sm:$0xff] %v128_v10  ;;  %141 = vst [vmem:[%s257_s3 + $0x58] sm:$0xff] %v129_v11 }

// kernel: patch_discriminator_forward.15
= control target key start
LH: loop header
LB: loop body
LE: loop exit
PB: predicated region body
PF: predicated region fallthrough
CT: control target
= control target key end

     0   :  { %s949_s12 = smov 0   ;;  %s951_s13 = smov 0   ;;  %s1032_s0 = inlined_call_operand.vmem [shape: bf16[8,8192], index: 0, kind: input, shape index: {}]   ;;  %s1033_s1 = inlined_call_operand.vmem [shape: bf16[8192,128], index: 1, kind: input, shape index: {}]   ;;  %s1034_s2 = inlined_call_operand.vmem [shape: f32[1,128], index: 2, kind: input, shape index: {}]   ;;  %s1035_s3 = inlined_call_operand.vmem [shape: f32[8,128], index: 3, kind: output, shape index: {}]  }
   0x1   :  { %s953_s14 = smov 0  }
   0x2 LB: > { %s25_s15 = sadd.s32 1, %s922_s13  ;;  %p748_p0 = scmp.ge.s32.totalorder %s926_s14, 1  ;;  %s926_s14 = sphi %s953_s14, %s13_s14   ;;  %s922_s13 = sphi %s951_s13, %s1037_s13   ;;  %s918_s12 = sphi %s949_s12, %s1036_s12  }
   0x3   : > { %p26_p1 = scmp.ge.s32.totalorder %s25_s15, 16  ;;  %p189_p2 = scmp.lt.s32.totalorder %s926_s14, 17 }
   0x5   : > { %s1039_s15 = smov (%p26_p1, %s25_s15), 0  ;;  %p190_p3 = pnand %p748_p0, %p189_p2 }
   0x6   : > { %s749_s16 = sshll.u32 (!%p190_p3), %s918_s12, 2  ;;  %s751_s17 = sshll.u32 (!%p190_p3), %s918_s12, 6 }
   0x7   : > { %193 = sbr.rel (%p190_p3) target bundleno = 317 (0x13d), region = 32  ;;  %p233_p4 = scmp.lt.s32.totalorder (!%p190_p3), %s749_s16, 63 }
   0x8   : > { %p241_p5 = scmp.lt.s32.totalorder (!%p190_p3), %s751_s17, 1023  ;;  %p753_p6 = scmp.ne.s32.totalorder (!%p190_p3), %s918_s12, 0 }
   0xe   : > { %s1041_s16 = smov (!%p233_p4, %s749_s16), 63  ;;  %s1043_s17 = smov (!%p241_p5, %s751_s17), 1023 }
   0xf   : > { %s750_s18 = sshll.u32 %s1041_s16, 2  ;;  %s752_s22 = sshll.u32 %s1043_s17, 2  ;;  %v928_v0 = vmov (!%p753_p6), 0.0  }
  0x10   : > { %s974_s21 = scalar_lea.vmem %s1032_s0, %s750_s18  ;;  %s979_s25 = scalar_lea.vmem %s1033_s1, %s752_s22  ;;  %264 = vst [vmem:[#allocation2] sm:$0xff] (!%p753_p6), %v928_v0 }
  0x11   : > { %263 = sbr.rel (%p753_p6) target bundleno = 24 (0x18), region = 36 }
  0x18 PF: > { %v864_v1 = vld [vmem:[%s979_s25 + $0x40] sm:$0xff]   ;;  %v868_v5 = vld [vmem:[%s979_s25 + $0x48] sm:$0xff]   ;;  %v872_v9 = vld [vmem:[%s979_s25 + $0x50] sm:$0xff]   ;;  %p790_p7 = scmp.ne.s32.totalorder %s918_s12, 15 }
  0x19   : > { %v865_v2 = vld [vmem:[%s979_s25 + $0xc0] sm:$0xff]   ;;  %795 = vmatprep.subr.bf16.mxu0 %v864_v1  ;;  %v869_v6 = vld [vmem:[%s979_s25 + $0xc8] sm:$0xff]   ;;  %v873_v10 = vld [vmem:[%s979_s25 + $0xd0] sm:$0xff]  }
  0x1a   : > { %v866_v3 = vld [vmem:[%s979_s25] sm:$0xff]   ;;  %817 = vmatprep.subr.bf16.mxu1 %v865_v2  ;;  %v870_v7 = vld [vmem:[%s979_s25 + $0x8] sm:$0xff]   ;;  %v874_v11 = vld [vmem:[%s979_s25 + $0x10] sm:$0xff]  }
  0x1b   : > { %v867_v4 = vld [vmem:[%s979_s25 + $0x80] sm:$0xff]   ;;  %796 = vmatpush3.bf16.msra.mxu0 %v866_v3  ;;  %v871_v8 = vld [vmem:[%s979_s25 + $0x88] sm:$0xff]   ;;  %v875_v12 = vld [vmem:[%s979_s25 + $0x90] sm:$0xff]  }
  0x1c   : > { %818 = vmatpush3.bf16.msra.mxu1 %v867_v4  ;;  %797 = vmatprep.subr.bf16.mxu0 %v868_v5  ;;  %v876_v13 = vld [vmem:[%s979_s25 + $0x58] sm:$0xff]   ;;  %v880_v17 = vld [vmem:[%s979_s25 + $0x60] sm:$0xff]   ;;  %v884_v21 = vld [vmem:[%s979_s25 + $0x68] sm:$0xff]  }
  0x1d   : > { %819 = vmatprep.subr.bf16.mxu1 %v869_v6  ;;  %v877_v14 = vld [vmem:[%s979_s25 + $0xd8] sm:$0xff]   ;;  %v881_v18 = vld [vmem:[%s979_s25 + $0xe0] sm:$0xff]   ;;  %v885_v22 = vld [vmem:[%s979_s25 + $0xe8] sm:$0xff]  }
  0x1e   : > { %v878_v15 = vld [vmem:[%s979_s25 + $0x18] sm:$0xff]   ;;  %v882_v19 = vld [vmem:[%s979_s25 + $0x20] sm:$0xff]   ;;  %v886_v23 = vld [vmem:[%s979_s25 + $0x28] sm:$0xff]  }
  0x1f   : > { %798 = vmatpush3.bf16.msra.mxu0 %v870_v7  ;;  %v879_v16 = vld [vmem:[%s979_s25 + $0x98] sm:$0xff]   ;;  %v883_v20 = vld [vmem:[%s979_s25 + $0xa0] sm:$0xff]   ;;  %v887_v24 = vld [vmem:[%s979_s25 + $0xa8] sm:$0xff]  }
  0x20   : > { %820 = vmatpush3.bf16.msra.mxu1 %v871_v8  ;;  %799 = vmatprep.subr.bf16.mxu0 %v872_v9  ;;  %v888_v25 = vld [vmem:[%s979_s25 + $0x70] sm:$0xff]   ;;  %v892_v29 = vld [vmem:[%s979_s25 + $0x78] sm:$0xff]   ;;  %v266_v33 = vld [vmem:[%s974_s21] sm:$0xff] }
  0x21   : > { %821 = vmatprep.subr.bf16.mxu1 %v873_v10  ;;  %v889_v26 = vld [vmem:[%s979_s25 + $0xf0] sm:$0xff]   ;;  %v893_v30 = vld [vmem:[%s979_s25 + $0xf8] sm:$0xff]   ;;  %v267_v34 = vld [vmem:[%s974_s21 + $0x8] sm:$0xff]  ;;  %v754_v35 = vcombine.low %v266_v33, %v266_v33  ;;  %v755_v36 = vcombine.high %v266_v33, %v266_v33 }
  0x22   : > { %v890_v27 = vld [vmem:[%s979_s25 + $0x30] sm:$0xff]   ;;  %v894_v31 = vld [vmem:[%s979_s25 + $0x38] sm:$0xff]   ;;  %v756_v37 = vcombine.low %v267_v34, %v267_v34  ;;  %v757_v38 = vcombine.high %v267_v34, %v267_v34  ;;  %v265_v47 = vld [vmem:[#allocation2] sm:$0xff] }
  0x23   : > { %800 = vmatpush3.bf16.msra.mxu0 %v874_v11  ;;  %v891_v28 = vld [vmem:[%s979_s25 + $0xb0] sm:$0xff]   ;;  %v895_v32 = vld [vmem:[%s979_s25 + $0xb8] sm:$0xff]   ;;  %570 = vmatprep.mubr.bf16.mxu0 %v755_v36  ;;  %v791_v53 = vld [vmem:[%s1034_s2] ss:$0 sm:$0xff] (!%p790_p7) }
  0x24   : > { %822 = vmatpush3.bf16.msra.mxu1 %v875_v12  ;;  %801 = vmatprep.subr.bf16.mxu0 %v876_v13 }
  0x25   : > { %823 = vmatprep.subr.bf16.mxu1 %v877_v14  ;;  %610 = vmatprep.mubr.bf16.mxu1 %v757_v38 }
  0x27   : > { %802 = vmatpush3.bf16.msra.mxu0 %v878_v15 }
  0x28   : > { %824 = vmatpush3.bf16.msra.mxu1 %v879_v16  ;;  %803 = vmatprep.subr.bf16.mxu0 %v880_v17 }
  0x29   : > { %825 = vmatprep.subr.bf16.mxu1 %v881_v18 }
  0x2b   : > { %804 = vmatpush3.bf16.msra.mxu0 %v882_v19 }
  0x2c   : > { %826 = vmatpush3.bf16.msra.mxu1 %v883_v20  ;;  %805 = vmatprep.subr.bf16.mxu0 %v884_v21 }
  0x2d   : > { %827 = vmatprep.subr.bf16.mxu1 %v885_v22 }
  0x2f   : > { %806 = vmatpush3.bf16.msra.mxu0 %v886_v23 }
  0x30   : > { %828 = vmatpush3.bf16.msra.mxu1 %v887_v24  ;;  %807 = vmatprep.subr.bf16.mxu0 %v888_v25 }
  0x31   : > { %829 = vmatprep.subr.bf16.mxu1 %v889_v26 }
  0x33   : > { %808 = vmatpush3.bf16.msra.mxu0 %v890_v27 }
  0x34   : > { %830 = vmatpush3.bf16.msra.mxu1 %v891_v28  ;;  %809 = vmatprep.subr.bf16.mxu0 %v892_v29 }
  0x35   : > { %831 = vmatprep.subr.bf16.mxu1 %v893_v30 }
  0x37   : > { %810 = vmatpush3.bf16.msra.mxu0 %v894_v31 }
  0x38   : > { %832 = vmatpush3.bf16.msra.mxu1 %v895_v32 }
  0x3a   : > { %571 = vmatmul.mubr.bf16.vlgmr.msra.gmra.mrb[0].mxu0 %v754_v35 }
  0x3b   : > { %611 = vmatmul.mubr.bf16.vlgmr.msra.gmra.mrb[0].mxu1 %v756_v37 }
 0x10d   : > { %v811_v39 = vpop.f32.mrb[0].mxu0 }
 0x10e   : > { %v833_v40 = vpop.f32.mrb[0].mxu1  ;;  %v812_v41 = vpop.f32.mrb[1].mxu0 }
 0x10f   : > { %v834_v42 = vpop.f32.mrb[1].mxu1  ;;  %v813_v43 = vadd.f32 %v812_v41, %v811_v39  ;;  %v814_v45 = vpop.f32.mrb[2].mxu0 }
 0x110   : > { %v835_v44 = vadd.f32 %v834_v42, %v833_v40  ;;  %v836_v46 = vpop.f32.mrb[2].mxu1  ;;  %v815_v48 = vpop.f32.mrb[3].mxu0  ;;  %623 = sbr.rel (%p790_p7) target bundleno = 317 (0x13d), region = 40 }
 0x111   : > { %v837_v49 = vpop.f32.mrb[3].mxu1 }
 0x112   : > { %v613_v50 = vadd.f32 %v835_v44, %v813_v43 }
 0x114   : > { %v618_v51 = vadd.f32 %v613_v50, %v265_v47 }
 0x116   : > { %619 = vst [vmem:[#allocation2] sm:$0xff] %v618_v51 }
 0x11d   : > { %v624_v52 = vld [vmem:[#allocation2] sm:$0xff] }
 0x11e   : > { %v632_v54 = vadd.f32 %v791_v53, %v624_v52 }
 0x120   : > { %v633_v55 = vsub.f32 0.0, %v632_v54 }
 0x122   : > { %v634_v56 = vmul.f32 1.442695, %v633_v55 }
 0x124   : > { %900 = vpow2.f32 %v634_v56 }
 0x12e   : > { %v901_v57 = vpop.eup %900 }
 0x12f   : > { %v636_v58 = vadd.f32 1.0, %v901_v57 }
 0x131   : > { %902 = vrcp.f32 %v636_v58 }
 0x13b   : > { %v903_v59 = vpop.eup %902 }
 0x13c   : > { %638 = vst [vmem:[%s1035_s3] sm:$0xff] %v903_v59 }
 0x13d PF: > { %s13_s14 = sadd.s32 1, %s926_s14   ;;  %s1036_s12 = smov %s922_s13 }
 0x13e   : > { %p10_p8 = scmp.ge.s32.totalorder %s13_s14, 18   ;;  %s1037_s13 = smov %s1039_s15 }
 0x140   :  { %12 = sbr.rel (!%p10_p8) target bundleno = 2 (0x2), region = 76 }

</bundles_post_ra>
